<compile_context>
chip_gen: v7x
topology: tpu7x:2x2x1
jax: 0.10.0
libtpu: 0.0.40
codegen_flags: <defaults>
</compile_context>

<pallas_src>
import jax
import jax.numpy as jnp
from jax import lax
from jax.experimental import pallas as pl
from jax.experimental.pallas import tpu as pltpu

LANE = 128


def _round_up(n, m):
    return ((n + m - 1) // m) * m


def _pad_axis(a, axis, new):
    pad = [(0, 0)] * a.ndim
    pad[axis] = (0, new - a.shape[axis])
    return jnp.pad(a, pad)


def _make_kernel(H, W, has_proj):
    HW = H * W

    def conv3x3(act_f32, w_ref, masks):
        """3x3 'same' conv: dw taps packed along K, 3 dh-shifted bf16 MXU matmuls."""
        col_prev_ok, col_next_ok, row_top_ok, row_bot_ok = masks
        # dw = -1 / +1 taps: one-sublane roll (XLU slot) + image-edge column
        # mask (VPU slot) -- both idle while the MXU runs; no relayout copies,
        # no sublane-misaligned slices.
        prev = jnp.where(col_prev_ok, pltpu.roll(act_f32, 1, axis=0), 0.0)
        nxt = jnp.where(col_next_ok, pltpu.roll(act_f32, HW - 1, axis=0), 0.0)
        # Pack [w-1, w, w+1] along channels -> (HW, 3*C): K = 3*C feeds the
        # 256-wide MXUs of v6e/v7x much better than nine K=128 matmuls.
        packed = jnp.concatenate([prev, act_f32, nxt], axis=-1)
        # dh = -1 / +1 taps: roll by one image row + top/bottom row mask.
        top = jnp.where(row_top_ok, pltpu.roll(packed, W, axis=0), 0.0)
        bot = jnp.where(row_bot_ok, pltpu.roll(packed, HW - W, axis=0), 0.0)
        # Sum of dots: no accumulator scratch, no VMEM read-modify-write.
        # bf16 operands, f32 accumulation.
        return (jnp.dot(top.astype(jnp.bfloat16), w_ref[0],
                        preferred_element_type=jnp.float32)
                + jnp.dot(packed.astype(jnp.bfloat16), w_ref[1],
                          preferred_element_type=jnp.float32)
                + jnp.dot(bot.astype(jnp.bfloat16), w_ref[2],
                          preferred_element_type=jnp.float32))

    def kernel(*args):
        if has_proj:
            x_ref, s1, t1, w1, t12, w2, b2t, wsc, o_ref = args
        else:
            x_ref, s1, t1, w1, t12, w2, b2t, o_ref = args
            wsc = None

        # Image-edge masks, shared by both convs.
        p = lax.broadcasted_iota(jnp.int32, (HW, 1), 0)
        col = p % W
        masks = (col != 0, col != W - 1, p >= W, p < HW - W)

        x_flat = x_ref[...]                                   # (HW, Cin_p) f32

        # BN1 (eval-mode per-channel affine) + ReLU, f32 on the VPU.
        a1 = jnp.maximum(x_flat * s1[...] + t1[...], 0.0)

        # conv1 (BN2 scale pre-folded into its weights) + fused shift, then ReLU.
        # nn.Dropout is identity in eval mode.
        # TODO(synk): training-mode dropout (pltpu.prng_* masking) not implemented.
        a2 = jnp.maximum(conv3x3(a1, w1, masks) + t12[...], 0.0)

        # conv2; b2t = conv2 bias (+ shortcut bias when projecting).
        out = conv3x3(a2, w2, masks) + b2t[...]

        # Residual shortcut (uses the ORIGINAL x, per the PyTorch module).
        if has_proj:
            out = out + jnp.dot(x_flat.astype(jnp.bfloat16), wsc[...],
                                preferred_element_type=jnp.float32)
        else:
            out = out + x_flat          # Cin_p == Cp here (in_planes == planes)

        o_ref[...] = out.astype(o_ref.dtype)

    return kernel


def wide_basic_nhwc(x_flat, params, H, W, *, stride=1, eps=1e-5):
    """Fused eval-mode wide_basic on a lane-padded, flattened NHWC activation.

    x_flat: (B, H*W, Cin_p) f32, Cin_p a multiple of 128, extra channels zero.
    Returns (B, H*W, Cp) f32 with Cp = round_up(planes, 128).  Chaining stacked
    blocks in this layout avoids per-block NCHW<->NHWC HBM relayout passes.
    """
    # TODO(synk): stride > 1 (strided conv2 + strided 1x1 shortcut) not implemented.
    assert stride == 1, "stride > 1 not implemented in the fused kernel"
    B, HW, Cin_p = x_flat.shape
    planes = params["conv1_w"].shape[0]
    Cin = params["conv1_w"].shape[1]
    assert HW == H * W and Cin_p == _round_up(Cin, LANE)
    Cp = _round_up(planes, LANE)
    has_proj = (stride != 1) or (Cin != planes)

    def bn_affine(stats):
        g, b, m, v = stats
        scale = g / jnp.sqrt(v + eps)
        return scale, b - m * scale

    s1, t1 = bn_affine(params["bn1"])
    s2, t2 = bn_affine(params["bn2"])

    def pack_w(w_oihw, cin_p, cout_p, out_scale=None):
        # (O, I, 3, 3) -> (kh, kw, I, O), optionally fold a per-O scale,
        # zero-pad channels to lane width, merge (kw, I_p) into a dw-packed
        # K axis, and cast to bf16 for the MXU.
        w = jnp.transpose(w_oihw, (2, 3, 1, 0))
        if out_scale is not None:
            w = w * out_scale
        w = _pad_axis(_pad_axis(w, 2, cin_p), 3, cout_p)
        return w.reshape(3, 3 * cin_p, cout_p).astype(jnp.bfloat16)

    # BN2(conv1(a1) + b1) == [s2-scaled conv1](a1) + (s2*b1 + t2): fold host-side.
    w1 = pack_w(params["conv1_w"], Cin_p, Cp, out_scale=s2)
    t12 = _pad_axis((s2 * params["conv1_b"] + t2).reshape(1, -1), 1, Cp)
    w2 = pack_w(params["conv2_w"], Cp, Cp)
    b2_total = params["conv2_b"] + (params["short_b"] if has_proj else 0.0)

    inputs = [x_flat,
              _pad_axis(s1.reshape(1, -1), 1, Cin_p),
              _pad_axis(t1.reshape(1, -1), 1, Cin_p),
              w1, t12, w2,
              _pad_axis(b2_total.reshape(1, -1), 1, Cp)]
    row = lambda c: pl.BlockSpec((1, c), lambda b: (0, 0))
    # Constant-index weight specs stay resident in VMEM across the batch grid.
    # TODO(synk): at real WRN widths (C=640) add pipeline_mode=pl.Buffered(1) to
    # the weight specs and tile Cp as an extra grid axis to fit v7x's 64 MiB VMEM.
    in_specs = [
        pl.BlockSpec((None, HW, Cin_p), lambda b: (b, 0, 0)),
        row(Cin_p), row(Cin_p),
        pl.BlockSpec((3, 3 * Cin_p, Cp), lambda b: (0, 0, 0)),
        row(Cp),
        pl.BlockSpec((3, 3 * Cp, Cp), lambda b: (0, 0, 0)),
        row(Cp),
    ]
    if has_proj:
        wsc = jnp.transpose(params["short_w"].reshape(planes, Cin), (1, 0))
        wsc = _pad_axis(_pad_axis(wsc, 0, Cin_p), 1, Cp).astype(jnp.bfloat16)
        inputs.append(wsc)
        in_specs.append(pl.BlockSpec((Cin_p, Cp), lambda b: (0, 0)))

    # TODO(synk): for large H*W on v7x, add a row-block grid axis (halo rows via
    # an Element-offset index map) for more pipeline / dual-TC depth.
    return pl.pallas_call(
        _make_kernel(H, W, has_proj),
        out_shape=jax.ShapeDtypeStruct((B, HW, Cp), jnp.float32),
        grid=(B,),
        in_specs=in_specs,
        out_specs=pl.BlockSpec((None, HW, Cp), lambda b: (b, 0, 0)),
        compiler_params=pltpu.CompilerParams(
            dimension_semantics=("parallel",),
            vmem_limit_bytes=64 * 1024 * 1024),
    )(*inputs)


def wide_basic_forward(x_nchw, params, *, stride=1, eps=1e-5):
    """Eval-mode wide_basic forward, NCHW in / NCHW out (PyTorch layout)."""
    B, Cin, H, W = x_nchw.shape
    planes = params["conv1_w"].shape[0]
    Cin_p = _round_up(Cin, LANE)
    Cp = _round_up(planes, LANE)
    x = _pad_axis(jnp.transpose(x_nchw, (0, 2, 3, 1)), 3, Cin_p)
    x = x.reshape(B, H * W, Cin_p)
    out = wide_basic_nhwc(x, params, H, W, stride=stride, eps=eps)
    out = out.reshape(B, H, W, Cp)[..., :planes]
    return jnp.transpose(out, (0, 3, 1, 2))


def ref_wide_basic(x_nchw, params, *, stride=1, eps=1e-5):
    """Plain-JAX f32 reference (eval mode), NHWC internally."""
    x = jnp.transpose(x_nchw, (0, 2, 3, 1))

    def bn_relu(t, stats):
        g, b, m, v = stats
        return jax.nn.relu((t - m) / jnp.sqrt(v + eps) * g + b)

    def conv3x3(t, w_oihw, bias):
        w = jnp.transpose(w_oihw, (2, 3, 1, 0))
        H, W = t.shape[1], t.shape[2]
        tp = jnp.pad(t, ((0, 0), (1, 1), (1, 1), (0, 0)))
        acc = jnp.zeros(t.shape[:3] + (w.shape[-1],), jnp.float32)
        for dh in range(3):
            for dw in range(3):
                acc = acc + jnp.einsum("bhwc,co->bhwo",
                                       tp[:, dh:dh + H, dw:dw + W, :], w[dh, dw])
        return acc + bias

    a1 = bn_relu(x, params["bn1"])
    h1 = conv3x3(a1, params["conv1_w"], params["conv1_b"])
    a2 = bn_relu(h1, params["bn2"])
    h2 = conv3x3(a2, params["conv2_w"], params["conv2_b"])
    Cin, planes = x.shape[-1], params["conv1_w"].shape[0]
    if stride != 1 or Cin != planes:
        wsc = jnp.transpose(params["short_w"].reshape(planes, Cin), (1, 0))
        out = h2 + jnp.einsum("bhwc,co->bhwo", x, wsc) + params["short_b"]
    else:
        out = h2 + x
    return jnp.transpose(out, (0, 3, 1, 2))


if __name__ == "__main__":
    key = jax.random.PRNGKey(0)
    ks = jax.random.split(key, 16)

    def u(k, shape, lo, hi):
        return jax.random.uniform(k, shape, jnp.float32, lo, hi)

    def make_params(keys, Cin, planes):
        return {
            "bn1": (u(keys[0], (Cin,), 0.5, 1.5),      # gamma
                    u(keys[1], (Cin,), -0.5, 0.5),     # beta
                    u(keys[2], (Cin,), -0.2, 0.2),     # running_mean
                    u(keys[3], (Cin,), 0.5, 1.5)),     # running_var
            "conv1_w": u(keys[4], (planes, Cin, 3, 3), -0.3, 0.3),
            "conv1_b": u(keys[5], (planes,), -0.3, 0.3),
            "bn2": (u(keys[6], (planes,), 0.5, 1.5),
                    u(keys[7], (planes,), -0.5, 0.5),
                    u(keys[8], (planes,), -0.2, 0.2),
                    u(keys[9], (planes,), 0.5, 1.5)),
            "conv2_w": u(keys[10], (planes, planes, 3, 3), -0.2, 0.2),
            "conv2_b": u(keys[11], (planes,), -0.3, 0.3),
            "short_w": u(keys[12], (planes, Cin, 1, 1), -0.5, 0.5),
            "short_b": u(keys[13], (planes,), -0.3, 0.3),
        }

    # Case 1: in_planes != planes -> 1x1 projection shortcut.
    B, Cin, planes, H, W = 2, 4, 8, 16, 16
    params = make_params(ks, Cin, planes)
    x = jax.random.normal(ks[14], (B, Cin, H, W), jnp.float32)
    out = wide_basic_forward(x, params)
    jax.block_until_ready(out)
    ref = ref_wide_basic(x, params)
    assert out.shape == (B, planes, H, W)
    err = float(jnp.max(jnp.abs(out - ref)))
    # bf16 MXU operands (f32 accumulation) -> slightly looser tolerance than pure f32.
    assert jnp.allclose(out, ref, atol=3e-2, rtol=3e-2), f"max abs err {err}"

    # Case 2: in_planes == planes -> identity shortcut.
    ks2 = jax.random.split(ks[15], 16)
    params2 = make_params(ks2, 8, 8)
    x2 = jax.random.normal(ks2[14], (2, 8, H, W), jnp.float32)
    out2 = wide_basic_forward(x2, params2)
    jax.block_until_ready(out2)
    ref2 = ref_wide_basic(x2, params2)
    err2 = float(jnp.max(jnp.abs(out2 - ref2)))
    assert jnp.allclose(out2, ref2, atol=3e-2, rtol=3e-2), f"max abs err {err2}"

    print("KERNEL_OK")
</pallas_src>

<mosaic_0001>
module attributes {stable_mosaic.version = 11 : i64} {
  func.func @kernel(%arg0: i32, %arg1: memref<1x256x128xf32, #tpu.memory_space<vmem>>, %arg2: memref<1x128xf32, #tpu.memory_space<vmem>>, %arg3: memref<1x128xf32, #tpu.memory_space<vmem>>, %arg4: memref<3x384x128xbf16, #tpu.memory_space<vmem>>, %arg5: memref<1x128xf32, #tpu.memory_space<vmem>>, %arg6: memref<3x384x128xbf16, #tpu.memory_space<vmem>>, %arg7: memref<1x128xf32, #tpu.memory_space<vmem>>, %arg8: memref<128x128xbf16, #tpu.memory_space<vmem>>, %arg9: memref<1x256x128xf32, #tpu.memory_space<vmem>>) attributes {dimension_semantics = [#tpu.dimension_semantics<parallel>], iteration_bounds = array<i64: 2>, scalar_prefetch = 0 : i64, scratch_operands = 0 : i64, tpu.core_type = #tpu.core_type<tc>, window_params = [{transform_indices = @transform_0, window_bounds = array<i64: 1, 256, 128>}, {pipeline_mode = #tpu.pipeline_mode<synchronous>, transform_indices = @transform_1, window_bounds = array<i64: 1, 128>}, {pipeline_mode = #tpu.pipeline_mode<synchronous>, transform_indices = @transform_2, window_bounds = array<i64: 1, 128>}, {pipeline_mode = #tpu.pipeline_mode<synchronous>, transform_indices = @transform_3, window_bounds = array<i64: 3, 384, 128>}, {pipeline_mode = #tpu.pipeline_mode<synchronous>, transform_indices = @transform_4, window_bounds = array<i64: 1, 128>}, {pipeline_mode = #tpu.pipeline_mode<synchronous>, transform_indices = @transform_5, window_bounds = array<i64: 3, 384, 128>}, {pipeline_mode = #tpu.pipeline_mode<synchronous>, transform_indices = @transform_6, window_bounds = array<i64: 1, 128>}, {pipeline_mode = #tpu.pipeline_mode<synchronous>, transform_indices = @transform_7, window_bounds = array<i64: 128, 128>}, {transform_indices = @transform_8, window_bounds = array<i64: 1, 256, 128>}]} {
    %0 = tpu.iota {dimensions = array<i32: 0>} : vector<256x1xi32>
    %c16_i32 = arith.constant 16 : i32
    %c0_i32 = arith.constant 0 : i32
    %1 = arith.cmpi eq, %c16_i32, %c0_i32 : i32
    %c1_i32 = arith.constant 1 : i32
    %2 = arith.select %1, %c1_i32, %c16_i32 : i32
    %3 = vector.broadcast %2 : i32 to vector<256x1xi32>
    %4 = arith.remsi %0, %3 : vector<256x1xi32>
    %c0_i32_0 = arith.constant 0 : i32
    %5 = vector.broadcast %c0_i32_0 : i32 to vector<256x1xi32>
    %6 = arith.cmpi ne, %4, %5 : vector<256x1xi32>
    %c0_i32_1 = arith.constant 0 : i32
    %7 = vector.broadcast %c0_i32_1 : i32 to vector<256x1xi32>
    %8 = arith.cmpi slt, %4, %7 : vector<256x1xi32>
    %c0_i32_2 = arith.constant 0 : i32
    %9 = arith.cmpi slt, %2, %c0_i32_2 : i32
    %10 = vector.broadcast %9 : i1 to vector<256x1xi1>
    %11 = vector.broadcast %10 : vector<256x1xi1> to vector<256x1xi1>
    %12 = arith.xori %8, %11 : vector<256x1xi1>
    %13 = arith.andi %12, %6 : vector<256x1xi1>
    %14 = vector.broadcast %2 : i32 to vector<256x1xi32>
    %15 = arith.addi %4, %14 : vector<256x1xi32>
    %16 = arith.select %13, %15, %4 : vector<256x1xi1>, vector<256x1xi32>
    %c0_i32_3 = arith.constant 0 : i32
    %17 = vector.broadcast %c0_i32_3 : i32 to vector<256x1xi32>
    %18 = arith.cmpi ne, %16, %17 : vector<256x1xi32>
    %c15_i32 = arith.constant 15 : i32
    %19 = vector.broadcast %c15_i32 : i32 to vector<256x1xi32>
    %20 = arith.cmpi ne, %16, %19 : vector<256x1xi32>
    %c16_i32_4 = arith.constant 16 : i32
    %21 = vector.broadcast %c16_i32_4 : i32 to vector<256x1xi32>
    %22 = arith.cmpi sge, %0, %21 : vector<256x1xi32>
    %c240_i32 = arith.constant 240 : i32
    %23 = vector.broadcast %c240_i32 : i32 to vector<256x1xi32>
    %24 = arith.cmpi slt, %0, %23 : vector<256x1xi32>
    %c0 = arith.constant 0 : index
    %c0_5 = arith.constant 0 : index
    %c0_6 = arith.constant 0 : index
    %25 = vector.load %arg1[%c0, %c0_5, %c0_6] : memref<1x256x128xf32, #tpu.memory_space<vmem>>, vector<1x256x128xf32>
    %26 = vector.shape_cast %25 : vector<1x256x128xf32> to vector<256x128xf32>
    %c0_7 = arith.constant 0 : index
    %c0_8 = arith.constant 0 : index
    %27 = vector.load %arg2[%c0_7, %c0_8] : memref<1x128xf32, #tpu.memory_space<vmem>>, vector<1x128xf32>
    %28 = vector.broadcast %27 : vector<1x128xf32> to vector<256x128xf32>
    %29 = arith.mulf %26, %28 : vector<256x128xf32>
    %c0_9 = arith.constant 0 : index
    %c0_10 = arith.constant 0 : index
    %30 = vector.load %arg3[%c0_9, %c0_10] : memref<1x128xf32, #tpu.memory_space<vmem>>, vector<1x128xf32>
    %31 = vector.broadcast %30 : vector<1x128xf32> to vector<256x128xf32>
    %32 = arith.addf %29, %31 : vector<256x128xf32>
    %cst = arith.constant 0.000000e+00 : f32
    %33 = vector.broadcast %cst : f32 to vector<256x128xf32>
    %34 = arith.maximumf %32, %33 : vector<256x128xf32>
    %c1_i32_11 = arith.constant 1 : i32
    %35 = tpu.dynamic_rotate %34 by %c1_i32_11 dim 0 : vector<256x128xf32>, i32 -> vector<256x128xf32>
    %cst_12 = arith.constant 0.000000e+00 : f32
    %36 = vector.shape_cast %18 : vector<256x1xi1> to vector<256x1xi1>
    %37 = vector.broadcast %36 : vector<256x1xi1> to vector<256x128xi1>
    %38 = vector.broadcast %cst_12 : f32 to vector<256x128xf32>
    %39 = arith.select %37, %35, %38 : vector<256x128xi1>, vector<256x128xf32>
    %c255_i32 = arith.constant 255 : i32
    %40 = tpu.dynamic_rotate %34 by %c255_i32 dim 0 : vector<256x128xf32>, i32 -> vector<256x128xf32>
    %cst_13 = arith.constant 0.000000e+00 : f32
    %41 = vector.shape_cast %20 : vector<256x1xi1> to vector<256x1xi1>
    %42 = vector.broadcast %41 : vector<256x1xi1> to vector<256x128xi1>
    %43 = vector.broadcast %cst_13 : f32 to vector<256x128xf32>
    %44 = arith.select %42, %40, %43 : vector<256x128xi1>, vector<256x128xf32>
    %45 = tpu.concatenate %39, %34, %44 in 1 : vector<256x128xf32>, vector<256x128xf32>, vector<256x128xf32> -> vector<256x384xf32>
    %c16_i32_14 = arith.constant 16 : i32
    %46 = tpu.dynamic_rotate %45 by %c16_i32_14 dim 0 : vector<256x384xf32>, i32 -> vector<256x384xf32>
    %cst_15 = arith.constant 0.000000e+00 : f32
    %47 = vector.shape_cast %22 : vector<256x1xi1> to vector<256x1xi1>
    %48 = vector.broadcast %47 : vector<256x1xi1> to vector<256x384xi1>
    %49 = vector.broadcast %cst_15 : f32 to vector<256x384xf32>
    %50 = arith.select %48, %46, %49 : vector<256x384xi1>, vector<256x384xf32>
    %c240_i32_16 = arith.constant 240 : i32
    %51 = tpu.dynamic_rotate %45 by %c240_i32_16 dim 0 : vector<256x384xf32>, i32 -> vector<256x384xf32>
    %cst_17 = arith.constant 0.000000e+00 : f32
    %52 = vector.shape_cast %24 : vector<256x1xi1> to vector<256x1xi1>
    %53 = vector.broadcast %52 : vector<256x1xi1> to vector<256x384xi1>
    %54 = vector.broadcast %cst_17 : f32 to vector<256x384xf32>
    %55 = arith.select %53, %51, %54 : vector<256x384xi1>, vector<256x384xf32>
    %56 = arith.truncf %50 : vector<256x384xf32> to vector<256x384xbf16>
    %c0_18 = arith.constant 0 : index
    %c0_19 = arith.constant 0 : index
    %c0_20 = arith.constant 0 : index
    %57 = vector.load %arg4[%c0_18, %c0_19, %c0_20] : memref<3x384x128xbf16, #tpu.memory_space<vmem>>, vector<1x384x128xbf16>
    %58 = vector.shape_cast %57 : vector<1x384x128xbf16> to vector<384x128xbf16>
    %cst_21 = arith.constant dense<0.000000e+00> : vector<256x128xf32>
    %59 = tpu.matmul %56, %58, %cst_21 {dimension_numbers = #tpu.dot_dimension_numbers<[1], [0], [0], [1], [0, 0, 1, 1], [], []>} : vector<256x384xbf16>, vector<384x128xbf16>, vector<256x128xf32> -> vector<256x128xf32>
    %60 = arith.truncf %45 : vector<256x384xf32> to vector<256x384xbf16>
    %c1 = arith.constant 1 : index
    %c0_22 = arith.constant 0 : index
    %c0_23 = arith.constant 0 : index
    %61 = vector.load %arg4[%c1, %c0_22, %c0_23] : memref<3x384x128xbf16, #tpu.memory_space<vmem>>, vector<1x384x128xbf16>
    %62 = vector.shape_cast %61 : vector<1x384x128xbf16> to vector<384x128xbf16>
    %cst_24 = arith.constant dense<0.000000e+00> : vector<256x128xf32>
    %63 = tpu.matmul %60, %62, %cst_24 {dimension_numbers = #tpu.dot_dimension_numbers<[1], [0], [0], [1], [0, 0, 1, 1], [], []>} : vector<256x384xbf16>, vector<384x128xbf16>, vector<256x128xf32> -> vector<256x128xf32>
    %64 = arith.addf %59, %63 : vector<256x128xf32>
    %65 = arith.truncf %55 : vector<256x384xf32> to vector<256x384xbf16>
    %c2 = arith.constant 2 : index
    %c0_25 = arith.constant 0 : index
    %c0_26 = arith.constant 0 : index
    %66 = vector.load %arg4[%c2, %c0_25, %c0_26] : memref<3x384x128xbf16, #tpu.memory_space<vmem>>, vector<1x384x128xbf16>
    %67 = vector.shape_cast %66 : vector<1x384x128xbf16> to vector<384x128xbf16>
    %cst_27 = arith.constant dense<0.000000e+00> : vector<256x128xf32>
    %68 = tpu.matmul %65, %67, %cst_27 {dimension_numbers = #tpu.dot_dimension_numbers<[1], [0], [0], [1], [0, 0, 1, 1], [], []>} : vector<256x384xbf16>, vector<384x128xbf16>, vector<256x128xf32> -> vector<256x128xf32>
    %69 = arith.addf %64, %68 : vector<256x128xf32>
    %c0_28 = arith.constant 0 : index
    %c0_29 = arith.constant 0 : index
    %70 = vector.load %arg5[%c0_28, %c0_29] : memref<1x128xf32, #tpu.memory_space<vmem>>, vector<1x128xf32>
    %71 = vector.broadcast %70 : vector<1x128xf32> to vector<256x128xf32>
    %72 = arith.addf %69, %71 : vector<256x128xf32>
    %cst_30 = arith.constant 0.000000e+00 : f32
    %73 = vector.broadcast %cst_30 : f32 to vector<256x128xf32>
    %74 = arith.maximumf %72, %73 : vector<256x128xf32>
    %c1_i32_31 = arith.constant 1 : i32
    %75 = tpu.dynamic_rotate %74 by %c1_i32_31 dim 0 : vector<256x128xf32>, i32 -> vector<256x128xf32>
    %cst_32 = arith.constant 0.000000e+00 : f32
    %76 = vector.shape_cast %18 : vector<256x1xi1> to vector<256x1xi1>
    %77 = vector.broadcast %76 : vector<256x1xi1> to vector<256x128xi1>
    %78 = vector.broadcast %cst_32 : f32 to vector<256x128xf32>
    %79 = arith.select %77, %75, %78 : vector<256x128xi1>, vector<256x128xf32>
    %c255_i32_33 = arith.constant 255 : i32
    %80 = tpu.dynamic_rotate %74 by %c255_i32_33 dim 0 : vector<256x128xf32>, i32 -> vector<256x128xf32>
    %cst_34 = arith.constant 0.000000e+00 : f32
    %81 = vector.shape_cast %20 : vector<256x1xi1> to vector<256x1xi1>
    %82 = vector.broadcast %81 : vector<256x1xi1> to vector<256x128xi1>
    %83 = vector.broadcast %cst_34 : f32 to vector<256x128xf32>
    %84 = arith.select %82, %80, %83 : vector<256x128xi1>, vector<256x128xf32>
    %85 = tpu.concatenate %79, %74, %84 in 1 : vector<256x128xf32>, vector<256x128xf32>, vector<256x128xf32> -> vector<256x384xf32>
    %c16_i32_35 = arith.constant 16 : i32
    %86 = tpu.dynamic_rotate %85 by %c16_i32_35 dim 0 : vector<256x384xf32>, i32 -> vector<256x384xf32>
    %cst_36 = arith.constant 0.000000e+00 : f32
    %87 = vector.shape_cast %22 : vector<256x1xi1> to vector<256x1xi1>
    %88 = vector.broadcast %87 : vector<256x1xi1> to vector<256x384xi1>
    %89 = vector.broadcast %cst_36 : f32 to vector<256x384xf32>
    %90 = arith.select %88, %86, %89 : vector<256x384xi1>, vector<256x384xf32>
    %c240_i32_37 = arith.constant 240 : i32
    %91 = tpu.dynamic_rotate %85 by %c240_i32_37 dim 0 : vector<256x384xf32>, i32 -> vector<256x384xf32>
    %cst_38 = arith.constant 0.000000e+00 : f32
    %92 = vector.shape_cast %24 : vector<256x1xi1> to vector<256x1xi1>
    %93 = vector.broadcast %92 : vector<256x1xi1> to vector<256x384xi1>
    %94 = vector.broadcast %cst_38 : f32 to vector<256x384xf32>
    %95 = arith.select %93, %91, %94 : vector<256x384xi1>, vector<256x384xf32>
    %96 = arith.truncf %90 : vector<256x384xf32> to vector<256x384xbf16>
    %c0_39 = arith.constant 0 : index
    %c0_40 = arith.constant 0 : index
    %c0_41 = arith.constant 0 : index
    %97 = vector.load %arg6[%c0_39, %c0_40, %c0_41] : memref<3x384x128xbf16, #tpu.memory_space<vmem>>, vector<1x384x128xbf16>
    %98 = vector.shape_cast %97 : vector<1x384x128xbf16> to vector<384x128xbf16>
    %cst_42 = arith.constant dense<0.000000e+00> : vector<256x128xf32>
    %99 = tpu.matmul %96, %98, %cst_42 {dimension_numbers = #tpu.dot_dimension_numbers<[1], [0], [0], [1], [0, 0, 1, 1], [], []>} : vector<256x384xbf16>, vector<384x128xbf16>, vector<256x128xf32> -> vector<256x128xf32>
    %100 = arith.truncf %85 : vector<256x384xf32> to vector<256x384xbf16>
    %c1_43 = arith.constant 1 : index
    %c0_44 = arith.constant 0 : index
    %c0_45 = arith.constant 0 : index
    %101 = vector.load %arg6[%c1_43, %c0_44, %c0_45] : memref<3x384x128xbf16, #tpu.memory_space<vmem>>, vector<1x384x128xbf16>
    %102 = vector.shape_cast %101 : vector<1x384x128xbf16> to vector<384x128xbf16>
    %cst_46 = arith.constant dense<0.000000e+00> : vector<256x128xf32>
    %103 = tpu.matmul %100, %102, %cst_46 {dimension_numbers = #tpu.dot_dimension_numbers<[1], [0], [0], [1], [0, 0, 1, 1], [], []>} : vector<256x384xbf16>, vector<384x128xbf16>, vector<256x128xf32> -> vector<256x128xf32>
    %104 = arith.addf %99, %103 : vector<256x128xf32>
    %105 = arith.truncf %95 : vector<256x384xf32> to vector<256x384xbf16>
    %c2_47 = arith.constant 2 : index
    %c0_48 = arith.constant 0 : index
    %c0_49 = arith.constant 0 : index
    %106 = vector.load %arg6[%c2_47, %c0_48, %c0_49] : memref<3x384x128xbf16, #tpu.memory_space<vmem>>, vector<1x384x128xbf16>
    %107 = vector.shape_cast %106 : vector<1x384x128xbf16> to vector<384x128xbf16>
    %cst_50 = arith.constant dense<0.000000e+00> : vector<256x128xf32>
    %108 = tpu.matmul %105, %107, %cst_50 {dimension_numbers = #tpu.dot_dimension_numbers<[1], [0], [0], [1], [0, 0, 1, 1], [], []>} : vector<256x384xbf16>, vector<384x128xbf16>, vector<256x128xf32> -> vector<256x128xf32>
    %109 = arith.addf %104, %108 : vector<256x128xf32>
    %c0_51 = arith.constant 0 : index
    %c0_52 = arith.constant 0 : index
    %110 = vector.load %arg7[%c0_51, %c0_52] : memref<1x128xf32, #tpu.memory_space<vmem>>, vector<1x128xf32>
    %111 = vector.broadcast %110 : vector<1x128xf32> to vector<256x128xf32>
    %112 = arith.addf %109, %111 : vector<256x128xf32>
    %113 = arith.truncf %26 : vector<256x128xf32> to vector<256x128xbf16>
    %c0_53 = arith.constant 0 : index
    %c0_54 = arith.constant 0 : index
    %114 = vector.load %arg8[%c0_53, %c0_54] : memref<128x128xbf16, #tpu.memory_space<vmem>>, vector<128x128xbf16>
    %cst_55 = arith.constant dense<0.000000e+00> : vector<256x128xf32>
    %115 = tpu.matmul %113, %114, %cst_55 {dimension_numbers = #tpu.dot_dimension_numbers<[1], [0], [0], [1], [0, 0, 1, 1], [], []>} : vector<256x128xbf16>, vector<128x128xbf16>, vector<256x128xf32> -> vector<256x128xf32>
    %116 = arith.addf %112, %115 : vector<256x128xf32>
    %c0_56 = arith.constant 0 : index
    %c0_57 = arith.constant 0 : index
    %c0_58 = arith.constant 0 : index
    %117 = vector.load %arg9[%c0_56, %c0_57, %c0_58] : memref<1x256x128xf32, #tpu.memory_space<vmem>>, vector<1x256x128xf32>
    %118 = vector.shape_cast %117 : vector<1x256x128xf32> to vector<256x128xf32>
    %119 = vector.shape_cast %116 : vector<256x128xf32> to vector<1x256x128xf32>
    tpu.vector_store %arg9[%c0_56, %c0_57, %c0_58], %119 {strides = array<i32>} : memref<1x256x128xf32, #tpu.memory_space<vmem>>, vector<1x256x128xf32>,
    return
  }
  func.func @transform_0(%arg0: i32) -> (i32, i32, i32) {
    %c0_i32 = arith.constant 0 : i32
    %c0_i32_0 = arith.constant 0 : i32
    %c0_i32_1 = arith.constant 0 : i32
    return %arg0, %c0_i32, %c0_i32_0 : i32, i32, i32
  }
  func.func @transform_1(%arg0: i32) -> (i32, i32) {
    %c0_i32 = arith.constant 0 : i32
    %c0_i32_0 = arith.constant 0 : i32
    %c0_i32_1 = arith.constant 0 : i32
    return %c0_i32, %c0_i32_0 : i32, i32
  }
  func.func @transform_2(%arg0: i32) -> (i32, i32) {
    %c0_i32 = arith.constant 0 : i32
    %c0_i32_0 = arith.constant 0 : i32
    %c0_i32_1 = arith.constant 0 : i32
    return %c0_i32, %c0_i32_0 : i32, i32
  }
  func.func @transform_3(%arg0: i32) -> (i32, i32, i32) {
    %c0_i32 = arith.constant 0 : i32
    %c0_i32_0 = arith.constant 0 : i32
    %c0_i32_1 = arith.constant 0 : i32
    %c0_i32_2 = arith.constant 0 : i32
    return %c0_i32, %c0_i32_0, %c0_i32_1 : i32, i32, i32
  }
  func.func @transform_4(%arg0: i32) -> (i32, i32) {
    %c0_i32 = arith.constant 0 : i32
    %c0_i32_0 = arith.constant 0 : i32
    %c0_i32_1 = arith.constant 0 : i32
    return %c0_i32, %c0_i32_0 : i32, i32
  }
  func.func @transform_5(%arg0: i32) -> (i32, i32, i32) {
    %c0_i32 = arith.constant 0 : i32
    %c0_i32_0 = arith.constant 0 : i32
    %c0_i32_1 = arith.constant 0 : i32
    %c0_i32_2 = arith.constant 0 : i32
    return %c0_i32, %c0_i32_0, %c0_i32_1 : i32, i32, i32
  }
  func.func @transform_6(%arg0: i32) -> (i32, i32) {
    %c0_i32 = arith.constant 0 : i32
    %c0_i32_0 = arith.constant 0 : i32
    %c0_i32_1 = arith.constant 0 : i32
    return %c0_i32, %c0_i32_0 : i32, i32
  }
  func.func @transform_7(%arg0: i32) -> (i32, i32) {
    %c0_i32 = arith.constant 0 : i32
    %c0_i32_0 = arith.constant 0 : i32
    %c0_i32_1 = arith.constant 0 : i32
    return %c0_i32, %c0_i32_0 : i32, i32
  }
  func.func @transform_8(%arg0: i32) -> (i32, i32, i32) {
    %c0_i32 = arith.constant 0 : i32
    %c0_i32_0 = arith.constant 0 : i32
    %c0_i32_1 = arith.constant 0 : i32
    return %arg0, %c0_i32, %c0_i32_0 : i32, i32, i32
  }
}

</mosaic_0001>

<bundles_post_ra>
// kernel: tpu_custom_call.1
= control target key start
LH: loop header
LB: loop body
LE: loop exit
PB: predicated region body
PF: predicated region fallthrough
CT: control target
= control target key end

     0   :  { %s12004_s0 = inlined_call_operand.hbm [shape: f32[2,256,128], index: 0, kind: input, shape index: {}]   ;;  %s12005_s1 = inlined_call_operand.hbm [shape: f32[1,128], index: 1, kind: input, shape index: {}]   ;;  %s12006_s2 = inlined_call_operand.hbm [shape: f32[1,128], index: 2, kind: input, shape index: {}]   ;;  %s12007_s3 = inlined_call_operand.hbm [shape: bf16[3,384,128], index: 3, kind: input, shape index: {}]   ;;  %s12008_s4 = inlined_call_operand.hbm [shape: f32[1,128], index: 4, kind: input, shape index: {}]   ;;  %s12009_s5 = inlined_call_operand.hbm [shape: bf16[3,384,128], index: 5, kind: input, shape index: {}]   ;;  %s12010_s6 = inlined_call_operand.hbm [shape: f32[1,128], index: 6, kind: input, shape index: {}]   ;;  %s12011_s7 = inlined_call_operand.hbm [shape: bf16[128,128], index: 7, kind: input, shape index: {}]   ;;  %s12012_s8 = inlined_call_operand.hbm [shape: f32[2,256,128], index: 8, kind: output, shape index: {}]  }
   0x1   :  { %12238 = sst [smem:[#allocation75_spill]] %s12005_s1 }
   0x2   :  { %13 = vsyncpa [#allocation3], 0 }
   0x3   :  { %15 = vsyncpa [#allocation3 + $0x1], 0 }
   0x4   :  { %16 = vsyncpa [#allocation6], 0 }
   0x5   :  { %17 = vsyncpa [#allocation9], 0 }
   0x6   :  { %18 = vsyncpa [#allocation12], 0 }
   0x7   :  { %19 = vsyncpa [#allocation15], 0 }
   0x8   :  { %20 = vsyncpa [#allocation4], 0 }
   0x9   :  { %22 = vsyncpa [#allocation4 + $0x1], 0  ;;  %s9136_s27 = smov 0   ;;  %s9138_s28 = smov 0  }
   0xa   :  { %s9140_s29 = smov 0   ;;  %s9142_s30 = smov 0  }
   0xb LB: > { %s9074_s9 = smov [#allocation5]   ;;  %s9157_s11 = sadd.s32 4294967295, %s9072_s30   ;;  %s9072_s30 = sphi %s9142_s30, %s12755_s30   ;;  %s9068_s29 = sphi %s9140_s29, %s12754_s29   ;;  %s9064_s28 = sphi %s9138_s28, %s12753_s28   ;;  %s9060_s27 = sphi %s9136_s27, %s12752_s27  }
   0xc   : > { %s245_s10 = sshll.u32 %s9074_s9, 4  ;;  %p6142_p0 = scmp.ge.s32.totalorder %s9072_s30, 1  ;;  %s9162_s10 = int_to_ptr.vmem [resolvable:$true] %s245_s10 }
   0xd   : > { %p12013_p1 = scmp.eq.s32.totalorder %s9157_s11, 0  ;;  %p232_p2 = scmp.lt.s32.totalorder %s9072_s30, 3 }
   0xe   : > { %s9075_s13 = smov [#allocation8]   ;;  %s9076_s16 = smov [#allocation11]  }
   0xf   : > { %p9164_p3 = pnand %p6142_p0, %p232_p2  ;;  %s266_s14 = sshll.u32 %s9075_s13, 4  ;;  %s9171_s14 = int_to_ptr.vmem [resolvable:$true] %s266_s14 }
  0x10   : > { %s290_s17 = sshll.u32 %s9076_s16, 4  ;;  %s12241_s1 = sld [smem:[#allocation75_spill]]  ;;  %s9179_s17 = int_to_ptr.vmem [resolvable:$true] %s290_s17 }
  0x11   : > { %s12239_s12 = scalar_select %p9164_p3, 1, 0 }
  0x12   : > { %p8487_p5 = pneg %p9164_p3 }
  0x14   : > { %p9175_p6 = pnand %p8487_p5, %p12013_p1 }
  0x16   : > { %s8764_s20 = scalar_lea.hbm %s12241_s1, 16  ;;  %p9189_p8 = pneg %p9175_p6 }
  0x17   : > { %p8765_p7 = scmp.ne.s32.totalorder %s12241_s1, %s8764_s20  ;;  %p8771_p11 = scmp.lt.u32.totalorder %s8764_s20, %s12241_s1 }
  0x19   : > { %p8767_p9 = pnand %p9189_p8, %p8765_p7 }
  0x1b   : > { %p8768_p10 = pneg %p8767_p9 }
  0x1d   : > { %p8773_p12 = pnand %p8771_p11, %p8768_p10 }
  0x1f   : > { %8776 = shalt.err (!%p8773_p12)
}
  0x20   : > { %s8777_s26 = scalar_lea.vmem %s9162_s10, 16  ;;  %s8784_s9 = scalar_lea.vmem %s9162_s10, 32 }
  0x21   : > { %p8778_p13 = scmp.ne.s32.totalorder %s9162_s10, %s8777_s26  ;;  %p8785_p5 = scmp.lt.s32.totalorder %s9162_s10, %s9162_s10 }
  0x22   : > { %p8786_p7 = scmp.lt.s32.totalorder %s8784_s9, %s8777_s26 }
  0x23   : > { %p8780_p0 = pnand %p8778_p13, %p9189_p8 }
  0x24   : > { %p8787_p9 = por %p8786_p7, %p8785_p5 }
  0x25   : > { %p8781_p2 = pneg %p8780_p0 }
  0x27   : > { %p8788_p4 = pnand %p8787_p9, %p8781_p2 }
  0x29   : > { %8791 = shalt.err (!%p8788_p4)
}
  0x2a   : > { %8490 = dma.hbm_to_vmem [thread:$0]  (!%p9175_p6), %s12241_s1, 16, %s9162_s10, [#allocation6]  }
  0x2b   : > { %s8792_s20 = scalar_lea.hbm %s12007_s3, 9216 }
  0x2c   : > { %p8793_p10 = scmp.ne.s32.totalorder %s12007_s3, %s8792_s20  ;;  %p8799_p4 = scmp.lt.u32.totalorder %s8792_s20, %s12007_s3 }
  0x2e   : > { %p8795_p11 = pnand %p8793_p10, %p9189_p8 }
  0x30   : > { %p8796_p12 = pneg %p8795_p11 }
  0x32   : > { %p8801_p13 = pnand %p8799_p4, %p8796_p12 }
  0x34   : > { %8804 = shalt.err (!%p8801_p13)
}
  0x35   : > { %s8805_s10 = scalar_lea.vmem %s9171_s14, 9216  ;;  %p8813_p7 = scmp.lt.s32.totalorder %s9171_s14, %s9171_s14 }
  0x36   : > { %p8806_p0 = scmp.ne.s32.totalorder %s9171_s14, %s8805_s10  ;;  %p8814_p9 = scmp.lt.s32.totalorder %s8805_s10, %s8805_s10 }
  0x38   : > { %p8808_p2 = pnand %p8806_p0, %p9189_p8  ;;  %p8815_p10 = por %p8814_p9, %p8813_p7 }
  0x3a   : > { %p8809_p5 = pneg %p8808_p2 }
  0x3c   : > { %p8816_p11 = pnand %p8815_p10, %p8809_p5 }
  0x3e   : > { %8819 = shalt.err (!%p8816_p11)
}
  0x3f   : > { %s9077_s26 = smov 64   ;;  %s9078_s9 = smov 4  }
  0x40   : > { %8496 = dma.hbm_to_vmem [thread:$0]  (!%p9175_p6), %s12007_s3, 9216, %s9171_s14, [#allocation9], %s9077_s26, %s9077_s26, %s9078_s9  }
  0x41   : > { %s8820_s20 = scalar_lea.hbm %s12009_s5, 9216 }
  0x42   : > { %p8821_p12 = scmp.ne.s32.totalorder %s12009_s5, %s8820_s20  ;;  %p8827_p0 = scmp.lt.u32.totalorder %s8820_s20, %s12009_s5 }
  0x44   : > { %p8823_p4 = pnand %p8821_p12, %p9189_p8 }
  0x46   : > { %p8824_p13 = pneg %p8823_p4 }
  0x48   : > { %p8829_p2 = pnand %p8827_p0, %p8824_p13 }
  0x4a   : > { %8832 = shalt.err (!%p8829_p2)
}
  0x4b   : > { %s8833_s14 = scalar_lea.vmem %s9179_s17, 9216  ;;  %p8841_p10 = scmp.lt.s32.totalorder %s9179_s17, %s9179_s17 }
  0x4c   : > { %p8834_p5 = scmp.ne.s32.totalorder %s9179_s17, %s8833_s14  ;;  %p8842_p11 = scmp.lt.s32.totalorder %s8833_s14, %s8833_s14 }
  0x4e   : > { %p8836_p7 = pnand %p8834_p5, %p9189_p8  ;;  %p8843_p12 = por %p8842_p11, %p8841_p10 }
  0x50   : > { %p8837_p9 = pneg %p8836_p7 }
  0x52   : > { %p8844_p4 = pnand %p8843_p12, %p8837_p9 }
  0x54   : > { %8847 = shalt.err (!%p8844_p4)
}
  0x55   : > { %8502 = dma.hbm_to_vmem [thread:$0]  (!%p9175_p6), %s12009_s5, 9216, %s9179_s17, [#allocation12], %s9077_s26, %s9077_s26, %s9078_s9  }
  0x56   : > { %s9079_s16 = smov [#allocation7]   ;;  %s9080_s19 = smov [#allocation10]  }
  0x57   : > { %s256_s18 = sshll.u32 %s9079_s16, 4  ;;  %s280_s20 = sshll.u32 %s9080_s19, 4  ;;  %s257_s18 = int_to_ptr.vmem [resolvable:$true] %s256_s18  ;;  %s281_s20 = int_to_ptr.vmem [resolvable:$true] %s280_s20 }
  0x58   : > { %s8848_s24 = scalar_lea.hbm %s12006_s2, 16 }
  0x59   : > { %p8849_p13 = scmp.ne.s32.totalorder %s12006_s2, %s8848_s24  ;;  %p8855_p5 = scmp.lt.u32.totalorder %s8848_s24, %s12006_s2 }
  0x5b   : > { %p8851_p0 = pnand %p8849_p13, %p9189_p8 }
  0x5d   : > { %p8852_p2 = pneg %p8851_p0 }
  0x5f   : > { %p8857_p7 = pnand %p8855_p5, %p8852_p2 }
  0x61   : > { %8860 = shalt.err (!%p8857_p7)
}
  0x62   : > { %s8861_s17 = scalar_lea.vmem %s257_s18, 16  ;;  %s8868_s13 = scalar_lea.vmem %s257_s18, 32 }
  0x63   : > { %p8862_p9 = scmp.ne.s32.totalorder %s257_s18, %s8861_s17  ;;  %p8869_p12 = scmp.lt.s32.totalorder %s257_s18, %s257_s18 }
  0x64   : > { %p8870_p4 = scmp.lt.s32.totalorder %s8868_s13, %s8861_s17 }
  0x65   : > { %p8864_p10 = pnand %p8862_p9, %p9189_p8 }
  0x66   : > { %p8871_p1 = por %p8870_p4, %p8869_p12 }
  0x67   : > { %p8865_p11 = pneg %p8864_p10 }
  0x69   : > { %p8872_p3 = pnand %p8871_p1, %p8865_p11 }
  0x6b   : > { %8875 = shalt.err (!%p8872_p3)
}
  0x6c   : > { %8493 = dma.hbm_to_vmem [thread:$0]  (!%p9175_p6), %s12006_s2, 16, %s257_s18, [#allocation6]  }
  0x6d   : > { %s8876_s22 = scalar_lea.hbm %s12008_s4, 16 }
  0x6e   : > { %p8877_p13 = scmp.ne.s32.totalorder %s12008_s4, %s8876_s22  ;;  %p8883_p3 = scmp.lt.u32.totalorder %s8876_s22, %s12008_s4 }
  0x70   : > { %p8879_p0 = pnand %p8877_p13, %p9189_p8 }
  0x72   : > { %p8880_p1 = pneg %p8879_p0 }
  0x74   : > { %p8885_p2 = pnand %p8883_p3, %p8880_p1 }
  0x76   : > { %8888 = shalt.err (!%p8885_p2)
}
  0x77   : > { %s8889_s17 = scalar_lea.vmem %s281_s20, 16  ;;  %s8896_s18 = scalar_lea.vmem %s281_s20, 32 }
  0x78   : > { %p8890_p5 = scmp.ne.s32.totalorder %s281_s20, %s8889_s17  ;;  %p8897_p10 = scmp.lt.s32.totalorder %s281_s20, %s281_s20 }
  0x79   : > { %p8898_p11 = scmp.lt.s32.totalorder %s8896_s18, %s8889_s17 }
  0x7a   : > { %p8892_p7 = pnand %p8890_p5, %p9189_p8 }
  0x7b   : > { %p8899_p12 = por %p8898_p11, %p8897_p10 }
  0x7c   : > { %p8893_p9 = pneg %p8892_p7 }
  0x7e   : > { %p8900_p4 = pnand %p8899_p12, %p8893_p9 }
  0x80   : > { %8903 = shalt.err (!%p8900_p4)
}
  0x81   : > { %8499 = dma.hbm_to_vmem [thread:$0]  (!%p9175_p6), %s12008_s4, 16, %s281_s20, [#allocation9]  }
  0x82   : > { %s9081_s19 = smov [#allocation13]   ;;  %s9082_s21 = smov [#allocation14]  }
  0x83   : > { %s304_s1 = sshll.u32 %s9081_s19, 4  ;;  %s314_s22 = sshll.u32 %s9082_s21, 4  ;;  %s305_s1 = int_to_ptr.vmem [resolvable:$true] %s304_s1  ;;  %s315_s22 = int_to_ptr.vmem [resolvable:$true] %s314_s22 }
  0x84   : > { %s8904_s14 = scalar_lea.hbm %s12010_s6, 16 }
  0x85   : > { %p8905_p13 = scmp.ne.s32.totalorder %s12010_s6, %s8904_s14  ;;  %p8911_p3 = scmp.lt.u32.totalorder %s8904_s14, %s12010_s6 }
  0x87   : > { %p8907_p0 = pnand %p8905_p13, %p9189_p8 }
  0x89   : > { %p8908_p1 = pneg %p8907_p0 }
  0x8b   : > { %p8913_p2 = pnand %p8911_p3, %p8908_p1 }
  0x8d   : > { %8916 = shalt.err (!%p8913_p2)
}
  0x8e   : > { %s8917_s20 = scalar_lea.vmem %s305_s1, 16  ;;  %s8924_s16 = scalar_lea.vmem %s305_s1, 32 }
  0x8f   : > { %p8918_p5 = scmp.ne.s32.totalorder %s305_s1, %s8917_s20  ;;  %p8925_p10 = scmp.lt.s32.totalorder %s305_s1, %s305_s1 }
  0x90   : > { %p8926_p11 = scmp.lt.s32.totalorder %s8924_s16, %s8917_s20 }
  0x91   : > { %p8920_p7 = pnand %p8918_p5, %p9189_p8 }
  0x92   : > { %p8927_p12 = por %p8926_p11, %p8925_p10 }
  0x93   : > { %p8921_p9 = pneg %p8920_p7 }
  0x95   : > { %p8928_p4 = pnand %p8927_p12, %p8921_p9 }
  0x97   : > { %8931 = shalt.err (!%p8928_p4)
}
  0x98   : > { %8505 = dma.hbm_to_vmem [thread:$0]  (!%p9175_p6), %s12010_s6, 16, %s305_s1, [#allocation12]  }
  0x99   : > { %s8932_s14 = scalar_lea.hbm %s12011_s7, 1024 }
  0x9a   : > { %p8933_p13 = scmp.ne.s32.totalorder %s12011_s7, %s8932_s14  ;;  %p8939_p3 = scmp.lt.u32.totalorder %s8932_s14, %s12011_s7 }
  0x9c   : > { %p8935_p0 = pnand %p8933_p13, %p9189_p8 }
  0x9e   : > { %p8936_p1 = pneg %p8935_p0 }
  0xa0   : > { %p8941_p2 = pnand %p8939_p3, %p8936_p1 }
  0xa2   : > { %8944 = shalt.err (!%p8941_p2)
}
  0xa3   : > { %s8945_s20 = scalar_lea.vmem %s315_s22, 1024  ;;  %p8953_p10 = scmp.lt.s32.totalorder %s315_s22, %s315_s22 }
  0xa4   : > { %p8946_p5 = scmp.ne.s32.totalorder %s315_s22, %s8945_s20  ;;  %p8954_p11 = scmp.lt.s32.totalorder %s8945_s20, %s8945_s20 }
  0xa6   : > { %p8948_p7 = pnand %p8946_p5, %p9189_p8  ;;  %p8955_p12 = por %p8954_p11, %p8953_p10 }
  0xa8   : > { %p8949_p9 = pneg %p8948_p7 }
  0xaa   : > { %p8956_p4 = pnand %p8955_p12, %p8949_p9 }
  0xac   : > { %8959 = shalt.err (!%p8956_p4)
}
  0xad   : > { %8508 = dma.hbm_to_vmem [thread:$0]  (!%p9175_p6), %s12011_s7, 1024, %s315_s22, [#allocation15], %s9077_s26, %s9077_s26, %s9078_s9  }
  0xae   : > { %s6141_s15 = sadd.s32 4294967294, %s9072_s30   ;;  %s9340_s23 = sadd.s32 1, %s9072_s30  }
  0xaf   : > { %s35_s19 = sadd.s32 1, %s9068_s29  ;;  %s32_s21 = ssub.s32 %s9072_s30, %s9340_s23 }
  0xb0   : > { %p42_p8 = scmp.ne.s32.totalorder %s9068_s29, %s9064_s28  ;;  %p33_p13 = scmp.eq.s32.totalorder %s32_s21, 0 }
  0xb1   : > { %p43_p0 = scmp.eq.s32.totalorder %s9072_s30, 0  ;;  %p48_p1 = scmp.ne.s32.totalorder %s9064_s28, %s9060_s27 }
  0xb2   : > { %p219_p3 = scmp.eq.s32.totalorder %s9157_s11, 1  ;;  %p12243_p5 = scmp.eq.s32.totalorder %s9157_s11, 0 }
  0xb3   : > { %s9352_s24 = scalar_select %p33_p13, %s9068_s29, %s35_s19  }
  0xb4   : > { %p44_p2 = por %p43_p0, %p42_p8  ;;  %p9356_p7 = por %p12243_p5, %p48_p1 }
  0xb5   : > { %p9360_p6 = por %p219_p3, %p42_p8  ;;  %p225_p9 = scmp.eq.s32.totalorder %s6141_s15, 1 }
  0xb6   : > { %p8524_p10 = scmp.lt.s32.totalorder %s9072_s30, 2  ;;  %s328_s9 = sand.u32 1, %s9068_s29  }
  0xb7   : > { %s12245_s26 = scalar_select %p9360_p6, 1, 0 }
  0xb8   : > { %p9366_p11 = por %p225_p9, %p48_p1  ;;  %s6151_s14 = sshll.u32 %s328_s9, 8 }
  0xb9   : > { %s6877_s10 = sshll.u32 %s9072_s30, 12  ;;  %s332_s20 = scalar_lea.vmem [#allocation2], %s6151_s14 }
  0xba   : > { %s12246_s22 = scalar_select %p9366_p11, 1, 0 }
  0xbb   : > { %s9374_s13 = scalar_lea.hbm %s12004_s0, %s6877_s10  ;;  %s339_s1 = sshll.u32 %s332_s20, 4  ;;  %s9380_s1 = int_to_ptr.vmem [resolvable:$true] %s339_s1 }
  0xbc   : > { %p9376_p12 = pnand %p8524_p10, %p44_p2  ;;  %s9382_s15 = scalar_lea.sflag [#allocation3], %s328_s9 }
  0xbd   : > { %s8960_s19 = scalar_lea.hbm %s9374_s13, 4096  ;;  %s8965_s10 = scalar_lea.hbm %s12004_s0, 8192 }
  0xbe   : > { %p8961_p4 = scmp.ne.s32.totalorder %s9374_s13, %s8960_s19  ;;  %p8962_p8 = pneg %p9376_p12 }
  0xbf   : > { %p8966_p1 = scmp.lt.u32.totalorder %s9374_s13, %s12004_s0  ;;  %p8967_p3 = scmp.lt.u32.totalorder %s8965_s10, %s8960_s19 }
  0xc0   : > { %p8963_p13 = pnand %p8962_p8, %p8961_p4  ;;  %p8969_p5 = scmp.lt.u32.totalorder %s8960_s19, %s9374_s13 }
  0xc1   : > { %p8968_p2 = por %p8967_p3, %p8966_p1 }
  0xc2   : > { %p8964_p0 = pneg %p8963_p13 }
  0xc3   : > { %p8970_p9 = por %p8969_p5, %p8968_p2 }
  0xc5   : > { %p8971_p10 = pnand %p8970_p9, %p8964_p0 }
  0xc7   : > { %8974 = shalt.err (!%p8971_p10)
}
  0xc8   : > { %s8975_s9 = scalar_lea.vmem %s9380_s1, 4096  ;;  %s9083_s20 = smov [#allocation2]  }
  0xc9   : > { %p8976_p4 = scmp.ne.s32.totalorder %s9380_s1, %s8975_s9  ;;  %s8980_s21 = sshll.u32 %s9083_s20, 4  ;;  %s8981_s21 = int_to_ptr.vmem [resolvable:$false] %s8980_s21 }
  0xca   : > { %s8982_s14 = scalar_lea.vmem %s8981_s21, 8192  ;;  %p8983_p6 = scmp.lt.s32.totalorder %s9380_s1, %s8981_s21 }
  0xcb   : > { %p8978_p13 = pnand %p8976_p4, %p8962_p8  ;;  %p8984_p1 = scmp.lt.s32.totalorder %s8982_s14, %s8975_s9 }
  0xcd   : > { %p8979_p11 = pneg %p8978_p13  ;;  %p8985_p3 = por %p8984_p1, %p8983_p6 }
  0xcf   : > { %p8986_p2 = pnand %p8985_p3, %p8979_p11 }
  0xd1   : > { %8989 = shalt.err (!%p8986_p2)
}
  0xd2   : > { %s9084_s19 = smov 128   ;;  %s9085_s10 = smov 8  }
  0xd3   : > { %8512 = dma.hbm_to_vmem [thread:$0]  (!%p9376_p12), %s9374_s13, 4096, %s9380_s1, %s9382_s15, %s9084_s19, %s9084_s19, %s9085_s10  }
  0xd4   : > { %p12248_p8 = scmp.ne.s32.totalorder %s12239_s12, 0 }
  0xd6   : > { %351 = sbr.rel (%p12248_p8) target bundleno = 1405 (0x57d), region = 52 }
  0xdd   : > { %s9413_s17 = sand.u32 1, %s9064_s28  }
  0xde   : > { %s6155_s18 = sshll.u32 %s9413_s17, 8  ;;  %s354_s9 = scalar_lea.sflag [#allocation3], %s9413_s17 }
  0xdf   : > { %s9419_s20 = scalar_lea.vmem [#allocation2], %s6155_s18 }
  0xe0   : > { %9035 = dma.done.wait (%p9356_p7), %s354_s9, 4096  }
  0xe1   : > { %9037 = vsyncadd (%p9356_p7), %s354_s9, 4294963200  ;;  %p12249_p6 = scmp.eq.s32.totalorder %s9157_s11, 0 }
  0xe3   : > { %9039 = dma.done.wait (%p12249_p6), [#allocation6], 32   ;;  %p12250_p11 = pmov %p12249_p6 }
  0xe4   : > { %p12251_p12 = pmov %p12249_p6 }
  0xe5   : > { %9041 = vsyncadd (%p12250_p11), [#allocation6], 4294967264 }
  0xe6   : > { %9043 = dma.done.wait (%p12251_p12), [#allocation9], 9232   ;;  %p12252_p0 = pmov %p12249_p6 }
  0xe8   : > { %9045 = vsyncadd (%p12252_p0), [#allocation9], 4294958064  ;;  %p12253_p5 = pmov %p12252_p0 }
  0xe9   : > { %p12254_p9 = pmov %p12252_p0 }
  0xea   : > { %9047 = dma.done.wait (%p12253_p5), [#allocation12], 9232  }
  0xeb   : > { %9049 = vsyncadd (%p12254_p9), [#allocation12], 4294958064  ;;  %p12255_p7 = pmov %p12252_p0 }
  0xec   : > { %p12256_p10 = pmov %p12252_p0 }
  0xed   : > { %9051 = dma.done.wait (%p12255_p7), [#allocation15], 1024  }
  0xee   : > { %9053 = vsyncadd (%p12256_p10), [#allocation15], 4294966272  ;;  %v8580_v0 = vld [vmem:[#allocation8 + $0x100] sm:$0xff]   ;;  %v419_v1 = vlaneseq  ;;  %v8583_v4 = vld [vmem:[#allocation8 + $0x108] sm:$0xff]   ;;  %vm12018_vm7 = vmmov 1   ;;  %s11863_s12 = scalar_lea.vmem [#allocation16], %s6155_s18 }
  0xef   : > { %v8581_v2 = vld [vmem:[#allocation8 + $0x140] sm:$0xff]   ;;  %6879 = vmatprep.subr.bf16.mxu0 %v8580_v0  ;;  %v8584_v5 = vld [vmem:[#allocation8 + $0x148] sm:$0xff]   ;;  %v8586_v8 = vld [vmem:[#allocation8 + $0x110] sm:$0xff]   ;;  %s6878_s25 = sshll.u32 %s9157_s11, 12  ;;  %s6001_s13 = sshll.u32 %s11863_s12, 4  ;;  %s11957_s13 = int_to_ptr.vmem [resolvable:$true] %s6001_s13 }
  0xf0   : > { %v8582_v3 = vld [vmem:[#allocation8 + $0xc0] sm:$0xff]   ;;  %7719 = vmatprep.subr.bf16.mxu1 %v8581_v2  ;;  %v9441_v6 = vshrl.u32 %v419_v1, 7  ;;  %v8585_v7 = vld [vmem:[#allocation8 + $0xc8] sm:$0xff]   ;;  %v8587_v9 = vld [vmem:[#allocation8 + $0x150] sm:$0xff]   ;;  %s11955_s11 = scalar_lea.hbm %s12012_s8, %s6878_s25  ;;  %s5988_s15 = scalar_lea.sflag [#allocation4], %s9413_s17 }
  0xf1   : > { %6880 = vmatpush3.bf16.msra.mxu0 %v8582_v3  ;;  %7720 = vmatpush3.bf16.msra.mxu1 %v8581_v2  ;;  %v8588_v10 = vld [vmem:[#allocation8 + $0xd0] sm:$0xff]   ;;  %v8589_v12 = vld [vmem:[#allocation8 + $0x118] sm:$0xff]   ;;  %v8592_v18 = vld [vmem:[#allocation8 + $0x120] sm:$0xff]   ;;  %s8990_s21 = scalar_lea.vmem %s11957_s13, 4096  ;;  %p12749_p13 = scmp.ne.s32.totalorder %s12245_s26, 0 }
  0xf2   : > { %6881 = vmatprep.subr.bf16.mxu0 %v8583_v4  ;;  %7721 = vmatprep.subr.bf16.mxu1 %v8584_v5  ;;  %v421_v11 = vadd.s32 8, %v9441_v6  ;;  %v456_v13 = vand.u32 15, %v9441_v6  ;;  %v8590_v14 = vld [vmem:[#allocation8 + $0x158] sm:$0xff]   ;;  %v423_v15 = vadd.s32 24, %v9441_v6  ;;  %v9447_v17 = vadd.s32 40, %v9441_v6  ;;  %v8593_v20 = vld [vmem:[#allocation8 + $0x160] sm:$0xff]   ;;  %p8991_p4 = scmp.ne.s32.totalorder %s11957_s13, %s8990_s21 }
  0xf3   : > { %v8591_v16 = vld [vmem:[#allocation8 + $0xd8] sm:$0xff]   ;;  %v9450_v19 = vadd.s32 16, %v9441_v6  ;;  %v9453_v21 = vadd.s32 56, %v9441_v6  ;;  %v9456_v23 = vadd.s32 72, %v9441_v6  ;;  %v8594_v24 = vld [vmem:[#allocation8 + $0xe0] sm:$0xff]   ;;  %v9459_v25 = vadd.s32 32, %v9441_v6 }
  0xf4   : > { %v463_v22 = vand.u32 15, %v421_v11  ;;  %v8595_v26 = vld [vmem:[#allocation8 + $0x128] sm:$0xff]   ;;  %v477_v27 = vand.u32 15, %v423_v15  ;;  %v491_v29 = vand.u32 15, %v9447_v17  ;;  %v9465_v33 = vadd.s32 88, %v9441_v6  ;;  %v8598_v34 = vld [vmem:[#allocation8 + $0x130] sm:$0xff]   ;;  %p8992_p1 = pnand %p8991_p4, %p12749_p13 }
  0xf5   : > { %6882 = vmatpush3.bf16.msra.mxu0 %v8585_v7  ;;  %7722 = vmatpush3.bf16.msra.mxu1 %v8584_v5  ;;  %v8596_v28 = vld [vmem:[#allocation8 + $0x168] sm:$0xff]   ;;  %v470_v30 = vand.u32 15, %v9450_v19  ;;  %v505_v31 = vand.u32 15, %v9453_v21  ;;  %v9468_v35 = vadd.s32 104, %v9441_v6  ;;  %v8599_v36 = vld [vmem:[#allocation8 + $0x170] sm:$0xff]   ;;  %v9471_v37 = vadd.s32 48, %v9441_v6 }
  0xf6   : > { %6883 = vmatprep.subr.bf16.mxu0 %v8586_v8  ;;  %7723 = vmatprep.subr.bf16.mxu1 %v8587_v9  ;;  %v8597_v32 = vld [vmem:[#allocation8 + $0xe8] sm:$0xff]   ;;  %v8600_v38 = vld [vmem:[#allocation8 + $0xf0] sm:$0xff]   ;;  %vm12020_vm0 = vcmp.lt.s32.totalorder %v9441_v6, 1  ;;  %v9475_v39 = vadd.s32 120, %v9441_v6  ;;  %v8601_v40 = vld [vmem:[#allocation8 + $0x138] sm:$0xff]   ;;  %vm9477_vm1 = vcmp.ne.s32.totalorder %v463_v22, 15  ;;  %p8993_p3 = pneg %p8992_p1 }
  0xf7   : > { %vm12016_vm2 = vcmp.lt.s32.totalorder %v9441_v6, 7  ;;  %v519_v42 = vand.u32 15, %v9456_v23  ;;  %v964_v43 = vld [vmem:[%s9419_s20] sm:$0xff]  ;;  %v965_v44 = vld [vmem:[%s9419_s20 + $0x8] sm:$0xff]  ;;  %v484_v46 = vand.u32 15, %v9459_v25  ;;  %v9489_v47 = vadd.s32 136, %v9441_v6  ;;  %vm9576_vm8 = vmpackc.low %vm9477_vm1, %vm12018_vm7 }
  0xf8   : > { %v9485_v45 = vld [vmem:[#allocation5] ss:$0 sm:$0xff]  ;;  %v9493_v51 = vld [vmem:[#allocation7] ss:$0 sm:$0xff]  ;;  %v966_v52 = vld [vmem:[%s9419_s20 + $0x10] sm:$0xff]  ;;  %vm9496_vm3 = vcmp.ne.s32.totalorder %v456_v13, 0 }
  0xf9   : > { %6884 = vmatpush3.bf16.msra.mxu0 %v8588_v10  ;;  %7724 = vmatpush3.bf16.msra.mxu1 %v8587_v9  ;;  %v8602_v48 = vld [vmem:[#allocation8 + $0x178] sm:$0xff]   ;;  %v1003_v49 = vmul.f32 %v9485_v45, %v964_v43  ;;  %v1004_v50 = vmul.f32 %v9485_v45, %v965_v44  ;;  %v533_v54 = vand.u32 15, %v9465_v33  ;;  %v547_v55 = vand.u32 15, %v9468_v35  ;;  %v970_v22 = vld [vmem:[%s9419_s20 + $0x30] sm:$0xff]  ;;  %vm9597_vm9 = vmpackc.low %vm12018_vm7, %vm9496_vm3  ;;  %s9088_s14 = smov [#allocation16]  }
  0xfa   : > { %6885 = vmatprep.subr.bf16.mxu0 %v8589_v12  ;;  %7725 = vmatprep.subr.bf16.mxu1 %v8590_v14  ;;  %v1005_v56 = vmul.f32 %v9485_v45, %v966_v52  ;;  %v995_v57 = vld [vmem:[%s9419_s20 + $0xf8] sm:$0xff]  ;;  %vm9504_vm4 = vcmp.ne.s32.totalorder %v477_v27, 15  ;;  %v498_v60 = vand.u32 15, %v9471_v37  ;;  %v561_v61 = vand.u32 15, %v9475_v39  ;;  %v968_v3 = vld [vmem:[%s9419_s20 + $0x20] sm:$0xff]  ;;  %s8994_s19 = sshll.u32 %s9088_s14, 4  ;;  %s8995_s19 = int_to_ptr.vmem [resolvable:$false] %s8994_s19 }
  0xfb   : > { %v967_v59 = vld [vmem:[%s9419_s20 + $0x18] sm:$0xff]  ;;  %v9512_v62 = vadd.s32 64, %v9441_v6  ;;  %v1042_v0 = vadd.f32 %v9493_v51, %v1003_v49  ;;  %v1043_v1 = vadd.f32 %v9493_v51, %v1004_v50  ;;  %v1034_v2 = vmul.f32 %v9485_v45, %v995_v57  ;;  %v972_v53 = vld [vmem:[%s9419_s20 + $0x40] sm:$0xff]  ;;  %vm9622_vm11 = vmpackc.low %vm9504_vm4, %vm12018_vm7  ;;  %s8996_s10 = scalar_lea.vmem %s8995_s19, 8192  ;;  %p8997_p2 = scmp.lt.s32.totalorder %s11957_s13, %s8995_s19 }
  0xfc   : > { %v8603_v63 = vld [vmem:[#allocation8 + $0xf8] sm:$0xff]   ;;  %v1006_v4 = vmul.f32 %v9485_v45, %v967_v59  ;;  %v1044_v5 = vadd.f32 %v9493_v51, %v1005_v56  ;;  %v1007_v7 = vmul.f32 %v9485_v45, %v968_v3  ;;  %v575_v8 = vand.u32 15, %v9489_v47  ;;  %p8998_p8 = scmp.lt.s32.totalorder %s8996_s10, %s8990_s21 }
  0xfd   : > { %6886 = vmatpush3.bf16.msra.mxu0 %v8591_v16  ;;  %7726 = vmatpush3.bf16.msra.mxu1 %v8590_v14  ;;  %v9523_v9 = vadd.s32 152, %v9441_v6  ;;  %v9525_v10 = vmax.f32 %v1042_v0, 0.0  ;;  %v9527_v11 = vmax.f32 %v1043_v1, 0.0  ;;  %v1073_v12 = vadd.f32 %v9493_v51, %v1034_v2  ;;  %v969_v14 = vld [vmem:[%s9419_s20 + $0x28] sm:$0xff]  ;;  %v971_v41 = vld [vmem:[%s9419_s20 + $0x38] sm:$0xff] }
  0xfe   : > { %6887 = vmatprep.subr.bf16.mxu0 %v8592_v18  ;;  %7727 = vmatprep.subr.bf16.mxu1 %v8593_v20  ;;  %v1045_v13 = vadd.f32 %v9493_v51, %v1006_v4  ;;  %v1076_v15 = vmax.f32 %v1044_v5, 0.0  ;;  %v1046_v16 = vadd.f32 %v9493_v51, %v1007_v7  ;;  %v8604_v18 = vld [vmem:[#allocation8 + $0x40] sm:$0xff]   ;;  %vm9535_vm5 = vcmp.ne.s32.totalorder %v491_v29, 15  ;;  %p8999_p6 = por %p8998_p8, %p8997_p2 }
  0xff   : > { %v1106_v27 = vrot.slane %v9525_v10, 7  ;;  %v1268_v17 = vrot.slane %v9527_v11, 1  ;;  %vm9556_vm6 = vcmp.ne.s32.totalorder %v470_v30, 0  ;;  %v12267_v50 = vmov 0  ;;  %vm9683_vm15 = vmpackc.low %vm9535_vm5, %vm12018_vm7 }
 0x100   : > { %v1269_v29 = vrot.slane %v1076_v15, 1  ;;  %v9563_v44 = vmax.f32 %v1046_v16, 0.0  ;;  %v12268_v50 = vsel %vm9576_vm8, 4294967295, %v12267_v50  ;;  %v12271_v2 = vmov 0  ;;  %v8605_v16 = vld [vmem:[#allocation8] sm:$0xff]   ;;  %vm9707_vm3 = vmpackc.low %vm12018_vm7, %vm9556_vm6  ;;  %p9000_p11 = pnand %p8999_p6, %p8993_p3 }
 0x101   : > { %6888 = vmatpush3.bf16.msra.mxu0 %v8594_v24  ;;  %7728 = vmatpush3.bf16.msra.mxu1 %v8593_v20  ;;  %v1008_v24 = vmul.f32 %v9485_v45, %v969_v14  ;;  %12269 = vst [vmem:[#allocation23_spill] sm:$0xff] %v12268_v50  ;;  %v12272_v2 = vsel %vm9597_vm9, 4294967295, %v12271_v2  ;;  %v1108_v5 = vrot.slane %v1076_v15, 7  ;;  %vm9607_vm10 = vcmp.ne.s32.totalorder %v505_v31, 15 }
 0x102   : > { %6889 = vmatprep.subr.bf16.mxu0 %v8595_v26  ;;  %7729 = vmatprep.subr.bf16.mxu1 %v8596_v28  ;;  %v512_v26 = vand.u32 15, %v9512_v62  ;;  %v1329_v19 = vsel %vm12016_vm2, %v1268_v17, %v1269_v29  ;;  %v1271_v59 = vrot.slane %v9563_v44, 1  ;;  %12273 = vst [vmem:[#allocation25_spill] sm:$0xff] %v12272_v2  ;;  %vm9631_vm12 = vcmp.ne.s32.totalorder %v519_v42, 15  ;;  %vm9757_vm5 = vmpackc.low %vm9607_vm10, %vm12018_vm7 }
 0x103   : > { %v1047_v49 = vadd.f32 %v9493_v51, %v1008_v24  ;;  %v1010_v58 = vmul.f32 %v9485_v45, %v971_v41  ;;  %v974_v24 = vld [vmem:[%s9419_s20 + $0x50] sm:$0xff]  ;;  %vm9655_vm13 = vcmp.ne.s32.totalorder %v484_v46, 0  ;;  %v1110_v25 = vrot.slane %v9563_v44, 7  ;;  %vm9770_vm6 = vmpackc.low %vm9631_vm12, %vm12018_vm7 }
 0x104   : > { %vm9672_vm14 = vcmp.ne.s32.totalorder %v533_v54, 15  ;;  %v1013_v54 = vmul.f32 %v9485_v45, %v974_v24  ;;  %vm9700_vm1 = vcmp.ne.s32.totalorder %v547_v55, 15  ;;  %v977_v55 = vld [vmem:[%s9419_s20 + $0x68] sm:$0xff]  ;;  %vm9740_vm4 = vcmp.ne.s32.totalorder %v498_v60, 0  ;;  %vm9795_vm10 = vmpackc.low %vm12018_vm7, %vm9655_vm13 }
 0x105   : > { %6890 = vmatpush3.bf16.msra.mxu0 %v8597_v32  ;;  %7730 = vmatpush3.bf16.msra.mxu1 %v8596_v28  ;;  %v1107_v28 = vrot.slane %v9527_v11, 7  ;;  %v9546_v32 = vpack.c.bf16 %v9527_v11, %v9525_v10  ;;  %v9603_v4 = vmax.f32 %v1047_v49, 0.0  ;;  %v12297_v60 = vmov 0  ;;  %vm9809_vm12 = vmpackc.low %vm9672_vm14, %vm12018_vm7 }
 0x106   : > { %6891 = vmatprep.subr.bf16.mxu0 %v8598_v34  ;;  %7731 = vmatprep.subr.bf16.mxu1 %v8599_v36  ;;  %v12025_v34 = vrot.slane %v9525_v10, 1  ;;  %v12298_v60 = vsel %vm9757_vm5, 4294967295, %v12297_v60  ;;  %v12299_v7 = vmov 0  ;;  %vm9818_vm13 = vcmp.ne.s32.totalorder %v561_v61, 15  ;;  %vm9837_vm14 = vmpackc.low %vm9700_vm1, %vm12018_vm7 }
 0x107   : > { %2117 = vmatprep.mubr.bf16.mxu0 %v9546_v32  ;;  %v1169_v43 = vsel %vm12020_vm0, %v1106_v27, %v1107_v28  ;;  %v9667_v49 = vpack.c.bf16 %v9603_v4, %v9563_v44  ;;  %v1111_v20 = vrot.slane %v9603_v4, 7  ;;  %v12300_v7 = vsel %vm9770_vm6, 4294967295, %v12299_v7 }
 0x108   : > { %v1330_v30 = vsel %vm12016_vm2, %v12025_v34, %v1268_v17  ;;  %v1168_v17 = vsel %vm12020_vm0, %v1107_v28, %v1108_v5  ;;  %v1049_v28 = vadd.f32 %v9493_v51, %v1010_v58  ;;  %v1052_v58 = vadd.f32 %v9493_v51, %v1013_v54  ;;  %12301 = vst [vmem:[#allocation31_spill] sm:$0xff] %v12300_v7 }
 0x109   : > { %6892 = vmatpush3.bf16.msra.mxu0 %v8600_v38  ;;  %7732 = vmatpush3.bf16.msra.mxu1 %v8599_v36  ;;  %v9550_v36 = vmax.f32 %v1073_v12, 0.0  ;;  %v9552_v38 = vmax.f32 %v1045_v13, 0.0  ;;  %v9582_v57 = vpack.c.bf16 %v1329_v19, %v1330_v30  ;;  %v12277_v13 = vmov 0  ;;  %12283 = vst [vmem:[#allocation27_spill] sm:$0xff] %v9667_v49  ;;  %v975_v19 = vld [vmem:[%s9419_s20 + $0x58] sm:$0xff] }
 0x10a   : > { %6893 = vmatprep.subr.bf16.mxu0 %v8601_v40  ;;  %7733 = vmatprep.subr.bf16.mxu1 %v8602_v48  ;;  %v12278_v13 = vsel %vm9622_vm11, 4294967295, %v12277_v13  ;;  %v1014_v35 = vmul.f32 %v9485_v45, %v975_v19  ;;  %vm12316_vm1 = vcmp.lt.s32.totalorder %v9441_v6, 7 }
 0x10b   : > { %v12017_v52 = vrot.slane %v9550_v36, 7  ;;  %v1270_v56 = vrot.slane %v9552_v38, 1  ;;  %7735 = vmatprep.mubr.msk.bf16.mxu1 %vm9576_vm8, %v9582_v57  ;;  %v1109_v31 = vrot.slane %v9552_v38, 7  ;;  %vm12317_vm7 = vmmov %vm12316_vm1 }
 0x10d   : > { %6894 = vmatpush3.bf16.msra.mxu0 %v8603_v63  ;;  %7734 = vmatpush3.bf16.msra.mxu1 %v8602_v48  ;;  %v1009_v48 = vmul.f32 %v9485_v45, %v970_v22  ;;  %v9586_v63 = vpack.c.bf16 %v9552_v38, %v1076_v15  ;;  %v1170_v1 = vsel %vm12020_vm0, %v12017_v52, %v1106_v27  ;;  %v973_v22 = vld [vmem:[%s9419_s20 + $0x48] sm:$0xff]  ;;  %v9642_v27 = vadd.s32 168, %v9441_v6 }
 0x10e   : > { %7015 = vmatprep.subr.bf16.mxu0 %v8604_v18  ;;  %8055 = vmatprep.subr.bf16.mxu1 %v8604_v18  ;;  %v1328_v3 = vsel %vm12016_vm2, %v1269_v29, %v1270_v56  ;;  %v9615_v11 = vpack.c.bf16 %v1169_v43, %v1170_v1  ;;  %v1327_v12 = vsel %vm12016_vm2, %v1270_v56, %v1271_v59  ;;  %v1272_v18 = vrot.slane %v9603_v4, 1  ;;  %v8606_v43 = vld [vmem:[#allocation8 + $0x48] sm:$0xff]  }
 0x10f   : > { %12270 = vst [vmem:[#allocation24_spill] sm:$0xff] %v9586_v63  ;;  %v1048_v0 = vadd.f32 %v9493_v51, %v1009_v48  ;;  %v9635_v15 = vpack.c.bf16 %v1327_v12, %v1328_v3  ;;  %v1167_v42 = vsel %vm12020_vm0, %v1108_v5, %v1109_v31  ;;  %v1011_v29 = vmul.f32 %v9485_v45, %v972_v53  ;;  %v8607_v3 = vld [vmem:[#allocation8 + $0x8] sm:$0xff]  }
 0x110   : > { %12276 = vst [vmem:[#allocation26_spill] sm:$0xff] %v9615_v11  ;;  %6192 = vmatmul.mubr.msk.bf16.vlgmr.msra.gmra.mrb[0].mxu0 %vm9597_vm9, %v9615_v11  ;;  %v1326_v48 = vsel %vm12016_vm2, %v1271_v59, %v1272_v18  ;;  %v12286_v56 = vmov 0  ;;  %v1012_v33 = vmul.f32 %v9485_v45, %v973_v22  ;;  %v976_v59 = vld [vmem:[%s9419_s20 + $0x60] sm:$0xff]  ;;  %v9693_v41 = vpack.c.bf16 %v1167_v42, %v1168_v17  ;;  %v8608_v22 = vld [vmem:[#allocation8 + $0x50] sm:$0xff]  }
 0x111   : > { %v9626_v21 = vmax.f32 %v1048_v0, 0.0  ;;  %7736 = vmatmul.mubr.msk.bf16.vlgmr.msra.gmra.mrb[0].mxu1 %vm9622_vm11, %v9635_v15  ;;  %7016 = vmatpush3.bf16.msra.mxu0 %v8605_v16  ;;  %v12287_v56 = vsel %vm9683_vm15, 4294967295, %v12286_v56  ;;  %v1050_v44 = vadd.f32 %v9493_v51, %v1011_v29  ;;  %v9695_v1 = vmax.f32 %v1049_v28, 0.0  ;;  %v978_v17 = vld [vmem:[%s9419_s20 + $0x70] sm:$0xff] }
 0x112   : > { %2125 = vmatprep.mubr.bf16.mxu0 %v9586_v63  ;;  %12288 = vst [vmem:[#allocation28_spill] sm:$0xff] %v9693_v41  ;;  %7017 = vmatprep.subr.bf16.mxu0 %v8606_v43  ;;  %v12291_v53 = vmov 0  ;;  %v1166_v24 = vsel %vm12020_vm0, %v1109_v31, %v1110_v25  ;;  %v1015_v42 = vmul.f32 %v9485_v45, %v976_v59  ;;  %v12306_v38 = vmov 0 }
 0x113   : > { %v1273_v23 = vrot.slane %v9626_v21, 1  ;;  %8063 = vmatpush3.bf16.msra.mxu1 %v8605_v16  ;;  %v12292_v53 = vsel %vm9707_vm3, 4294967295, %v12291_v53  ;;  %v9711_v12 = vmax.f32 %v1050_v44, 0.0  ;;  %v1274_v40 = vrot.slane %v9695_v1, 1 }
 0x114   : > { %12293 = vst [vmem:[#allocation29_spill] sm:$0xff] %v12292_v53  ;;  %8056 = vmatprep.subr.bf16.mxu1 %v8606_v43  ;;  %v1165_v16 = vsel %vm12020_vm0, %v1110_v25, %v1111_v20  ;;  %v9736_v28 = vpack.c.bf16 %v9695_v1, %v9626_v21  ;;  %v1053_v25 = vadd.f32 %v9493_v51, %v1014_v35  ;;  %v12307_v38 = vsel %vm9809_vm12, 4294967295, %v12306_v38 }
 0x115   : > { %v1325_v30 = vsel %vm12016_vm2, %v1272_v18, %v1273_v23  ;;  %v1051_v18 = vadd.f32 %v9493_v51, %v1012_v33  ;;  %7018 = vmatpush3.bf16.msra.mxu0 %v8607_v3  ;;  %v1275_v29 = vrot.slane %v9711_v12, 1  ;;  %v1324_v31 = vsel %vm12016_vm2, %v1273_v23, %v1274_v40  ;;  %v8609_v33 = vld [vmem:[#allocation8 + $0x10] sm:$0xff]   ;;  %12308 = vst [vmem:[#allocation34_spill] sm:$0xff] %v12307_v38 }
 0x116   : > { %v9691_v0 = vpack.c.bf16 %v1325_v30, %v1326_v48  ;;  %v9732_v48 = vmax.f32 %v1052_v58, 0.0  ;;  %12294 = vst [vmem:[#allocation30_spill] sm:$0xff] %v9736_v28  ;;  %7019 = vmatprep.subr.bf16.mxu0 %v8608_v22  ;;  %v1054_v30 = vadd.f32 %v9493_v51, %v1015_v42  ;;  %v1016_v44 = vmul.f32 %v9485_v45, %v977_v55 }
 0x117   : > { %v9730_v43 = vmax.f32 %v1051_v18, 0.0  ;;  %8064 = vmatpush3.bf16.msra.mxu1 %v8607_v3  ;;  %v1323_v37 = vsel %vm12016_vm2, %v1274_v40, %v1275_v29  ;;  %v1017_v59 = vmul.f32 %v9485_v45, %v978_v17  ;;  %v8610_v3 = vld [vmem:[#allocation8 + $0x58] sm:$0xff]   ;;  %v9774_v58 = vmax.f32 %v1053_v25, 0.0 }
 0x118   : > { %7739 = vmatprep.mubr.msk.bf16.mxu1 %vm9683_vm15, %v9691_v0  ;;  %6195 = vmatmul.mubr.msk.bf16.gmra.mrb[4].mxu0 %vm9707_vm3, %v9693_v41  ;;  %v1277_v54 = vrot.slane %v9732_v48, 1  ;;  %v9764_v18 = vpack.c.bf16 %v1323_v37, %v1324_v31  ;;  %v9776_v35 = vmax.f32 %v1054_v30, 0.0  ;;  %v1055_v55 = vadd.f32 %v9493_v51, %v1016_v44  ;;  %v980_v31 = vld [vmem:[%s9419_s20 + $0x80] sm:$0xff]  ;;  %v981_v37 = vld [vmem:[%s9419_s20 + $0x88] sm:$0xff] }
 0x119   : > { %v1276_v23 = vrot.slane %v9730_v43, 1  ;;  %8057 = vmatprep.subr.bf16.mxu1 %v8608_v22  ;;  %2133 = vmatprep.mubr.bf16.mxu0 %v9667_v49  ;;  %v979_v22 = vld [vmem:[%s9419_s20 + $0x78] sm:$0xff]  ;;  %v1056_v14 = vadd.f32 %v9493_v51, %v1017_v59  ;;  %v1112_v17 = vrot.slane %v9626_v21, 7  ;;  %v12302_v30 = vmov 0  ;;  %v8628_v49 = vld [vmem:[#allocation8 + $0x1c0] sm:$0xff]  }
 0x11a   : > { %7020 = vmatpush3.bf16.msra.mxu0 %v8609_v33  ;;  %7740 = vmatmul.mubr.msk.bf16.gmra.mrb[4].mxu1 %vm9757_vm5, %v9764_v18  ;;  %v12303_v30 = vsel %vm9795_vm10, 4294967295, %v12302_v30  ;;  %v1279_v44 = vrot.slane %v9776_v35, 1  ;;  %v9801_v21 = vmax.f32 %v1055_v55, 0.0  ;;  %v9804_v59 = vpack.c.bf16 %v1165_v16, %v1166_v24 }
 0x11b   : > { %v1321_v40 = vsel %vm12016_vm2, %v1276_v23, %v1277_v54  ;;  %v1322_v42 = vsel %vm12016_vm2, %v1275_v29, %v1276_v23  ;;  %7021 = vmatprep.subr.bf16.mxu0 %v8610_v3  ;;  %12304 = vst [vmem:[#allocation32_spill] sm:$0xff] %v12303_v30  ;;  %v1278_v29 = vrot.slane %v9774_v58, 1  ;;  %v8611_v23 = vld [vmem:[#allocation8 + $0x18] sm:$0xff]   ;;  %v1018_v16 = vmul.f32 %v9485_v45, %v979_v22 }
 0x11c   : > { %v9790_v25 = vpack.c.bf16 %v1321_v40, %v1322_v42  ;;  %12305 = vst [vmem:[#allocation33_spill] sm:$0xff] %v9804_v59  ;;  %v9813_v40 = vmax.f32 %v1056_v14, 0.0  ;;  %v1113_v42 = vrot.slane %v9695_v1, 7  ;;  %8065 = vmatpush3.bf16.msra.mxu1 %v8609_v33  ;;  %v1280_v39 = vrot.slane %v9801_v21, 1  ;;  %v982_v1 = vld [vmem:[%s9419_s20 + $0x90] sm:$0xff]  ;;  %v8612_v14 = vld [vmem:[#allocation8 + $0x60] sm:$0xff]  }
 0x11d   : > { %v1319_v46 = vsel %vm12016_vm2, %v1278_v29, %v1279_v44  ;;  %v1320_v24 = vsel %vm12016_vm2, %v1277_v54, %v1278_v29  ;;  %v1019_v61 = vmul.f32 %v9485_v45, %v980_v31  ;;  %8058 = vmatprep.subr.bf16.mxu1 %v8610_v3  ;;  %v12311_v22 = vmov 0 }
 0x11e   : > { %7743 = vmatprep.mubr.msk.bf16.mxu1 %vm9770_vm6, %v9790_v25  ;;  %v1281_v33 = vrot.slane %v9813_v40, 1  ;;  %v12312_v22 = vsel %vm9837_vm14, 4294967295, %v12311_v22  ;;  %v1164_v54 = vsel %vm12020_vm0, %v1111_v20, %v1112_v17  ;;  %v1057_v29 = vadd.f32 %v9493_v51, %v1018_v16  ;;  %7022 = vmatpush3.bf16.msra.mxu0 %v8611_v23  ;;  %v983_v20 = vld [vmem:[%s9419_s20 + $0x98] sm:$0xff] }
 0x11f   : > { %12313 = vst [vmem:[#allocation35_spill] sm:$0xff] %v12312_v22  ;;  %vm9848_vm2 = vcmp.ne.s32.totalorder %v575_v8, 15  ;;  %v9852_v31 = vpack.c.bf16 %v1319_v46, %v1320_v24  ;;  %v1318_v5 = vsel %vm12316_vm1, %v1279_v44, %v1280_v39  ;;  %v1163_v4 = vsel %vm12020_vm0, %v1112_v17, %v1113_v42  ;;  %7023 = vmatprep.subr.bf16.mxu0 %v8612_v14  ;;  %v8613_v46 = vld [vmem:[#allocation8 + $0x20] sm:$0xff]  }
 0x120   : > { %v1058_v52 = vadd.f32 %v9493_v51, %v1019_v61  ;;  %6198 = vmatmul.mubr.msk.bf16.gmra.mrb[8].mxu0 %vm9795_vm10, %v9804_v59  ;;  %v1317_v47 = vsel %vm12317_vm7, %v1280_v39, %v1281_v33  ;;  %v9865_v8 = vmax.f32 %v1057_v29, 0.0  ;;  %v1020_v16 = vmul.f32 %v9485_v45, %v981_v37  ;;  %8066 = vmatpush3.bf16.msra.mxu1 %v8611_v23  ;;  %v8614_v23 = vld [vmem:[#allocation8 + $0x68] sm:$0xff]   ;;  %v8616_v59 = vld [vmem:[#allocation8 + $0x70] sm:$0xff]  }
 0x121   : > { %v1021_v44 = vmul.f32 %v9485_v45, %v982_v1  ;;  %vm9871_vm1 = vcmp.ne.s32.totalorder %v512_v26, 0  ;;  %2141 = vmatprep.mubr.bf16.mxu0 %v9736_v28  ;;  %v9876_v24 = vpack.c.bf16 %v1317_v47, %v1318_v5  ;;  %vm12320_vm7 = vmmov 1   ;;  %8059 = vmatprep.subr.bf16.mxu1 %v8612_v14  ;;  %v984_v5 = vld [vmem:[%s9419_s20 + $0xa0] sm:$0xff]  ;;  %v985_v47 = vld [vmem:[%s9419_s20 + $0xa8] sm:$0xff] }
 0x122   : > { %vm9881_vm0 = vmpackc.low %vm12320_vm7, %vm9740_vm4  ;;  %v12321_v37 = vmov 0  ;;  %v9885_v39 = vmax.f32 %v1058_v52, 0.0  ;;  %v1114_v62 = vrot.slane %v9711_v12, 7  ;;  %v12026_v26 = vrot.slane %v9730_v43, 7  ;;  %7024 = vmatpush3.bf16.msra.mxu0 %v8613_v46  ;;  %7744 = vmatmul.mubr.msk.bf16.gmra.mrb[8].mxu1 %vm9809_vm12, %v9852_v31 }
 0x123   : > { %v12322_v37 = vsel %vm9881_vm0, 4294967295, %v12321_v37  ;;  %v9889_v61 = vpack.c.bf16 %v1163_v4, %v1164_v54  ;;  %v1282_v1 = vrot.slane %v9865_v8, 1  ;;  %v1059_v19 = vadd.f32 %v9493_v51, %v1020_v16  ;;  %7025 = vmatprep.subr.bf16.mxu0 %v8614_v23  ;;  %7747 = vmatprep.mubr.msk.bf16.mxu1 %vm9837_vm14, %v9876_v24 }
 0x124   : > { %12323 = vst [vmem:[#allocation36_spill] sm:$0xff] %v12322_v37  ;;  %v1060_v29 = vadd.f32 %v9493_v51, %v1021_v44  ;;  %v1283_v52 = vrot.slane %v9885_v39, 1  ;;  %vm12325_vm4 = vcmp.lt.s32.totalorder %v9441_v6, 1  ;;  %v1022_v4 = vmul.f32 %v9485_v45, %v983_v20  ;;  %8067 = vmatpush3.bf16.msra.mxu1 %v8613_v46  ;;  %v8615_v20 = vld [vmem:[#allocation8 + $0x28] sm:$0xff]   ;;  %v987_v37 = vld [vmem:[%s9419_s20 + $0xb8] sm:$0xff] }
 0x125   : > { %12324 = vst [vmem:[#allocation37_spill] sm:$0xff] %v9889_v61  ;;  %v1161_v14 = vsel %vm12325_vm4, %v1114_v62, %v12026_v26  ;;  %vm12326_vm10 = vmmov %vm12325_vm4  ;;  %vm12327_vm3 = vcmp.lt.s32.totalorder %v9441_v6, 7  ;;  %v9914_v44 = vpack.c.bf16 %v9730_v43, %v9711_v12  ;;  %v9916_v34 = vmax.f32 %v1059_v19, 0.0  ;;  %8060 = vmatprep.subr.bf16.mxu1 %v8614_v23 }
 0x126   : > { %v1162_v54 = vsel %vm12326_vm10, %v1113_v42, %v1114_v62  ;;  %v1316_v16 = vsel %vm12327_vm3, %v1281_v33, %v1282_v1  ;;  %v9918_v26 = vmax.f32 %v1060_v29, 0.0  ;;  %v986_v42 = vld [vmem:[%s9419_s20 + $0xb0] sm:$0xff]  ;;  %vm12329_vm10 = vmmov %vm12327_vm3  ;;  %v589_v28 = vand.u32 15, %v9523_v9  ;;  %7026 = vmatpush3.bf16.msra.mxu0 %v8615_v20 }
 0x127   : > { %12328 = vst [vmem:[#allocation38_spill] sm:$0xff] %v9914_v44  ;;  %v1315_v62 = vsel %vm12329_vm10, %v1282_v1, %v1283_v52  ;;  %v1023_v30 = vmul.f32 %v9485_v45, %v984_v5  ;;  %v1061_v33 = vadd.f32 %v9493_v51, %v1022_v4  ;;  %v1284_v12 = vrot.slane %v9916_v34, 1  ;;  %vm9933_vm3 = vmpackc.low %vm9818_vm13, %vm12320_vm7  ;;  %7027 = vmatprep.subr.bf16.mxu0 %v8616_v59  ;;  %v8617_v4 = vld [vmem:[#allocation8 + $0x30] sm:$0xff]  }
 0x128   : > { %v1285_v19 = vrot.slane %v9918_v26, 1  ;;  %v9928_v29 = vpack.c.bf16 %v1161_v14, %v1162_v54  ;;  %v12331_v46 = vmov 0  ;;  %v9937_v9 = vpack.c.bf16 %v1315_v62, %v1316_v16  ;;  %6201 = vmatmul.mubr.msk.bf16.gmra.mrb[12].mxu0 %vm9881_vm0, %v9889_v61  ;;  %vm12334_vm4 = vmmov %vm12329_vm10  ;;  %8068 = vmatpush3.bf16.msra.mxu1 %v8615_v20  ;;  %v8618_v20 = vld [vmem:[#allocation8 + $0x78] sm:$0xff]  }
 0x129   : > { %v12332_v46 = vsel %vm9933_vm3, 4294967295, %v12331_v46  ;;  %v1062_v1 = vadd.f32 %v9493_v51, %v1023_v30  ;;  %v9940_v23 = vmax.f32 %v1061_v33, 0.0  ;;  %v1024_v5 = vmul.f32 %v9485_v45, %v985_v47  ;;  %vm12335_vm13 = vmmov %vm12334_vm4  ;;  %2149 = vmatprep.mubr.bf16.mxu0 %v9914_v44  ;;  %8061 = vmatprep.subr.bf16.mxu1 %v8616_v59  ;;  %v988_v61 = vld [vmem:[%s9419_s20 + $0xc0] sm:$0xff] }
 0x12a   : > { %12330 = vst [vmem:[#allocation39_spill] sm:$0xff] %v9928_v29  ;;  %12333 = vst [vmem:[#allocation40_spill] sm:$0xff] %v12332_v46  ;;  %v1313_v55 = vsel %vm12334_vm4, %v1284_v12, %v1285_v19  ;;  %v1314_v14 = vsel %vm12335_vm13, %v1283_v52, %v1284_v12  ;;  %v1025_v54 = vmul.f32 %v9485_v45, %v986_v42  ;;  %v430_v30 = vadd.s32 80, %v9441_v6 }
 0x12b   : > { %vm9956_vm10 = vmpackc.low %vm9848_vm2, %vm12320_vm7  ;;  %v12336_v47 = vmov 0  ;;  %v9960_v16 = vpack.c.bf16 %v1313_v55, %v1314_v14  ;;  %v9962_v52 = vmax.f32 %v1062_v1, 0.0  ;;  %v1286_v42 = vrot.slane %v9940_v23, 1  ;;  %7028 = vmatpush3.bf16.msra.mxu0 %v8617_v4  ;;  %7748 = vmatmul.mubr.msk.bf16.gmra.mrb[12].mxu1 %vm9933_vm3, %v9937_v9 }
 0x12c   : > { %v12337_v47 = vsel %vm9956_vm10, 4294967295, %v12336_v47  ;;  %v603_v62 = vand.u32 15, %v9642_v27  ;;  %v1063_v33 = vadd.f32 %v9493_v51, %v1024_v5  ;;  %v1064_v12 = vadd.f32 %v9493_v51, %v1025_v54  ;;  %vm9977_vm2 = vmpackc.low %vm12320_vm7, %vm9871_vm1  ;;  %7029 = vmatprep.subr.bf16.mxu0 %v8618_v20  ;;  %8069 = vmatpush3.bf16.msra.mxu1 %v8617_v4  ;;  %v8619_v5 = vld [vmem:[#allocation8 + $0x38] sm:$0xff]  }
 0x12d   : > { %12338 = vst [vmem:[#allocation41_spill] sm:$0xff] %v12337_v47  ;;  %v526_v44 = vand.u32 15, %v430_v30  ;;  %v1116_v3 = vrot.slane %v9732_v48, 7  ;;  %v12339_v27 = vmov 0  ;;  %vm9981_vm4 = vcmp.ne.s32.totalorder %v589_v28, 15  ;;  %7751 = vmatprep.mubr.msk.bf16.mxu1 %vm9956_vm10, %v9960_v16  ;;  %vm12344_vm1 = vmmov %vm12335_vm13  ;;  %v989_v30 = vld [vmem:[%s9419_s20 + $0xc8] sm:$0xff]  ;;  %8062 = vmatprep.subr.bf16.mxu1 %v8618_v20 }
 0x12e   : > { %v12340_v27 = vsel %vm9977_vm2, 4294967295, %v12339_v27  ;;  %v1287_v1 = vrot.slane %v9962_v52, 1  ;;  %v443_v55 = vadd.s32 184, %v9441_v6  ;;  %v1312_v17 = vsel %vm12344_vm1, %v1285_v19, %v1286_v42  ;;  %vm12346_vm13 = vmmov %vm12344_vm1 }
 0x12f   : > { %12341 = vst [vmem:[#allocation42_spill] sm:$0xff] %v12340_v27  ;;  %v9995_v28 = vpack.c.bf16 %v9774_v58, %v9732_v48  ;;  %v9997_v14 = vmax.f32 %v1063_v33, 0.0  ;;  %v9999_v54 = vmax.f32 %v1064_v12, 0.0  ;;  %v12347_v41 = vrot.slane %v9774_v58, 7  ;;  %v990_v12 = vld [vmem:[%s9419_s20 + $0xd0] sm:$0xff]  ;;  %7030 = vmatpush3.bf16.msra.mxu0 %v8619_v5  ;;  %v992_v27 = vld [vmem:[%s9419_s20 + $0xe0] sm:$0xff] }
 0x130   : > { %v1311_v53 = vsel %vm12346_vm13, %v1286_v42, %v1287_v1  ;;  %vm12348_vm0 = vcmp.lt.s32.totalorder %v9441_v6, 1  ;;  %v12349_v63 = vrot.slane %v9730_v43, 7  ;;  %v1026_v33 = vmul.f32 %v9485_v45, %v987_v37  ;;  %7151 = vmatprep.subr.bf16.mxu0 %v8628_v49  ;;  %6204 = vmatmul.mubr.msk.bf16.gmra.mrb[16].mxu0 %vm9977_vm2, %v9928_v29 }
 0x131   : > { %12345 = vst [vmem:[#allocation43_spill] sm:$0xff] %v9995_v28  ;;  %v1159_v19 = vsel %vm12348_vm0, %v1116_v3, %v12347_v41  ;;  %vm12350_vm1 = vmmov %vm12348_vm0  ;;  %vm10014_vm9 = vcmp.ne.s32.totalorder %v603_v62, 15  ;;  %v1288_v42 = vrot.slane %v9997_v14, 1  ;;  %vm10019_vm13 = vcmp.ne.s32.totalorder %v526_v44, 0  ;;  %v10023_v41 = vld [vmem:[#allocation8 + $0x80] sm:$0xff]   ;;  %8070 = vmatpush3.bf16.msra.mxu1 %v8619_v5  ;;  %2157 = vmatprep.mubr.bf16.mxu0 %v9995_v28  ;;  %v991_v28 = vld [vmem:[%s9419_s20 + $0xd8] sm:$0xff] }
 0x132   : > { %v1160_v48 = vsel %vm12350_vm1, %v12349_v63, %v1116_v3  ;;  %v10025_v43 = vpack.c.bf16 %v1311_v53, %v1312_v17  ;;  %v1289_v63 = vrot.slane %v9999_v54, 1  ;;  %v617_v37 = vand.u32 15, %v443_v55  ;;  %vm10035_vm0 = vmpackc.low %vm9981_vm4, %vm12320_vm7  ;;  %7767 = vmatprep.subr.bf16.mxu1 %v10023_v41 }
 0x133   : > { %v1027_v20 = vmul.f32 %v9485_v45, %v988_v61  ;;  %v12355_v44 = vmov 0  ;;  %vm12358_vm1 = vcmp.lt.s32.totalorder %v9441_v6, 7  ;;  %v10041_v62 = vpack.c.bf16 %v1159_v19, %v1160_v48  ;;  %vm10051_vm4 = vmpackc.low %vm10014_vm9, %vm12320_vm7 }
 0x134   : > { %v12356_v44 = vsel %vm10035_vm0, 4294967295, %v12355_v44  ;;  %v1310_v53 = vsel %vm12358_vm1, %v1287_v1, %v1288_v42  ;;  %v1065_v3 = vadd.f32 %v9493_v51, %v1026_v33  ;;  %v445_v49 = vadd.s32 200, %v9441_v6  ;;  %vm12360_vm2 = vmmov %vm12358_vm1  ;;  %7752 = vmatmul.mubr.msk.bf16.gmra.mrb[16].mxu1 %vm10035_vm0, %v10025_v43 }
 0x135   : > { %12357 = vst [vmem:[#allocation44_spill] sm:$0xff] %v12356_v44  ;;  %12359 = vst [vmem:[#allocation45_spill] sm:$0xff] %v10041_v62  ;;  %v1309_v61 = vsel %vm12360_vm2, %v1288_v42, %v1289_v63  ;;  %v12361_v59 = vmov 0  ;;  %v1066_v1 = vadd.f32 %v9493_v51, %v1027_v20  ;;  %v1028_v55 = vmul.f32 %v9485_v45, %v989_v30 }
 0x136   : > { %v12362_v59 = vsel %vm10051_vm4, 4294967295, %v12361_v59  ;;  %v1029_v17 = vmul.f32 %v9485_v45, %v990_v12  ;;  %v10058_v19 = vpack.c.bf16 %v1309_v61, %v1310_v53  ;;  %v10060_v5 = vmax.f32 %v1065_v3, 0.0  ;;  %vm10087_vm2 = vmpackc.low %vm12320_vm7, %vm10019_vm13 }
 0x137   : > { %12363 = vst [vmem:[#allocation46_spill] sm:$0xff] %v12362_v59  ;;  %v631_v48 = vand.u32 15, %v445_v49  ;;  %v432_v33 = vadd.s32 96, %v9441_v6  ;;  %v10067_v4 = vmax.f32 %v1066_v1, 0.0  ;;  %v1067_v30 = vadd.f32 %v9493_v51, %v1028_v55  ;;  %v994_v59 = vld [vmem:[%s9419_s20 + $0xf0] sm:$0xff]  ;;  %vm12375_vm0 = vmmov %vm12358_vm1 }
 0x138   : > { %12364 = vst [vmem:[#allocation47_spill] sm:$0xff] %v10058_v19  ;;  %v1068_v12 = vadd.f32 %v9493_v51, %v1029_v17  ;;  %v1118_v42 = vrot.slane %v9776_v35, 7  ;;  %7755 = vmatprep.mubr.msk.bf16.mxu1 %vm10051_vm4, %v10058_v19  ;;  %vm10075_vm9 = vcmp.ne.s32.totalorder %v617_v37, 15  ;;  %v1290_v53 = vrot.slane %v10060_v5, 1  ;;  %6207 = vmatmul.mubr.msk.bf16.gmra.mrb[20].mxu0 %vm10087_vm2, %v10041_v62 }
 0x139   : > { %v10082_v3 = vpack.c.bf16 %v9801_v21, %v9776_v35  ;;  %v540_v49 = vand.u32 15, %v432_v33  ;;  %v12368_v61 = vmov 0  ;;  %v1291_v37 = vrot.slane %v10067_v4, 1 }
 0x13a   : > { %v12369_v61 = vsel %vm10087_vm2, 4294967295, %v12368_v61  ;;  %v10092_v1 = vmax.f32 %v1067_v30, 0.0  ;;  %v10094_v55 = vmax.f32 %v1068_v12, 0.0  ;;  %v1119_v17 = vrot.slane %v9801_v21, 7  ;;  %v993_v12 = vld [vmem:[%s9419_s20 + $0xe8] sm:$0xff] }
 0x13b   : > { %12367 = vst [vmem:[#allocation48_spill] sm:$0xff] %v10082_v3  ;;  %12370 = vst [vmem:[#allocation49_spill] sm:$0xff] %v12369_v61  ;;  %v1308_v35 = vsel %vm12358_vm1, %v1289_v63, %v1290_v53  ;;  %vm10101_vm4 = vcmp.ne.s32.totalorder %v631_v48, 15  ;;  %v12373_v33 = vrot.slane %v9774_v58, 7  ;;  %vm12374_vm13 = vcmp.lt.s32.totalorder %v9441_v6, 1  ;;  %2165 = vmatprep.mubr.bf16.mxu0 %v10082_v3 }
 0x13c   : > { %v447_v30 = vadd.s32 216, %v9441_v6  ;;  %v1307_v21 = vsel %vm12375_vm0, %v1290_v53, %v1291_v37  ;;  %v1292_v19 = vrot.slane %v10092_v1, 1  ;;  %v1293_v63 = vrot.slane %v10094_v55, 1  ;;  %vm12376_vm1 = vmmov %vm12374_vm13 }
 0x13d   : > { %v1158_v29 = vsel %vm12374_vm13, %v12373_v33, %v1118_v42  ;;  %v1157_v48 = vsel %vm12376_vm1, %v1118_v42, %v1119_v17  ;;  %vm10124_vm13 = vmpackc.low %vm10075_vm9, %vm12320_vm7  ;;  %v12377_v58 = vmov 0  ;;  %v10128_v33 = vpack.c.bf16 %v1307_v21, %v1308_v35 }
 0x13e   : > { %v12378_v58 = vsel %vm10124_vm13, 4294967295, %v12377_v58  ;;  %vm10130_vm0 = vcmp.ne.s32.totalorder %v540_v49, 0  ;;  %v10134_v11 = vpack.c.bf16 %v1157_v48, %v1158_v29  ;;  %v1030_v42 = vmul.f32 %v9485_v45, %v991_v28  ;;  %vm10145_vm2 = vmpackc.low %vm10101_vm4, %vm12320_vm7 }
 0x13f   : > { %12379 = vst [vmem:[#allocation50_spill] sm:$0xff] %v12378_v58  ;;  %vm12382_vm1 = vcmp.lt.s32.totalorder %v9441_v6, 7  ;;  %v12384_v49 = vmov 0  ;;  %v645_v35 = vand.u32 15, %v447_v30  ;;  %v1031_v29 = vmul.f32 %v9485_v45, %v992_v27  ;;  %7756 = vmatmul.mubr.msk.bf16.gmra.mrb[20].mxu1 %vm10124_vm13, %v10128_v33  ;;  %vm10175_vm4 = vmpackc.low %vm12320_vm7, %vm10130_vm0 }
 0x140   : > { %v1305_v61 = vsel %vm12382_vm1, %v1292_v19, %v1293_v63  ;;  %vm12383_vm9 = vmmov %vm12382_vm1  ;;  %v12385_v49 = vsel %vm10145_vm2, 4294967295, %v12384_v49  ;;  %v1069_v28 = vadd.f32 %v9493_v51, %v1030_v42  ;;  %v10155_v48 = vpack.c.bf16 %v9865_v8, %v9813_v40  ;;  %6210 = vmatmul.mubr.msk.bf16.gmra.mrb[24].mxu0 %vm10175_vm4, %v10134_v11 }
 0x141   : > { %v1306_v20 = vsel %vm12383_vm9, %v1291_v37, %v1292_v19  ;;  %12386 = vst [vmem:[#allocation51_spill] sm:$0xff] %v12385_v49  ;;  %v449_v19 = vadd.s32 232, %v9441_v6  ;;  %v1070_v37 = vadd.f32 %v9493_v51, %v1031_v29  ;;  %v1032_v2 = vmul.f32 %v9485_v45, %v993_v12 }
 0x142   : > { %v10150_v21 = vpack.c.bf16 %v1305_v61, %v1306_v20  ;;  %12387 = vst [vmem:[#allocation52_spill] sm:$0xff] %v10155_v48  ;;  %v1033_v27 = vmul.f32 %v9485_v45, %v994_v59  ;;  %v434_v61 = vadd.s32 112, %v9441_v6  ;;  %v10168_v30 = vmax.f32 %v1069_v28, 0.0  ;;  %2173 = vmatprep.mubr.bf16.mxu0 %v10155_v48 }
 0x143   : > { %v659_v42 = vand.u32 15, %v449_v19  ;;  %v1120_v20 = vrot.slane %v9813_v40, 7  ;;  %v1121_v3 = vrot.slane %v9865_v8, 7  ;;  %v12388_v12 = vmov 0 }
 0x144   : > { %7759 = vmatprep.mubr.msk.bf16.mxu1 %vm10145_vm2, %v10150_v21  ;;  %v12389_v12 = vsel %vm10175_vm4, 4294967295, %v12388_v12  ;;  %vm10179_vm1 = vcmp.ne.s32.totalorder %v645_v35, 15  ;;  %v10183_v59 = vmax.f32 %v1070_v37, 0.0  ;;  %v1071_v29 = vadd.f32 %v9493_v51, %v1032_v2 }
 0x145   : > { %12390 = vst [vmem:[#allocation53_spill] sm:$0xff] %v12389_v12  ;;  %v1072_v28 = vadd.f32 %v9493_v51, %v1033_v27  ;;  %v1294_v40 = vrot.slane %v10168_v30, 1  ;;  %v554_v8 = vand.u32 15, %v434_v61  ;;  %vm12393_vm9 = vcmp.lt.s32.totalorder %v9441_v6, 1  ;;  %vm10209_vm10 = vmpackc.low %vm10179_vm1, %vm12320_vm7 }
 0x146   : > { %v1155_v53 = vsel %vm12393_vm9, %v1120_v20, %v1121_v3  ;;  %v1295_v19 = vrot.slane %v10183_v59, 1  ;;  %v10191_v62 = vmax.f32 %v1071_v29, 0.0  ;;  %vm12394_vm0 = vmmov %vm12393_vm9  ;;  %vm12395_vm2 = vcmp.lt.s32.totalorder %v9441_v6, 7 }
 0x147   : > { %v10193_v35 = vmax.f32 %v1072_v28, 0.0  ;;  %v1156_v37 = vsel %vm12394_vm0, %v1119_v17, %v1120_v20  ;;  %v1304_v51 = vsel %vm12395_vm2, %v1293_v63, %v1294_v40  ;;  %vm897_vm13 = vcmp.ne.s32.totalorder %v659_v42, 15  ;;  %vm12396_vm9 = vmmov %vm12395_vm2 }
 0x148   : > { %v451_v2 = vadd.s32 248, %v9441_v6  ;;  %v1298_v27 = vrot.slane %v9550_v36, 1  ;;  %v1303_v61 = vsel %vm12396_vm9, %v1294_v40, %v1295_v19  ;;  %v12397_v17 = vmov 0  ;;  %vm12401_vm0 = vmmov %vm12396_vm9 }
 0x149   : > { %v12398_v17 = vsel %vm10209_vm10, 4294967295, %v12397_v17  ;;  %v1296_v20 = vrot.slane %v10191_v62, 1  ;;  %v1297_v63 = vrot.slane %v10193_v35, 1  ;;  %v10216_v42 = vpack.c.bf16 %v1303_v61, %v1304_v51  ;;  %vm12402_vm1 = vmmov %vm12401_vm0 }
 0x14a   : > { %12399 = vst [vmem:[#allocation54_spill] sm:$0xff] %v12398_v17  ;;  %vm850_vm2 = vcmp.ne.s32.totalorder %v554_v8, 0  ;;  %v10218_v29 = vpack.c.bf16 %v1155_v53, %v1156_v37  ;;  %v673_v28 = vand.u32 15, %v451_v2  ;;  %vm10225_vm9 = vmpackc.low %vm897_vm13, %vm12320_vm7  ;;  %v12403_v12 = vmov 0 }
 0x14b   : > { %v1301_v40 = vsel %vm12401_vm0, %v1296_v20, %v1297_v63  ;;  %v1302_v45 = vsel %vm12402_vm1, %v1295_v19, %v1296_v20  ;;  %v12404_v12 = vsel %vm10225_vm9, 4294967295, %v12403_v12  ;;  %v10231_v48 = vpack.c.bf16 %v9916_v34, %v9885_v39  ;;  %7760 = vmatmul.mubr.msk.bf16.gmra.mrb[24].mxu1 %vm10209_vm10, %v10216_v42  ;;  %vm12408_vm13 = vmmov %vm12402_vm1 }
 0x14c   : > { %12400 = vst [vmem:[#allocation55_spill] sm:$0xff] %v10218_v29  ;;  %12405 = vst [vmem:[#allocation56_spill] sm:$0xff] %v12404_v12  ;;  %v436_v8 = vadd.s32 128, %v9441_v6  ;;  %v10237_v53 = vpack.c.bf16 %v1301_v40, %v1302_v45  ;;  %vm899_vm0 = vcmp.ne.s32.totalorder %v673_v28, 15  ;;  %v1300_v19 = vsel %vm12402_vm1, %v1297_v63, %v1298_v27 }
 0x14d   : > { %12406 = vst [vmem:[#allocation57_spill] sm:$0xff] %v10231_v48  ;;  %v12407_v37 = vrot.slane %v9525_v10, 1  ;;  %vm10246_vm4 = vmpackc.low %vm12320_vm7, %vm850_vm2  ;;  %v12409_v2 = vmov 0  ;;  %v1122_v20 = vrot.slane %v9885_v39, 7  ;;  %v1123_v40 = vrot.slane %v9916_v34, 7 }
 0x14e   : > { %v12410_v2 = vsel %vm10246_vm4, 4294967295, %v12409_v2  ;;  %v568_v61 = vand.u32 15, %v436_v8  ;;  %v442_v28 = vadd.s32 176, %v9441_v6  ;;  %7763 = vmatprep.mubr.msk.bf16.mxu1 %vm10225_vm9, %v10237_v53  ;;  %v1129_v63 = vrot.slane %v10060_v5, 7  ;;  %6213 = vmatmul.mubr.msk.bf16.gmra.mrb[28].mxu0 %vm10246_vm4, %v10218_v29  ;;  %vm10265_vm2 = vmpackc.low %vm899_vm0, %vm12320_vm7 }
 0x14f   : > { %v1331_v51 = vsel %vm12408_vm13, %v1298_v27, %v12407_v37  ;;  %12411 = vst [vmem:[#allocation58_spill] sm:$0xff] %v12410_v2  ;;  %v1128_v27 = vrot.slane %v9999_v54, 7  ;;  %v12413_v34 = vmov 0  ;;  %2181 = vmatprep.mubr.bf16.mxu0 %v10231_v48  ;;  %v10272_v39 = vpack.c.bf16 %v10060_v5, %v9999_v54 }
 0x150   : > { %v10262_v45 = vpack.c.bf16 %v1331_v51, %v1300_v19  ;;  %v12414_v34 = vsel %vm10265_vm2, 4294967295, %v12413_v34  ;;  %vm12416_vm1 = vcmp.lt.s32.totalorder %v9441_v6, 1  ;;  %v438_v19 = vadd.s32 144, %v9441_v6 }
 0x151   : > { %12415 = vst [vmem:[#allocation60_spill] sm:$0xff] %v12414_v34  ;;  %v1153_v8 = vsel %vm12416_vm1, %v1122_v20, %v1123_v40  ;;  %vm12417_vm13 = vmmov %vm12416_vm1  ;;  %vm852_vm4 = vcmp.ne.s32.totalorder %v568_v61, 0  ;;  %v610_v51 = vand.u32 15, %v442_v28  ;;  %v444_v10 = vadd.s32 192, %v9441_v6 }
 0x152   : > { %12412 = vst [vmem:[#allocation59_spill] sm:$0xff] %v10262_v45  ;;  %v1154_v37 = vsel %vm12417_vm13, %v1121_v3, %v1122_v20  ;;  %vm12418_vm0 = vmmov %vm12416_vm1  ;;  %v12419_v5 = vrot.slane %v9997_v14, 7  ;;  %v440_v20 = vadd.s32 160, %v9441_v6  ;;  %v12421_v61 = vmov 0 }
 0x153   : > { %7764 = vmatmul.mubr.msk.bf16.gmra.mrb[28].mxu1 %vm10265_vm2, %v10262_v45  ;;  %v10283_v48 = vpack.c.bf16 %v1153_v8, %v1154_v37  ;;  %v1147_v54 = vsel %vm12418_vm0, %v1128_v27, %v1129_v63  ;;  %vm12420_vm1 = vmmov %vm12418_vm0  ;;  %v10300_v28 = vpack.c.bf16 %v9940_v23, %v9918_v26  ;;  %v582_v8 = vand.u32 15, %v438_v19 }
 0x154   : > { %v1148_v3 = vsel %vm12420_vm1, %v12419_v5, %v1128_v27  ;;  %2679 = vmatprep.mubr.bf16.mxu1 %v10272_v39  ;;  %vm10294_vm13 = vmpackc.low %vm12320_vm7, %vm852_vm4  ;;  %v1124_v37 = vrot.slane %v9918_v26, 7  ;;  %v1125_v34 = vrot.slane %v9940_v23, 7  ;;  %vm858_vm0 = vcmp.ne.s32.totalorder %v610_v51, 0 }
 0x155   : > { %v12422_v61 = vsel %vm10294_vm13, 4294967295, %v12421_v61  ;;  %12424 = vst [vmem:[#allocation62_spill] sm:$0xff] %v10300_v28  ;;  %v624_v27 = vand.u32 15, %v444_v10  ;;  %v446_v5 = vadd.s32 208, %v9441_v6  ;;  %v10308_v45 = vpack.c.bf16 %v1147_v54, %v1148_v3  ;;  %vm10316_vm4 = vmpackc.low %vm12320_vm7, %vm858_vm0  ;;  %v8621_v54 = vld [vmem:[#allocation8 + $0x88] sm:$0xff]  }
 0x156   : > { %12423 = vst [vmem:[#allocation61_spill] sm:$0xff] %v12422_v61  ;;  %6216 = vmatmul.mubr.msk.bf16.gmra.mrb[32].mxu0 %vm10294_vm13, %v10283_v48  ;;  %v10312_v2 = vpack.c.bf16 %v10092_v1, %v10067_v4  ;;  %v1130_v19 = vrot.slane %v10067_v4, 7  ;;  %v596_v29 = vand.u32 15, %v440_v20  ;;  %v12425_v26 = vmov 0 }
 0x157   : > { %v12426_v26 = vsel %vm10316_vm4, 4294967295, %v12425_v26  ;;  %2189 = vmatprep.mubr.bf16.mxu0 %v10300_v28  ;;  %vm854_vm1 = vcmp.ne.s32.totalorder %v582_v8, 0  ;;  %vm12428_vm2 = vcmp.lt.s32.totalorder %v9441_v6, 1  ;;  %v1131_v51 = vrot.slane %v10092_v1, 7  ;;  %v8622_v1 = vld [vmem:[#allocation8 + $0x90] sm:$0xff]  }
 0x158   : > { %12427 = vst [vmem:[#allocation63_spill] sm:$0xff] %v12426_v26  ;;  %v1151_v23 = vsel %vm12428_vm2, %v1124_v37, %v1125_v34  ;;  %vm12429_vm13 = vmmov %vm12428_vm2  ;;  %v448_v4 = vadd.s32 224, %v9441_v6  ;;  %vm10327_vm9 = vcmp.ne.s32.totalorder %v624_v27, 0  ;;  %v638_v20 = vand.u32 15, %v446_v5 }
 0x159   : > { %v1152_v10 = vsel %vm12429_vm13, %v1123_v40, %v1124_v37  ;;  %vm10335_vm0 = vmpackc.low %vm12320_vm7, %vm854_vm1  ;;  %v12432_v8 = vmov 0  ;;  %vm10341_vm2 = vcmp.ne.s32.totalorder %v596_v29, 0  ;;  %v1126_v27 = vrot.slane %v9962_v52, 7 }
 0x15a   : > { %v12433_v8 = vsel %vm10335_vm0, 4294967295, %v12432_v8  ;;  %v10339_v40 = vpack.c.bf16 %v1151_v23, %v1152_v10  ;;  %v1145_v5 = vsel %vm12429_vm13, %v1130_v19, %v1131_v51  ;;  %vm12438_vm1 = vmmov %vm12429_vm13  ;;  %v10354_v23 = vpack.c.bf16 %v9997_v14, %v9962_v52 }
 0x15b   : > { %6345 = vmatmul.mubr.msk.bf16.vlgmr.msra.gmra.mrb[32].mxu1 %vm10316_vm4, %v10308_v45  ;;  %12434 = vst [vmem:[#allocation64_spill] sm:$0xff] %v12433_v8  ;;  %v1146_v28 = vsel %vm12438_vm1, %v1129_v63, %v1130_v19  ;;  %v1132_v29 = vrot.slane %v10094_v55, 7  ;;  %v652_v10 = vand.u32 15, %v448_v4  ;;  %vm10360_vm10 = vmpackc.low %vm12320_vm7, %vm10327_vm9  ;;  %vm10364_vm3 = vcmp.ne.s32.totalorder %v638_v20, 0  ;;  %v8623_v19 = vld [vmem:[#allocation8 + $0x98] sm:$0xff]  }
 0x15c   : > { %12435 = vst [vmem:[#allocation65_spill] sm:$0xff] %v10339_v40  ;;  %7768 = vmatpush3.bf16.msra.mxu1 %v10023_v41  ;;  %2687 = vmatprep.mubr.bf16.mxu1 %v10312_v2  ;;  %v12439_v41 = vmov 0  ;;  %v1133_v63 = vrot.slane %v10168_v30, 7  ;;  %v10372_v52 = vpack.c.bf16 %v1145_v5, %v1146_v28  ;;  %vm10377_vm9 = vmpackc.low %vm12320_vm7, %vm10341_vm2  ;;  %v12444_v4 = vmov 0 }
 0x15d   : > { %7769 = vmatprep.subr.bf16.mxu1 %v8621_v54  ;;  %v12440_v41 = vsel %vm10360_vm10, 4294967295, %v12439_v41  ;;  %v12445_v4 = vsel %vm10377_vm9, 4294967295, %v12444_v4  ;;  %v1134_v3 = vrot.slane %v10183_v59, 7  ;;  %v1135_v20 = vrot.slane %v10191_v62, 7  ;;  %vm12448_vm13 = vmmov %vm12438_vm1 }
 0x15e   : > { %12441 = vst [vmem:[#allocation66_spill] sm:$0xff] %v12440_v41  ;;  %6219 = vmatmul.mubr.msk.bf16.gmra.mrb[36].mxu0 %vm10335_vm0, %v10339_v40  ;;  %12446 = vst [vmem:[#allocation67_spill] sm:$0xff] %v12445_v4  ;;  %v10386_v8 = vpack.c.bf16 %v10168_v30, %v10094_v55  ;;  %v12447_v28 = vrot.slane %v9997_v14, 7  ;;  %v12452_v14 = vmov 0  ;;  %v8624_v55 = vld [vmem:[#allocation8 + $0xa0] sm:$0xff]   ;;  %v450_v30 = vadd.s32 240, %v9441_v6 }
 0x15f   : > { %2197 = vmatprep.mubr.bf16.mxu0 %v10354_v23  ;;  %vm12449_vm2 = vmmov %vm12438_vm1  ;;  %vm10394_vm1 = vcmp.ne.s32.totalorder %v652_v10, 0  ;;  %v8625_v10 = vld [vmem:[#allocation8 + $0xa8] sm:$0xff]   ;;  %v8629_v40 = vld [vmem:[#allocation8 + $0x200] sm:$0xff]  }
 0x160   : > { %7770 = vmatpush3.bf16.msra.mxu1 %v8621_v54  ;;  %v1149_v37 = vsel %vm12448_vm13, %v1126_v27, %v12447_v28  ;;  %v1150_v5 = vsel %vm12449_vm2, %v1125_v34, %v1126_v27  ;;  %vm10406_vm0 = vmpackc.low %vm12320_vm7, %vm10364_vm3  ;;  %v1144_v27 = vsel %vm12449_vm2, %v1131_v51, %v1132_v29  ;;  %v666_v28 = vand.u32 15, %v450_v30  ;;  %v8640_v30 = vld [vmem:[#allocation8 + $0x190] sm:$0xff]  }
 0x161   : > { %7771 = vmatprep.subr.bf16.mxu1 %v8622_v1  ;;  %v10401_v54 = vpack.c.bf16 %v1149_v37, %v1150_v5  ;;  %v12453_v14 = vsel %vm10406_vm0, 4294967295, %v12452_v14  ;;  %vm12455_vm13 = vmmov %vm12449_vm2  ;;  %v1136_v37 = vrot.slane %v10193_v35, 7 }
 0x162   : > { %12454 = vst [vmem:[#allocation68_spill] sm:$0xff] %v12453_v14  ;;  %v1143_v34 = vsel %vm12455_vm13, %v1132_v29, %v1133_v63  ;;  %vm12456_vm3 = vmmov %vm12449_vm2 }
 0x163   : > { %6348 = vmatmul.mubr.msk.bf16.gmra.mrb[36].mxu1 %vm10360_vm10, %v10372_v52  ;;  %v10419_v61 = vpack.c.bf16 %v1143_v34, %v1144_v27  ;;  %v1141_v51 = vsel %vm12456_vm3, %v1134_v3, %v1135_v20  ;;  %vm12457_vm13 = vmmov %vm12449_vm2  ;;  %v8632_v34 = vld [vmem:[#allocation8 + $0x210] sm:$0xff]   ;;  %v8634_v27 = vld [vmem:[#allocation8 + $0x218] sm:$0xff]  }
 0x164   : > { %7772 = vmatpush3.bf16.msra.mxu1 %v8622_v1  ;;  %2695 = vmatprep.mubr.bf16.mxu1 %v10386_v8  ;;  %v10424_v1 = vpack.c.bf16 %v10191_v62, %v10183_v59  ;;  %v1142_v29 = vsel %vm12457_vm13, %v1133_v63, %v1134_v3  ;;  %vm10439_vm2 = vmpackc.low %vm12320_vm7, %vm10394_vm1  ;;  %v12458_v59 = vmov 0  ;;  %v12135_v63 = vmov 0.0|0.0   ;;  %v8631_v3 = vld [vmem:[#allocation8 + $0x208] sm:$0xff]   ;;  %v8630_v62 = vld [vmem:[#allocation8 + $0x180] sm:$0xff]  }
 0x165   : > { %7773 = vmatprep.subr.bf16.mxu1 %v8623_v19  ;;  %v12459_v59 = vsel %vm10439_vm2, 4294967295, %v12458_v59  ;;  %v10447_v5 = vpack.c.bf16 %v1141_v51, %v1142_v29  ;;  %vm10458_vm1 = vcmp.ne.s32.totalorder %v666_v28, 0  ;;  %v12463_v51 = vmov 0  ;;  %v8637_v29 = vld [vmem:[#allocation8 + $0x228] sm:$0xff]  }
 0x166   : > { %6222 = vmatmul.mubr.msk.bf16.gmra.mrb[40].mxu0 %vm10377_vm9, %v10401_v54  ;;  %12460 = vst [vmem:[#allocation69_spill] sm:$0xff] %v12459_v59  ;;  %vm10485_vm3 = vmpackc.low %vm12320_vm7, %vm10458_vm1  ;;  %vm12468_vm1 = vnez %v12332_v46  ;;  %v12508_v46 = vld [vmem:[#allocation57_spill] sm:$0xff] }
 0x167   : > { %2205 = vmatprep.mubr.bf16.mxu0 %v10272_v39  ;;  %v12464_v51 = vsel %vm10485_vm3, 4294967295, %v12463_v51  ;;  %vm12467_vm7 = vmmov %vm12457_vm13 }
 0x168   : > { %7774 = vmatpush3.bf16.msra.mxu1 %v8623_v19  ;;  %v8626_v19 = vld [vmem:[#allocation8 + $0xb0] sm:$0xff]   ;;  %12465 = vst [vmem:[#allocation70_spill] sm:$0xff] %v12464_v51  ;;  %v1140_v28 = vsel %vm12467_vm7, %v1135_v20, %v1136_v37  ;;  %v8633_v20 = vld [vmem:[#allocation8 + $0x1c8] sm:$0xff]   ;;  %vm12470_vm7 = vnez %v12356_v44 }
 0x169   : > { %7775 = vmatprep.subr.bf16.mxu1 %v8624_v55  ;;  %v12516_v44 = vld [vmem:[#allocation60_spill] sm:$0xff] }
 0x16b   : > { %6351 = vmatmul.mubr.msk.bf16.gmra.mrb[40].mxu1 %vm10406_vm0, %v10419_v61 }
 0x16c   : > { %7776 = vmatpush3.bf16.msra.mxu1 %v8624_v55  ;;  %2703 = vmatprep.mubr.bf16.mxu1 %v10424_v1  ;;  %v8627_v55 = vld [vmem:[#allocation8 + $0xb8] sm:$0xff]  }
 0x16d   : > { %7777 = vmatprep.subr.bf16.mxu1 %v8625_v10 }
 0x16e   : > { %6225 = vmatmul.mubr.msk.bf16.gmra.mrb[44].mxu0 %vm10316_vm4, %v10308_v45 }
 0x16f   : > { %2213 = vmatprep.mubr.bf16.mxu0 %v10312_v2 }
 0x170   : > { %7778 = vmatpush3.bf16.msra.mxu1 %v8625_v10  ;;  %v10480_v10 = vpack.c.bf16 %v9550_v36, %v10193_v35 }
 0x171   : > { %7779 = vmatprep.subr.bf16.mxu1 %v8626_v19 }
 0x173   : > { %6354 = vmatmul.mubr.msk.bf16.gmra.mrb[44].mxu1 %vm10439_vm2, %v10447_v5 }
 0x174   : > { %7780 = vmatpush3.bf16.msra.mxu1 %v8626_v19  ;;  %7783 = vmatprep.mubr.bf16.mxu1 %v12135_v63  ;;  %v12466_v19 = vrot.slane %v9550_v36, 7  ;;  %v8641_v36 = vld [vmem:[#allocation8 + $0x238] sm:$0xff]  }
 0x175   : > { %7781 = vmatprep.subr.bf16.mxu1 %v8627_v55 }
 0x176   : > { %6228 = vmatmul.mubr.msk.bf16.gmra.mrb[48].mxu0 %vm10360_vm10, %v10372_v52  ;;  %v1139_v35 = vsel %vm12457_vm13, %v1136_v37, %v12466_v19  ;;  %v8635_v37 = vld [vmem:[#allocation8 + $0x188] sm:$0xff]   ;;  %vm12469_vm13 = vnez %v12337_v47  ;;  %v8644_v19 = vld [vmem:[#allocation8 + $0x1e0] sm:$0xff]   ;;  %vm12484_vm10 = vnez %v12398_v17 }
 0x177   : > { %2221 = vmatprep.mubr.bf16.mxu0 %v10386_v8 }
 0x178   : > { %7782 = vmatpush3.bf16.msra.mxu1 %v8627_v55  ;;  %v10504_v55 = vpack.c.bf16 %v1139_v35, %v1140_v28  ;;  %v12475_v35 = vld [vmem:[#allocation47_spill] sm:$0xff]  ;;  %v12476_v28 = vld [vmem:[#allocation46_spill] sm:$0xff] }
 0x179   : > { %7815 = vmatprep.subr.bf16.mxu1 %v8629_v40 }
 0x17b   : > { %7784 = vmatmul.mubr.msk.bf16.vlgmr.msra.gmra.mrb[0].mxu1 %vm9576_vm8, %v9582_v57  ;;  %v8636_v57 = vld [vmem:[#allocation8 + $0x220] sm:$0xff]  }
 0x17c   : > { %7787 = vmatprep.mubr.msk.bf16.mxu1 %vm9622_vm11, %v9635_v15  ;;  %7816 = vmatpush3.bf16.msra.mxu1 %v8629_v40  ;;  %v8639_v40 = vld [vmem:[#allocation8 + $0x230] sm:$0xff]  }
 0x17d   : > { %7817 = vmatprep.subr.bf16.mxu1 %v8631_v3 }
 0x17e   : > { %6231 = vmatmul.mubr.msk.bf16.gmra.mrb[52].mxu0 %vm10406_vm0, %v10419_v61  ;;  %vm12483_vm0 = vnez %v12385_v49 }
 0x17f   : > { %2229 = vmatprep.mubr.bf16.mxu0 %v10424_v1 }
 0x180   : > { %7818 = vmatpush3.bf16.msra.mxu1 %v8631_v3  ;;  %v8638_v3 = vld [vmem:[#allocation8 + $0x1d0] sm:$0xff]  }
 0x181   : > { %7819 = vmatprep.subr.bf16.mxu1 %v8632_v34 }
 0x183   : > { %7788 = vmatmul.mubr.msk.bf16.gmra.mrb[4].mxu1 %vm9683_vm15, %v9691_v0 }
 0x184   : > { %7791 = vmatprep.mubr.msk.bf16.mxu1 %vm9757_vm5, %v9764_v18  ;;  %7820 = vmatpush3.bf16.msra.mxu1 %v8632_v34  ;;  %v8642_v34 = vld [vmem:[#allocation8 + $0x1d8] sm:$0xff]  }
 0x185   : > { %7821 = vmatprep.subr.bf16.mxu1 %v8634_v27 }
 0x186   : > { %6234 = vmatmul.mubr.msk.bf16.gmra.mrb[56].mxu0 %vm10439_vm2, %v10447_v5  ;;  %vm12478_vm2 = vnez %v12378_v58 }
 0x187   : > { %2237 = vmatprep.mubr.bf16.mxu0 %v10480_v10 }
 0x188   : > { %7822 = vmatpush3.bf16.msra.mxu1 %v8634_v27  ;;  %v12471_v27 = vld [vmem:[#allocation26_spill] sm:$0xff] }
 0x189   : > { %7823 = vmatprep.subr.bf16.mxu1 %v8636_v57 }
 0x18b   : > { %7792 = vmatmul.mubr.msk.bf16.gmra.mrb[8].mxu1 %vm9770_vm6, %v9790_v25 }
 0x18c   : > { %7795 = vmatprep.mubr.msk.bf16.mxu1 %vm9809_vm12, %v9852_v31  ;;  %7824 = vmatpush3.bf16.msra.mxu1 %v8636_v57  ;;  %v12472_v57 = vld [vmem:[#allocation25_spill] sm:$0xff] }
 0x18d   : > { %7825 = vmatprep.subr.bf16.mxu1 %v8637_v29  ;;  %vm12473_vm8 = vnez %v12472_v57  ;;  %v12501_v57 = vld [vmem:[#allocation48_spill] sm:$0xff] }
 0x18e   : > { %6237 = vmatmul.mubr.msk.bf16.gmra.mrb[60].mxu0 %vm10485_vm3, %v10504_v55  ;;  %vm12477_vm3 = vnez %v12476_v28 }
 0x18f   : > { %2583 = vmatprep.mubr.bf16.mxu0 %v12135_v63 }
 0x190   : > { %7826 = vmatpush3.bf16.msra.mxu1 %v8637_v29  ;;  %v8643_v29 = vld [vmem:[#allocation8 + $0x198] sm:$0xff]  }
 0x191   : > { %7827 = vmatprep.subr.bf16.mxu1 %v8639_v40 }
 0x193   : > { %7796 = vmatmul.mubr.msk.bf16.gmra.mrb[12].mxu1 %vm9837_vm14, %v9876_v24 }
 0x194   : > { %7799 = vmatprep.mubr.msk.bf16.mxu1 %vm12468_vm1, %v9937_v9  ;;  %7828 = vmatpush3.bf16.msra.mxu1 %v8639_v40  ;;  %v8645_v40 = vld [vmem:[#allocation8 + $0x1a0] sm:$0xff]  }
 0x195   : > { %7829 = vmatprep.subr.bf16.mxu1 %v8641_v36 }
 0x196   : > { %2584 = vmatmul.mubr.bf16.vlgmr.msra.gmra.mrb[64].mxu0 %v12135_v63  ;;  %v12493_v63 = vld [vmem:[#allocation38_spill] sm:$0xff] }
 0x197   : > { %7152 = vmatpush3.bf16.msra.mxu0 %v8630_v62  ;;  %2591 = vmatprep.mubr.bf16.mxu0 %v9546_v32  ;;  %v12474_v32 = vld [vmem:[#allocation24_spill] sm:$0xff] }
 0x198   : > { %7153 = vmatprep.subr.bf16.mxu0 %v8633_v20  ;;  %7830 = vmatpush3.bf16.msra.mxu1 %v8641_v36  ;;  %v8646_v36 = vld [vmem:[#allocation8 + $0x1e8] sm:$0xff]   ;;  %v12480_v20 = vld [vmem:[#allocation29_spill] sm:$0xff] }
 0x199   : > { %v12479_v62 = vld [vmem:[#allocation28_spill] sm:$0xff] }
 0x19b   : > { %7800 = vmatmul.mubr.msk.bf16.gmra.mrb[16].mxu1 %vm12469_vm13, %v9960_v16  ;;  %7154 = vmatpush3.bf16.msra.mxu0 %v8635_v37  ;;  %v12482_v37 = vld [vmem:[#allocation27_spill] sm:$0xff] }
 0x19c   : > { %7803 = vmatprep.mubr.msk.bf16.mxu1 %vm12470_vm7, %v10025_v43  ;;  %7155 = vmatprep.subr.bf16.mxu0 %v8638_v3  ;;  %v8647_v3 = vld [vmem:[#allocation8 + $0x1a8] sm:$0xff]  }
 0x19e   : > { %6312 = vmatmul.mubr.msk.bf16.gmra.mrb[68].mxu0 %vm12473_vm8, %v12471_v27  ;;  %vm12481_vm8 = vnez %v12480_v20  ;;  %v8650_v27 = vld [vmem:[#allocation8 + $0x1f8] sm:$0xff]  }
 0x19f   : > { %2599 = vmatprep.mubr.bf16.mxu0 %v12474_v32  ;;  %7156 = vmatpush3.bf16.msra.mxu0 %v8640_v30  ;;  %v8648_v30 = vld [vmem:[#allocation8 + $0x1f0] sm:$0xff]  }
 0x1a0   : > { %7157 = vmatprep.subr.bf16.mxu0 %v8642_v34  ;;  %v8649_v34 = vld [vmem:[#allocation8 + $0x1b0] sm:$0xff]  }
 0x1a3   : > { %7804 = vmatmul.mubr.msk.bf16.gmra.mrb[20].mxu1 %vm12477_vm3, %v12475_v35  ;;  %7158 = vmatpush3.bf16.msra.mxu0 %v8643_v29  ;;  %v12485_v29 = vld [vmem:[#allocation33_spill] sm:$0xff] }
 0x1a4   : > { %7807 = vmatprep.mubr.msk.bf16.mxu1 %vm12478_vm2, %v10128_v33  ;;  %7159 = vmatprep.subr.bf16.mxu0 %v8644_v19  ;;  %v12486_v19 = vld [vmem:[#allocation32_spill] sm:$0xff] }
 0x1a5   : > { %vm12487_vm4 = vnez %v12486_v19 }
 0x1a6   : > { %6315 = vmatmul.mubr.msk.bf16.gmra.mrb[72].mxu0 %vm12481_vm8, %v12479_v62  ;;  %vm12489_vm8 = vnez %v12404_v12  ;;  %v12519_v12 = vmov 0.0|0.0  }
 0x1a7   : > { %2607 = vmatprep.mubr.bf16.mxu0 %v12482_v37  ;;  %7160 = vmatpush3.bf16.msra.mxu0 %v8645_v40  ;;  %v12488_v40 = vld [vmem:[#allocation30_spill] sm:$0xff] }
 0x1a8   : > { %7161 = vmatprep.subr.bf16.mxu0 %v8646_v36  ;;  %v8651_v36 = vld [vmem:[#allocation8 + $0x1b8] sm:$0xff]  }
 0x1ab   : > { %7808 = vmatmul.mubr.msk.bf16.gmra.mrb[24].mxu1 %vm12483_vm0, %v10150_v21  ;;  %7162 = vmatpush3.bf16.msra.mxu0 %v8647_v3  ;;  %v12490_v3 = vld [vmem:[#allocation37_spill] sm:$0xff] }
 0x1ac   : > { %7811 = vmatprep.mubr.msk.bf16.mxu1 %vm12484_vm10, %v10216_v42  ;;  %7163 = vmatprep.subr.bf16.mxu0 %v8648_v30  ;;  %v12491_v30 = vld [vmem:[#allocation36_spill] sm:$0xff] }
 0x1ad   : > { %vm12492_vm9 = vnez %v12491_v30 }
 0x1ae   : > { %6318 = vmatmul.mubr.msk.bf16.gmra.mrb[76].mxu0 %vm12487_vm4, %v12485_v29 }
 0x1af   : > { %2615 = vmatprep.mubr.bf16.mxu0 %v12488_v40  ;;  %7164 = vmatpush3.bf16.msra.mxu0 %v8649_v34  ;;  %v12494_v34 = vld [vmem:[#allocation39_spill] sm:$0xff] }
 0x1b0   : > { %7165 = vmatprep.subr.bf16.mxu0 %v8650_v27  ;;  %v12495_v27 = vld [vmem:[#allocation42_spill] sm:$0xff] }
 0x1b1   : > { %vm12496_vm4 = vnez %v12495_v27 }
 0x1b3   : > { %7812 = vmatmul.mubr.msk.bf16.gmra.mrb[28].mxu1 %vm12489_vm8, %v10237_v53  ;;  %7166 = vmatpush3.bf16.msra.mxu0 %v8651_v36  ;;  %v12498_v36 = vld [vmem:[#allocation45_spill] sm:$0xff] }
 0x1b4   : > { %7831 = vmatprep.mubr.msk.bf16.mxu1 %vm9622_vm11, %v9635_v15  ;;  %v12497_v15 = vld [vmem:[#allocation43_spill] sm:$0xff] }
 0x1b6   : > { %6321 = vmatmul.mubr.msk.bf16.gmra.mrb[80].mxu0 %vm12492_vm9, %v12490_v3 }
 0x1b7   : > { %2623 = vmatprep.mubr.bf16.mxu0 %v12493_v63 }
 0x1bb   : > { %7832 = vmatmul.mubr.msk.bf16.vlgmr.msra.gmra.mrb[0].mxu1 %vm9683_vm15, %v9691_v0  ;;  %v12499_v0 = vld [vmem:[#allocation49_spill] sm:$0xff] }
 0x1bc   : > { %7835 = vmatprep.mubr.msk.bf16.mxu1 %vm9757_vm5, %v9764_v18  ;;  %vm12500_vm15 = vnez %v12499_v0  ;;  %v12502_v18 = vld [vmem:[#allocation53_spill] sm:$0xff] }
 0x1be   : > { %6324 = vmatmul.mubr.msk.bf16.gmra.mrb[84].mxu0 %vm12496_vm4, %v12494_v34 }
 0x1bf   : > { %2631 = vmatprep.mubr.bf16.mxu0 %v12497_v15 }
 0x1c3   : > { %7836 = vmatmul.mubr.msk.bf16.gmra.mrb[4].mxu1 %vm9770_vm6, %v9790_v25  ;;  %vm12503_vm6 = vnez %v12502_v18  ;;  %v12504_v25 = vld [vmem:[#allocation52_spill] sm:$0xff] }
 0x1c4   : > { %7839 = vmatprep.mubr.msk.bf16.mxu1 %vm9809_vm12, %v9852_v31  ;;  %v12505_v31 = vld [vmem:[#allocation55_spill] sm:$0xff] }
 0x1c6   : > { %6327 = vmatmul.mubr.msk.bf16.gmra.mrb[88].mxu0 %vm12500_vm15, %v12498_v36 }
 0x1c7   : > { %2639 = vmatprep.mubr.bf16.mxu0 %v12501_v57 }
 0x1cb   : > { %7840 = vmatmul.mubr.msk.bf16.gmra.mrb[8].mxu1 %vm9837_vm14, %v9876_v24  ;;  %v12506_v24 = vld [vmem:[#allocation58_spill] sm:$0xff] }
 0x1cc   : > { %7843 = vmatprep.mubr.msk.bf16.mxu1 %vm12468_vm1, %v9937_v9  ;;  %vm12507_vm14 = vnez %v12506_v24  ;;  %v12509_v9 = vld [vmem:[#allocation61_spill] sm:$0xff] }
 0x1ce   : > { %6330 = vmatmul.mubr.msk.bf16.gmra.mrb[92].mxu0 %vm12503_vm6, %v10134_v11 }
 0x1cf   : > { %2647 = vmatprep.mubr.bf16.mxu0 %v12504_v25 }
 0x1d3   : > { %7844 = vmatmul.mubr.msk.bf16.gmra.mrb[12].mxu1 %vm12469_vm13, %v9960_v16  ;;  %vm12510_vm13 = vnez %v12509_v9  ;;  %v12511_v16 = vld [vmem:[#allocation62_spill] sm:$0xff] }
 0x1d4   : > { %7847 = vmatprep.mubr.msk.bf16.mxu1 %vm12470_vm7, %v10025_v43  ;;  %v12512_v43 = vld [vmem:[#allocation65_spill] sm:$0xff] }
 0x1d6   : > { %6333 = vmatmul.mubr.msk.bf16.gmra.mrb[96].mxu0 %vm12507_vm14, %v12505_v31 }
 0x1d7   : > { %2655 = vmatprep.mubr.bf16.mxu0 %v12508_v46 }
 0x1db   : > { %7848 = vmatmul.mubr.msk.bf16.gmra.mrb[16].mxu1 %vm12477_vm3, %v12475_v35  ;;  %v12513_v35 = vld [vmem:[#allocation64_spill] sm:$0xff] }
 0x1dc   : > { %7851 = vmatprep.mubr.msk.bf16.mxu1 %vm12478_vm2, %v10128_v33  ;;  %vm12514_vm3 = vnez %v12513_v35 }
 0x1de   : > { %6336 = vmatmul.mubr.msk.bf16.gmra.mrb[100].mxu0 %vm12510_vm13, %v10283_v48 }
 0x1df   : > { %2663 = vmatprep.mubr.bf16.mxu0 %v12511_v16 }
 0x1e3   : > { %7852 = vmatmul.mubr.msk.bf16.gmra.mrb[20].mxu1 %vm12483_vm0, %v10150_v21  ;;  %v6895_v33 = vpop.f32.mrb[0].mxu0  ;;  %v12515_v21 = vld [vmem:[#allocation59_spill] sm:$0xff]  ;;  %vm12517_vm0 = vnez %v12516_v44 }
 0x1e4   : > { %7855 = vmatprep.mubr.msk.bf16.mxu1 %vm12484_vm10, %v10216_v42  ;;  %v6896_v58 = vpop.f32.mrb[1].mxu0  ;;  %vm12518_vm10 = vnez %v12445_v4 }
 0x1e5   : > { %v10624_v28 = vadd.f32 %v6896_v58, %v6895_v33  ;;  %v6898_v49 = vpop.f32.mrb[2].mxu0 }
 0x1e6   : > { %6339 = vmatmul.mubr.msk.bf16.gmra.mrb[104].mxu0 %vm12514_vm3, %v12512_v43  ;;  %v6899_v42 = vpop.f32.mrb[3].mxu0 }
 0x1e7   : > { %2671 = vmatprep.mubr.bf16.mxu0 %v10354_v23  ;;  %v10629_v17 = vadd.f32 %v6899_v42, %v6898_v49 }
 0x1eb   : > { %7856 = vmatmul.mubr.msk.bf16.gmra.mrb[24].mxu1 %vm12489_vm8, %v10237_v53  ;;  %v6901_v47 = vpop.f32.mrb[4].mxu0  ;;  %vm12521_vm8 = vnez %v12486_v19 }
 0x1ec   : > { %7859 = vmatprep.mubr.msk.bf16.mxu1 %vm12517_vm0, %v12515_v21  ;;  %v6902_v53 = vpop.f32.mrb[5].mxu0  ;;  %vm12520_vm0 = vnez %v12480_v20  ;;  %v8652_v20 = vld [vmem:[#allocation11 + $0x140] sm:$0xff]  }
 0x1ed   : > { %v10636_v58 = vadd.f32 %v6902_v53, %v6901_v47  ;;  %v6904_v33 = vpop.f32.mrb[6].mxu0  ;;  %7863 = vmatprep.subr.bf16.mxu1 %v8652_v20 }
 0x1ee   : > { %6342 = vmatmul.mubr.msk.bf16.gmra.mrb[108].mxu0 %vm12518_vm10, %v10401_v54  ;;  %v6905_v22 = vpop.f32.mrb[7].mxu0  ;;  %7864 = vmatpush3.bf16.msra.mxu1 %v8652_v20 }
 0x1ef   : > { %3146 = vmatprep.mubr.bf16.mxu0 %v12474_v32  ;;  %v10638_v38 = vadd.f32 %v6905_v22, %v6904_v33 }
 0x1f3   : > { %7860 = vmatmul.mubr.bf16.gmra.mrb[28].mxu1 %v12519_v12  ;;  %v6907_v49 = vpop.f32.mrb[8].mxu0 }
 0x1f4   : > { %v6908_v21 = vpop.f32.mrb[9].mxu0 }
 0x1f5   : > { %v10644_v42 = vadd.f32 %v6908_v21, %v6907_v49  ;;  %v6910_v32 = vpop.f32.mrb[10].mxu0 }
 0x1f6   : > { %6426 = vmatmul.mubr.msk.bf16.vlgmr.msra.gmra.mrb[112].mxu0 %vm12520_vm0, %v12479_v62  ;;  %v6911_v44 = vpop.f32.mrb[11].mxu0 }
 0x1f7   : > { %3154 = vmatprep.mubr.bf16.mxu0 %v12482_v37  ;;  %v10646_v7 = vadd.f32 %v6911_v44, %v6910_v32 }
 0x1fb   : > { %v6913_v22 = vpop.f32.mrb[12].mxu0 }
 0x1fc   : > { %v6914_v47 = vpop.f32.mrb[13].mxu0 }
 0x1fd   : > { %v10652_v53 = vadd.f32 %v6914_v47, %v6913_v22  ;;  %v6916_v62 = vpop.f32.mrb[14].mxu0 }
 0x1fe   : > { %6429 = vmatmul.mubr.msk.bf16.gmra.mrb[116].mxu0 %vm12521_vm8, %v12485_v29  ;;  %v6917_v37 = vpop.f32.mrb[15].mxu0 }
 0x1ff   : > { %3162 = vmatprep.mubr.bf16.mxu0 %v12488_v40  ;;  %v10654_v33 = vadd.f32 %v6917_v37, %v6916_v62 }
 0x203   : > { %v6919_v44 = vpop.f32.mrb[16].mxu0 }
 0x204   : > { %v6920_v49 = vpop.f32.mrb[17].mxu0 }
 0x205   : > { %v10660_v21 = vadd.f32 %v6920_v49, %v6919_v44  ;;  %v6922_v29 = vpop.f32.mrb[18].mxu0 }
 0x206   : > { %6432 = vmatmul.mubr.msk.bf16.gmra.mrb[120].mxu0 %vm12492_vm9, %v12490_v3  ;;  %v6923_v40 = vpop.f32.mrb[19].mxu0 }
 0x207   : > { %3170 = vmatprep.mubr.bf16.mxu0 %v12493_v63  ;;  %v10662_v32 = vadd.f32 %v6923_v40, %v6922_v29 }
 0x20b   : > { %v6925_v22 = vpop.f32.mrb[20].mxu0 }
 0x20c   : > { %v6926_v47 = vpop.f32.mrb[21].mxu0 }
 0x20d   : > { %v10668_v62 = vadd.f32 %v6926_v47, %v6925_v22  ;;  %v6928_v3 = vpop.f32.mrb[22].mxu0 }
 0x20e   : > { %6435 = vmatmul.mubr.msk.bf16.gmra.mrb[124].mxu0 %vm12496_vm4, %v12494_v34  ;;  %v6929_v63 = vpop.f32.mrb[23].mxu0 }
 0x20f   : > { %3178 = vmatprep.mubr.bf16.mxu0 %v12497_v15  ;;  %v10670_v37 = vadd.f32 %v6929_v63, %v6928_v3 }
 0x213   : > { %v6931_v44 = vpop.f32.mrb[24].mxu0 }
 0x214   : > { %v6932_v49 = vpop.f32.mrb[25].mxu0 }
 0x215   : > { %v10676_v29 = vadd.f32 %v6932_v49, %v6931_v44  ;;  %v6934_v34 = vpop.f32.mrb[26].mxu0 }
 0x216   : > { %6438 = vmatmul.mubr.msk.bf16.gmra.mrb[128].mxu0 %vm12500_vm15, %v12498_v36  ;;  %v6935_v15 = vpop.f32.mrb[27].mxu0 }
 0x217   : > { %3186 = vmatprep.mubr.bf16.mxu0 %v12501_v57  ;;  %v10678_v40 = vadd.f32 %v6935_v15, %v6934_v34 }
 0x21e   : > { %6441 = vmatmul.mubr.msk.bf16.gmra.mrb[132].mxu0 %vm12503_vm6, %v10134_v11 }
 0x21f   : > { %3194 = vmatprep.mubr.bf16.mxu0 %v12504_v25 }
 0x221   : > { %v6937_v22 = vpop.f32.mrb[28].mxu0 }
 0x222   : > { %v6938_v47 = vpop.f32.mrb[29].mxu0 }
 0x223   : > { %v10684_v3 = vadd.f32 %v6938_v47, %v6937_v22  ;;  %v6940_v36 = vpop.f32.mrb[30].mxu0 }
 0x224   : > { %v6941_v57 = vpop.f32.mrb[31].mxu0 }
 0x225   : > { %v10686_v63 = vadd.f32 %v6941_v57, %v6940_v36 }
 0x226   : > { %6444 = vmatmul.mubr.msk.bf16.gmra.mrb[136].mxu0 %vm12507_vm14, %v12505_v31 }
 0x227   : > { %3202 = vmatprep.mubr.bf16.mxu0 %v12508_v46 }
 0x229   : > { %v6943_v44 = vpop.f32.mrb[32].mxu0 }
 0x22a   : > { %v6944_v49 = vpop.f32.mrb[33].mxu0 }
 0x22b   : > { %v10692_v34 = vadd.f32 %v6944_v49, %v6943_v44  ;;  %v6946_v11 = vpop.f32.mrb[34].mxu0 }
 0x22c   : > { %v6947_v25 = vpop.f32.mrb[35].mxu0 }
 0x22d   : > { %v10694_v15 = vadd.f32 %v6947_v25, %v6946_v11 }
 0x22e   : > { %v7103_v22 = vpop.f32.mrb[32].mxu1  ;;  %6447 = vmatmul.mubr.msk.bf16.gmra.mrb[140].mxu0 %vm12510_vm13, %v10283_v48  ;;  %vm12553_vm13 = vcmp.lt.s32.totalorder %v9441_v6, 1 }
 0x22f   : > { %v7104_v47 = vpop.f32.mrb[33].mxu1  ;;  %3210 = vmatprep.mubr.bf16.mxu0 %v12511_v16 }
 0x230   : > { %v7105_v36 = vadd.f32 %v7104_v47, %v7103_v22  ;;  %v7106_v31 = vpop.f32.mrb[34].mxu1 }
 0x231   : > { %v7107_v57 = vpop.f32.mrb[35].mxu1  ;;  %v6949_v46 = vpop.f32.mrb[36].mxu0 }
 0x232   : > { %v7108_v24 = vadd.f32 %v7107_v57, %v7106_v31  ;;  %v6950_v18 = vpop.f32.mrb[37].mxu0 }
 0x233   : > { %v10700_v44 = vadd.f32 %v6950_v18, %v6949_v46  ;;  %v6952_v49 = vpop.f32.mrb[38].mxu0 }
 0x234   : > { %v6953_v0 = vpop.f32.mrb[39].mxu0 }
 0x235   : > { %v10702_v11 = vadd.f32 %v6953_v0, %v6952_v49 }
 0x236   : > { %v7109_v25 = vpop.f32.mrb[36].mxu1  ;;  %6450 = vmatmul.mubr.msk.bf16.gmra.mrb[144].mxu0 %vm12514_vm3, %v12512_v43  ;;  %vm12522_vm3 = vnez %v12426_v26  ;;  %v10835_v26 = vld [vmem:[#allocation11 + $0x80] sm:$0xff]  }
 0x237   : > { %v7110_v48 = vpop.f32.mrb[37].mxu1  ;;  %3218 = vmatprep.mubr.bf16.mxu0 %v10354_v23 }
 0x238   : > { %v7111_v16 = vadd.f32 %v7110_v48, %v7109_v25  ;;  %v7112_v22 = vpop.f32.mrb[38].mxu1 }
 0x239   : > { %v7113_v47 = vpop.f32.mrb[39].mxu1  ;;  %v6955_v9 = vpop.f32.mrb[40].mxu0 }
 0x23a   : > { %v7114_v31 = vadd.f32 %v7113_v47, %v7112_v22  ;;  %v6956_v57 = vpop.f32.mrb[41].mxu0 }
 0x23b   : > { %v10708_v18 = vadd.f32 %v6956_v57, %v6955_v9  ;;  %v6958_v46 = vpop.f32.mrb[42].mxu0 }
 0x23c   : > { %v6959_v27 = vpop.f32.mrb[43].mxu0 }
 0x23d   : > { %v10710_v0 = vadd.f32 %v6959_v27, %v6958_v46 }
 0x23e   : > { %v7115_v49 = vpop.f32.mrb[40].mxu1  ;;  %6453 = vmatmul.mubr.msk.bf16.gmra.mrb[148].mxu0 %vm12518_vm10, %v10401_v54  ;;  %vm12524_vm10 = vnez %v12440_v41 }
 0x23f   : > { %v7116_v43 = vpop.f32.mrb[41].mxu1  ;;  %3226 = vmatprep.mubr.bf16.mxu0 %v10272_v39 }
 0x240   : > { %v7117_v23 = vadd.f32 %v7116_v43, %v7115_v49  ;;  %v7118_v25 = vpop.f32.mrb[42].mxu1 }
 0x241   : > { %v7119_v48 = vpop.f32.mrb[43].mxu1  ;;  %v6961_v35 = vpop.f32.mrb[44].mxu0 }
 0x242   : > { %v7120_v22 = vadd.f32 %v7119_v48, %v7118_v25  ;;  %v6962_v47 = vpop.f32.mrb[45].mxu0 }
 0x243   : > { %v10716_v9 = vadd.f32 %v6962_v47, %v6961_v35  ;;  %v6964_v57 = vpop.f32.mrb[46].mxu0 }
 0x244   : > { %v6965_v30 = vpop.f32.mrb[47].mxu0 }
 0x245   : > { %v10718_v27 = vadd.f32 %v6965_v30, %v6964_v57 }
 0x246   : > { %v7121_v46 = vpop.f32.mrb[44].mxu1  ;;  %6456 = vmatmul.mubr.msk.bf16.gmra.mrb[152].mxu0 %vm12522_vm3, %v10308_v45 }
 0x247   : > { %v7122_v54 = vpop.f32.mrb[45].mxu1  ;;  %3234 = vmatprep.mubr.bf16.mxu0 %v10312_v2  ;;  %v8653_v2 = vld [vmem:[#allocation11 + $0x148] sm:$0xff]  }
 0x248   : > { %v7123_v39 = vadd.f32 %v7122_v54, %v7121_v46  ;;  %v7124_v49 = vpop.f32.mrb[46].mxu1  ;;  %7865 = vmatprep.subr.bf16.mxu1 %v8653_v2 }
 0x249   : > { %v7125_v43 = vpop.f32.mrb[47].mxu1  ;;  %v6967_v4 = vpop.f32.mrb[48].mxu0  ;;  %7866 = vmatpush3.bf16.msra.mxu1 %v8653_v2 }
 0x24a   : > { %v7126_v25 = vadd.f32 %v7125_v43, %v7124_v49  ;;  %v6968_v48 = vpop.f32.mrb[49].mxu0  ;;  %v8654_v43 = vld [vmem:[#allocation11 + $0x150] sm:$0xff]  }
 0x24b   : > { %v6969_v35 = vadd.f32 %v6968_v48, %v6967_v4  ;;  %v6970_v47 = vpop.f32.mrb[50].mxu0  ;;  %7867 = vmatprep.subr.bf16.mxu1 %v8654_v43 }
 0x24c   : > { %v6971_v19 = vpop.f32.mrb[51].mxu0 }
 0x24d   : > { %v10724_v30 = vadd.f32 %v7105_v36, %v6969_v35  ;;  %v6972_v57 = vadd.f32 %v6971_v19, %v6970_v47  ;;  %7868 = vmatpush3.bf16.msra.mxu1 %v8654_v43 }
 0x24e   : > { %6459 = vmatmul.mubr.msk.bf16.gmra.mrb[156].mxu0 %vm12524_vm10, %v10372_v52  ;;  %vm12527_vm10 = vnez %v12453_v14 }
 0x24f   : > { %12523 = vst [vmem:[#allocation26_spill] sm:$0xff] %v10724_v30  ;;  %v10729_v45 = vadd.f32 %v7108_v24, %v6972_v57  ;;  %3242 = vmatprep.mubr.bf16.mxu0 %v10386_v8  ;;  %v8655_v8 = vld [vmem:[#allocation11 + $0x158] sm:$0xff]   ;;  %v8656_v57 = vld [vmem:[#allocation11 + $0x160] sm:$0xff]  }
 0x250   : > { %7869 = vmatprep.subr.bf16.mxu1 %v8655_v8 }
 0x251   : > { %12525 = vst [vmem:[#allocation24_spill] sm:$0xff] %v10729_v45  ;;  %v6973_v46 = vpop.f32.mrb[52].mxu0  ;;  %7870 = vmatpush3.bf16.msra.mxu1 %v8655_v8 }
 0x252   : > { %v6974_v54 = vpop.f32.mrb[53].mxu0  ;;  %7871 = vmatprep.subr.bf16.mxu1 %v8656_v57 }
 0x253   : > { %v6975_v4 = vadd.f32 %v6974_v54, %v6973_v46  ;;  %v6976_v49 = vpop.f32.mrb[54].mxu0 }
 0x254   : > { %v6977_v36 = vpop.f32.mrb[55].mxu0 }
 0x255   : > { %v10732_v19 = vadd.f32 %v7111_v16, %v6975_v4  ;;  %v6978_v48 = vadd.f32 %v6977_v36, %v6976_v49  ;;  %7872 = vmatpush3.bf16.msra.mxu1 %v8656_v57  ;;  %v8658_v36 = vld [vmem:[#allocation11 + $0x170] sm:$0xff]  }
 0x256   : > { %6462 = vmatmul.mubr.msk.bf16.gmra.mrb[160].mxu0 %vm12527_vm10, %v10419_v61  ;;  %vm12530_vm10 = vnez %v12459_v59 }
 0x257   : > { %12526 = vst [vmem:[#allocation47_spill] sm:$0xff] %v10732_v19  ;;  %v10737_v52 = vadd.f32 %v7114_v31, %v6978_v48  ;;  %3250 = vmatprep.mubr.bf16.mxu0 %v10424_v1  ;;  %v8657_v1 = vld [vmem:[#allocation11 + $0x168] sm:$0xff]  }
 0x258   : > { %7873 = vmatprep.subr.bf16.mxu1 %v8657_v1 }
 0x259   : > { %12528 = vst [vmem:[#allocation28_spill] sm:$0xff] %v10737_v52  ;;  %v6979_v20 = vpop.f32.mrb[56].mxu0  ;;  %7874 = vmatpush3.bf16.msra.mxu1 %v8657_v1 }
 0x25a   : > { %v6980_v24 = vpop.f32.mrb[57].mxu0  ;;  %7875 = vmatprep.subr.bf16.mxu1 %v8658_v36 }
 0x25b   : > { %v6981_v35 = vadd.f32 %v6980_v24, %v6979_v20  ;;  %v6982_v47 = vpop.f32.mrb[58].mxu0 }
 0x25c   : > { %v6983_v16 = vpop.f32.mrb[59].mxu0 }
 0x25d   : > { %v10740_v2 = vadd.f32 %v7117_v23, %v6981_v35  ;;  %v6984_v46 = vadd.f32 %v6983_v16, %v6982_v47  ;;  %7876 = vmatpush3.bf16.msra.mxu1 %v8658_v36 }
 0x25e   : > { %6465 = vmatmul.mubr.msk.bf16.gmra.mrb[164].mxu0 %vm12530_vm10, %v10447_v5  ;;  %vm12533_vm10 = vnez %v12464_v51  ;;  %v8661_v51 = vld [vmem:[#allocation11 + $0xc0] sm:$0xff]  }
 0x25f   : > { %12529 = vst [vmem:[#allocation27_spill] sm:$0xff] %v10740_v2  ;;  %v10745_v61 = vadd.f32 %v7120_v22, %v6984_v46  ;;  %3258 = vmatprep.mubr.bf16.mxu0 %v10480_v10  ;;  %v8659_v10 = vld [vmem:[#allocation11 + $0x178] sm:$0xff]   ;;  %v8665_v2 = vld [vmem:[#allocation11 + $0xc8] sm:$0xff]  }
 0x260   : > { %7877 = vmatprep.subr.bf16.mxu1 %v8659_v10 }
 0x261   : > { %12531 = vst [vmem:[#allocation33_spill] sm:$0xff] %v10745_v61  ;;  %v6985_v31 = vpop.f32.mrb[60].mxu0  ;;  %7878 = vmatpush3.bf16.msra.mxu1 %v8659_v10  ;;  %v8663_v61 = vld [vmem:[#allocation11 + $0x108] sm:$0xff]  }
 0x262   : > { %v6986_v54 = vpop.f32.mrb[61].mxu0  ;;  %7911 = vmatprep.subr.bf16.mxu1 %v10835_v26 }
 0x263   : > { %v6987_v4 = vadd.f32 %v6986_v54, %v6985_v31  ;;  %v6988_v49 = vpop.f32.mrb[62].mxu0 }
 0x264   : > { %v6989_v23 = vpop.f32.mrb[63].mxu0 }
 0x265   : > { %v10748_v43 = vadd.f32 %v7123_v39, %v6987_v4  ;;  %v6990_v48 = vadd.f32 %v6989_v23, %v6988_v49 }
 0x266   : > { %6468 = vmatmul.mubr.msk.bf16.gmra.mrb[168].mxu0 %vm12533_vm10, %v10504_v55  ;;  %vm12550_vm10 = vcmp.lt.s32.totalorder %v9441_v6, 1 }
 0x267   : > { %12532 = vst [vmem:[#allocation30_spill] sm:$0xff] %v10748_v43  ;;  %v10753_v5 = vadd.f32 %v7126_v25, %v6990_v48  ;;  %3266 = vmatprep.mubr.bf16.mxu0 %v12519_v12 }
 0x269   : > { %12534 = vst [vmem:[#allocation37_spill] sm:$0xff] %v10753_v5  ;;  %v7031_v22 = vpop.f32.mrb[64].mxu0 }
 0x26a   : > { %v7032_v8 = vpop.f32.mrb[65].mxu0 }
 0x26b   : > { %v7033_v20 = vadd.f32 %v7032_v8, %v7031_v22  ;;  %v7034_v24 = vpop.f32.mrb[66].mxu0 }
 0x26c   : > { %v7035_v39 = vpop.f32.mrb[67].mxu0 }
 0x26d   : > { %v10757_v35 = vadd.f32 %v7033_v20, %v10624_v28  ;;  %v7036_v47 = vadd.f32 %v7035_v39, %v7034_v24 }
 0x26e   : > { %3267 = vmatmul.mubr.bf16.gmra.mrb[172].mxu0 %v12519_v12 }
 0x26f   : > { %v10761_v55 = vadd.f32 %v7036_v47, %v10629_v17 }
 0x271   : > { %v7037_v25 = vpop.f32.mrb[68].mxu0 }
 0x272   : > { %v7038_v16 = vpop.f32.mrb[69].mxu0 }
 0x273   : > { %v7039_v57 = vadd.f32 %v7038_v16, %v7037_v25  ;;  %v7040_v46 = vpop.f32.mrb[70].mxu0 }
 0x274   : > { %v7041_v1 = vpop.f32.mrb[71].mxu0 }
 0x275   : > { %v10764_v31 = vadd.f32 %v7039_v57, %v10636_v58  ;;  %v7042_v54 = vadd.f32 %v7041_v1, %v7040_v46 }
 0x277   : > { %v10767_v4 = vadd.f32 %v7042_v54, %v10638_v38 }
 0x279   : > { %v7043_v28 = vpop.f32.mrb[72].mxu0 }
 0x27a   : > { %v7044_v49 = vpop.f32.mrb[73].mxu0 }
 0x27b   : > { %v7045_v23 = vadd.f32 %v7044_v49, %v7043_v28  ;;  %v7046_v36 = vpop.f32.mrb[74].mxu0 }
 0x27c   : > { %v7047_v48 = vpop.f32.mrb[75].mxu0 }
 0x27d   : > { %v10770_v17 = vadd.f32 %v7045_v23, %v10644_v42  ;;  %v7048_v10 = vadd.f32 %v7047_v48, %v7046_v36 }
 0x27f   : > { %v10773_v22 = vadd.f32 %v7048_v10, %v10646_v7 }
 0x281   : > { %v7049_v8 = vpop.f32.mrb[76].mxu0 }
 0x282   : > { %v7050_v20 = vpop.f32.mrb[77].mxu0 }
 0x283   : > { %v7051_v58 = vadd.f32 %v7050_v20, %v7049_v8  ;;  %v7052_v24 = vpop.f32.mrb[78].mxu0 }
 0x284   : > { %v7053_v39 = vpop.f32.mrb[79].mxu0 }
 0x285   : > { %v10776_v38 = vadd.f32 %v7051_v58, %v10652_v53  ;;  %v7054_v47 = vadd.f32 %v7053_v39, %v7052_v24 }
 0x287   : > { %v10779_v25 = vadd.f32 %v7054_v47, %v10654_v33 }
 0x289   : > { %v7055_v16 = vpop.f32.mrb[80].mxu0 }
 0x28a   : > { %v7056_v57 = vpop.f32.mrb[81].mxu0 }
 0x28b   : > { %v7057_v42 = vadd.f32 %v7056_v57, %v7055_v16  ;;  %v7058_v46 = vpop.f32.mrb[82].mxu0 }
 0x28c   : > { %v7059_v1 = vpop.f32.mrb[83].mxu0 }
 0x28d   : > { %v10784_v7 = vadd.f32 %v7057_v42, %v10660_v21  ;;  %v7060_v28 = vadd.f32 %v7059_v1, %v7058_v46 }
 0x28e   : > { %v10781_v54 = vpop.f32.mrb[0].mxu1 }
 0x28f   : > { %v10786_v49 = vpop.f32.mrb[1].mxu1  ;;  %v10791_v53 = vadd.f32 %v7060_v28, %v10662_v32 }
 0x290   : > { %v10788_v23 = vpop.f32.mrb[2].mxu1 }
 0x291   : > { %v10793_v33 = vpop.f32.mrb[3].mxu1  ;;  %v7061_v36 = vpop.f32.mrb[84].mxu0 }
 0x292   : > { %v7062_v48 = vpop.f32.mrb[85].mxu0 }
 0x293   : > { %v7063_v10 = vadd.f32 %v7062_v48, %v7061_v36  ;;  %v7064_v8 = vpop.f32.mrb[86].mxu0 }
 0x294   : > { %v7065_v20 = vpop.f32.mrb[87].mxu0 }
 0x295   : > { %v10798_v21 = vadd.f32 %v7063_v10, %v10668_v62  ;;  %v7066_v24 = vadd.f32 %v7065_v20, %v7064_v8 }
 0x296   : > { %v10795_v58 = vpop.f32.mrb[4].mxu1 }
 0x297   : > { %v10800_v39 = vpop.f32.mrb[5].mxu1  ;;  %v10805_v32 = vadd.f32 %v7066_v24, %v10670_v37  ;;  %v8660_v24 = vld [vmem:[#allocation11 + $0x100] sm:$0xff]  }
 0x298   : > { %v10802_v47 = vpop.f32.mrb[6].mxu1  ;;  %7287 = vmatprep.subr.bf16.mxu0 %v8660_v24 }
 0x299   : > { %v10807_v16 = vpop.f32.mrb[7].mxu1  ;;  %v7067_v57 = vpop.f32.mrb[88].mxu0  ;;  %7288 = vmatpush3.bf16.msra.mxu0 %v8661_v51 }
 0x29a   : > { %v7068_v42 = vpop.f32.mrb[89].mxu0  ;;  %7289 = vmatprep.subr.bf16.mxu0 %v8663_v61 }
 0x29b   : > { %v7069_v46 = vadd.f32 %v7068_v42, %v7067_v57  ;;  %v7070_v1 = vpop.f32.mrb[90].mxu0 }
 0x29c   : > { %v7071_v28 = vpop.f32.mrb[91].mxu0 }
 0x29d   : > { %v10812_v62 = vadd.f32 %v7069_v46, %v10676_v29  ;;  %v7072_v48 = vadd.f32 %v7071_v28, %v7070_v1  ;;  %7290 = vmatpush3.bf16.msra.mxu0 %v8665_v2 }
 0x29e   : > { %v10809_v36 = vpop.f32.mrb[8].mxu1 }
 0x29f   : > { %v10814_v10 = vpop.f32.mrb[9].mxu1  ;;  %v10819_v37 = vadd.f32 %v7072_v48, %v10678_v40 }
 0x2a0   : > { %v10816_v8 = vpop.f32.mrb[10].mxu1 }
 0x2a1   : > { %v10821_v20 = vpop.f32.mrb[11].mxu1  ;;  %v7073_v57 = vpop.f32.mrb[92].mxu0 }
 0x2a2   : > { %v7074_v42 = vpop.f32.mrb[93].mxu0 }
 0x2a3   : > { %v7075_v59 = vadd.f32 %v7074_v42, %v7073_v57  ;;  %v7076_v14 = vpop.f32.mrb[94].mxu0 }
 0x2a4   : > { %v7077_v29 = vpop.f32.mrb[95].mxu0 }
 0x2a5   : > { %v10826_v1 = vadd.f32 %v7075_v59, %v10684_v3  ;;  %v7078_v28 = vadd.f32 %v7077_v29, %v7076_v14 }
 0x2a6   : > { %v10823_v46 = vpop.f32.mrb[12].mxu1 }
 0x2a7   : > { %v10828_v41 = vpop.f32.mrb[13].mxu1  ;;  %v10833_v48 = vadd.f32 %v7078_v28, %v10686_v63 }
 0x2a8   : > { %v10830_v40 = vpop.f32.mrb[14].mxu1 }
 0x2a9   : > { %v10837_v24 = vpop.f32.mrb[15].mxu1  ;;  %v7079_v57 = vpop.f32.mrb[96].mxu0 }
 0x2aa   : > { %v7080_v51 = vpop.f32.mrb[97].mxu0 }
 0x2ab   : > { %v7081_v42 = vadd.f32 %v7080_v51, %v7079_v57  ;;  %v7082_v12 = vpop.f32.mrb[98].mxu0 }
 0x2ac   : > { %v7083_v59 = vpop.f32.mrb[99].mxu0 }
 0x2ad   : > { %v10843_v14 = vadd.f32 %v7081_v42, %v10692_v34  ;;  %v7084_v29 = vadd.f32 %v7083_v59, %v7082_v12 }
 0x2ae   : > { %v10840_v3 = vpop.f32.mrb[16].mxu1 }
 0x2af   : > { %12535 = vst [vmem:[#allocation38_spill] sm:$0xff] %v10840_v3  ;;  %v10845_v5 = vpop.f32.mrb[17].mxu1  ;;  %v10850_v28 = vadd.f32 %v7084_v29, %v10694_v15 }
 0x2b0   : > { %v10847_v63 = vpop.f32.mrb[18].mxu1 }
 0x2b1   : > { %12536 = vst [vmem:[#allocation39_spill] sm:$0xff] %v10847_v63  ;;  %v10852_v43 = vpop.f32.mrb[19].mxu1  ;;  %v7085_v57 = vpop.f32.mrb[100].mxu0 }
 0x2b2   : > { %v7086_v51 = vpop.f32.mrb[101].mxu0 }
 0x2b3   : > { %v7087_v52 = vadd.f32 %v7086_v51, %v7085_v57  ;;  %v7088_v19 = vpop.f32.mrb[102].mxu0 }
 0x2b4   : > { %v7089_v34 = vpop.f32.mrb[103].mxu0 }
 0x2b5   : > { %v10857_v12 = vadd.f32 %v7087_v52, %v10700_v44  ;;  %v7090_v59 = vadd.f32 %v7089_v34, %v7088_v19  ;;  %v8667_v34 = vld [vmem:[#allocation11 + $0x110] sm:$0xff]  }
 0x2b6   : > { %v10854_v42 = vpop.f32.mrb[20].mxu1  ;;  %7291 = vmatprep.subr.bf16.mxu0 %v8667_v34 }
 0x2b7   : > { %12537 = vst [vmem:[#allocation43_spill] sm:$0xff] %v10854_v42  ;;  %v10859_v45 = vpop.f32.mrb[21].mxu1  ;;  %v10864_v29 = vadd.f32 %v7090_v59, %v10702_v11  ;;  %v8669_v59 = vld [vmem:[#allocation11 + $0xd0] sm:$0xff]  }
 0x2b8   : > { %v10861_v15 = vpop.f32.mrb[22].mxu1  ;;  %7292 = vmatpush3.bf16.msra.mxu0 %v8669_v59 }
 0x2b9   : > { %12538 = vst [vmem:[#allocation45_spill] sm:$0xff] %v10861_v15  ;;  %v10866_v30 = vpop.f32.mrb[23].mxu1  ;;  %v7091_v61 = vpop.f32.mrb[104].mxu0 }
 0x2ba   : > { %12539 = vst [vmem:[#allocation48_spill] sm:$0xff] %v10866_v30  ;;  %v7092_v57 = vpop.f32.mrb[105].mxu0 }
 0x2bb   : > { %v7093_v51 = vadd.f32 %v7092_v57, %v7091_v61  ;;  %v7094_v2 = vpop.f32.mrb[106].mxu0 }
 0x2bc   : > { %v7095_v63 = vpop.f32.mrb[107].mxu0 }
 0x2bd   : > { %v10871_v44 = vadd.f32 %v7093_v51, %v10708_v18  ;;  %v7096_v19 = vadd.f32 %v7095_v63, %v7094_v2  ;;  %v8672_v51 = vld [vmem:[#allocation11 + $0xd8] sm:$0xff]  }
 0x2be   : > { %v10868_v3 = vpop.f32.mrb[24].mxu1 }
 0x2bf   : > { %12540 = vst [vmem:[#allocation52_spill] sm:$0xff] %v10868_v3  ;;  %v10873_v52 = vpop.f32.mrb[25].mxu1  ;;  %v10878_v11 = vadd.f32 %v7096_v19, %v10710_v0  ;;  %v8671_v3 = vld [vmem:[#allocation11 + $0x118] sm:$0xff]  }
 0x2c0   : > { %12541 = vst [vmem:[#allocation55_spill] sm:$0xff] %v10873_v52  ;;  %v10875_v15 = vpop.f32.mrb[26].mxu1  ;;  %7293 = vmatprep.subr.bf16.mxu0 %v8671_v3  ;;  %v8676_v52 = vld [vmem:[#allocation11 + $0x128] sm:$0xff]  }
 0x2c1   : > { %12542 = vst [vmem:[#allocation57_spill] sm:$0xff] %v10875_v15  ;;  %v10880_v42 = vpop.f32.mrb[27].mxu1  ;;  %v7097_v61 = vpop.f32.mrb[108].mxu0  ;;  %7294 = vmatpush3.bf16.msra.mxu0 %v8672_v51 }
 0x2c2   : > { %12543 = vst [vmem:[#allocation62_spill] sm:$0xff] %v10880_v42  ;;  %v7098_v57 = vpop.f32.mrb[109].mxu0  ;;  %v8673_v42 = vld [vmem:[#allocation11 + $0x120] sm:$0xff]  }
 0x2c3   : > { %v7099_v30 = vadd.f32 %v7098_v57, %v7097_v61  ;;  %v7100_v18 = vpop.f32.mrb[110].mxu0  ;;  %v8675_v61 = vld [vmem:[#allocation11 + $0xe0] sm:$0xff]   ;;  %7295 = vmatprep.subr.bf16.mxu0 %v8673_v42 }
 0x2c4   : > { %v7101_v63 = vpop.f32.mrb[111].mxu0 }
 0x2c5   : > { %v10885_v15 = vadd.f32 %v7099_v30, %v10716_v9  ;;  %v7102_v0 = vadd.f32 %v7101_v63, %v7100_v18  ;;  %7296 = vmatpush3.bf16.msra.mxu0 %v8675_v61  ;;  %v8677_v18 = vld [vmem:[#allocation11 + $0xe8] sm:$0xff]  }
 0x2c6   : > { %v10882_v2 = vpop.f32.mrb[28].mxu1  ;;  %7297 = vmatprep.subr.bf16.mxu0 %v8676_v52 }
 0x2c7   : > { %12544 = vst [vmem:[#allocation65_spill] sm:$0xff] %v10882_v2  ;;  %v10887_v19 = vpop.f32.mrb[29].mxu1  ;;  %v10892_v59 = vadd.f32 %v7102_v0, %v10718_v27  ;;  %v8678_v27 = vld [vmem:[#allocation11 + $0x130] sm:$0xff]  }
 0x2c8   : > { %12545 = vst [vmem:[#allocation59_spill] sm:$0xff] %v10887_v19  ;;  %v10889_v34 = vpop.f32.mrb[30].mxu1 }
 0x2c9   : > { %12546 = vst [vmem:[#allocation71_spill] sm:$0xff] %v10889_v34  ;;  %12547 = vst [vmem:[#allocation72_spill] sm:$0xff] %v10892_v59  ;;  %v10894_v57 = vpop.f32.mrb[31].mxu1  ;;  %v7167_v3 = vpop.f32.mrb[112].mxu0  ;;  %7298 = vmatpush3.bf16.msra.mxu0 %v8677_v18  ;;  %v10897_v34 = vld [vmem:[#allocation10] ss:$0 sm:$0xff] }
 0x2ca   : > { %12548 = vst [vmem:[#allocation73_spill] sm:$0xff] %v10894_v57  ;;  %v7168_v2 = vpop.f32.mrb[113].mxu0  ;;  %v8680_v57 = vld [vmem:[#allocation11 + $0xf0] sm:$0xff]   ;;  %7299 = vmatprep.subr.bf16.mxu0 %v8678_v27  ;;  %v8681_v59 = vld [vmem:[#allocation11 + $0x138] sm:$0xff]  }
 0x2cb   : > { %v7169_v9 = vadd.f32 %v7168_v2, %v7167_v3  ;;  %v7170_v30 = vpop.f32.mrb[114].mxu0 }
 0x2cc   : > { %v7171_v51 = vpop.f32.mrb[115].mxu0 }
 0x2cd   : > { %v8075_v63 = vadd.f32 %v10757_v35, %v7169_v9  ;;  %v7172_v19 = vadd.f32 %v7171_v51, %v7170_v30  ;;  %7300 = vmatpush3.bf16.msra.mxu0 %v8680_v57  ;;  %v8682_v51 = vld [vmem:[#allocation11 + $0xf8] sm:$0xff]  }
 0x2ce   : > { %7301 = vmatprep.subr.bf16.mxu0 %v8681_v59 }
 0x2cf   : > { %v8076_v0 = vadd.f32 %v8075_v63, %v10786_v49  ;;  %v8081_v42 = vadd.f32 %v10761_v55, %v7172_v19 }
 0x2d1   : > { %v3475_v61 = vadd.f32 %v8076_v0, %v10897_v34  ;;  %v8082_v2 = vadd.f32 %v8081_v42, %v10793_v33  ;;  %v7173_v3 = vpop.f32.mrb[116].mxu0  ;;  %7302 = vmatpush3.bf16.msra.mxu0 %v8682_v51 }
 0x2d2   : > { %v7174_v52 = vpop.f32.mrb[117].mxu0 }
 0x2d3   : > { %v10903_v35 = vmax.f32 %v3475_v61, 0.0  ;;  %v3476_v9 = vadd.f32 %v8082_v2, %v10897_v34  ;;  %v7175_v30 = vadd.f32 %v7174_v52, %v7173_v3  ;;  %v7176_v18 = vpop.f32.mrb[118].mxu0 }
 0x2d4   : > { %v7177_v49 = vpop.f32.mrb[119].mxu0 }
 0x2d5   : > { %v3508_v55 = vmax.f32 %v3476_v9, 0.0  ;;  %v8072_v19 = vadd.f32 %v10764_v31, %v7175_v30  ;;  %v7178_v63 = vadd.f32 %v7177_v49, %v7176_v18  ;;  %v12193_v33 = vrot.slane %v10903_v35, 7 }
 0x2d7   : > { %v3540_v27 = vrot.slane %v3508_v55, 7  ;;  %v8073_v57 = vadd.f32 %v8072_v19, %v10781_v54  ;;  %v10910_v0 = vpack.c.bf16 %v3508_v55, %v10903_v35  ;;  %v8078_v42 = vadd.f32 %v10767_v4, %v7178_v63 }
 0x2d8   : > { %v3636_v2 = vrot.slane %v3508_v55, 1  ;;  %v12195_v4 = vrot.slane %v10903_v35, 1 }
 0x2d9   : > { %12549 = vst [vmem:[#allocation74_spill] sm:$0xff] %v10910_v0  ;;  %v10917_v59 = vsel %vm12550_vm10, %v12193_v33, %v3540_v27  ;;  %v3477_v31 = vadd.f32 %v8073_v57, %v10897_v34  ;;  %v7179_v61 = vpop.f32.mrb[120].mxu0  ;;  %4292 = vmatprep.mubr.bf16.mxu0 %v10910_v0  ;;  %v8079_v3 = vadd.f32 %v8078_v42, %v10788_v23  ;;  %vm12551_vm10 = vcmp.lt.s32.totalorder %v9441_v6, 7 }
 0x2da   : > { %v7180_v54 = vpop.f32.mrb[121].mxu0  ;;  %v3697_v23 = vsel %vm12551_vm10, %v12195_v4, %v3636_v2  ;;  %vm12552_vm3 = vmmov %vm12551_vm10  ;;  %v12664_v6 = vmov 0.0|0.0  }
 0x2db   : > { %v3509_v52 = vmax.f32 %v3477_v31, 0.0  ;;  %v7181_v9 = vadd.f32 %v7180_v54, %v7179_v61  ;;  %v7182_v30 = vpop.f32.mrb[122].mxu0  ;;  %v3478_v18 = vadd.f32 %v8079_v3, %v10897_v34  ;;  %vm12554_vm10 = vmmov %vm12552_vm3 }
 0x2dc   : > { %v7183_v51 = vpop.f32.mrb[123].mxu0  ;;  %vm12556_vm14 = vmmov %vm12554_vm10 }
 0x2dd   : > { %v3541_v49 = vrot.slane %v3509_v52, 7  ;;  %v3637_v19 = vrot.slane %v3509_v52, 1  ;;  %v8087_v63 = vadd.f32 %v10770_v17, %v7181_v9  ;;  %v7184_v57 = vadd.f32 %v7183_v51, %v7182_v30  ;;  %vm12560_vm6 = vmmov %vm12556_vm14 }
 0x2de   : > { %v3510_v33 = vmax.f32 %v3478_v18, 0.0  ;;  %vm12564_vm15 = vmmov %vm12560_vm6 }
 0x2df   : > { %v8088_v55 = vadd.f32 %v8087_v63, %v10800_v39  ;;  %v8093_v42 = vadd.f32 %v10773_v22, %v7184_v57  ;;  %v3696_v31 = vsel %vm12552_vm3, %v3636_v2, %v3637_v19  ;;  %v3600_v61 = vsel %vm12553_vm13, %v3540_v27, %v3541_v49 }
 0x2e0   : > { %v3542_v3 = vrot.slane %v3510_v33, 7  ;;  %v3638_v54 = vrot.slane %v3510_v33, 1  ;;  %v10935_v17 = vpack.c.bf16 %v3696_v31, %v3697_v23  ;;  %v10937_v9 = vpack.c.bf16 %v3510_v33, %v3509_v52 }
 0x2e1   : > { %v3479_v30 = vadd.f32 %v8088_v55, %v10897_v34  ;;  %v8094_v18 = vadd.f32 %v8093_v42, %v10807_v16  ;;  %v7185_v51 = vpop.f32.mrb[124].mxu0  ;;  %vm12555_vm3 = vnez %v12268_v50 }
 0x2e2   : > { %v3695_v22 = vsel %vm12554_vm10, %v3637_v19, %v3638_v54  ;;  %v7186_v39 = vpop.f32.mrb[125].mxu0  ;;  %7879 = vmatprep.mubr.msk.bf16.mxu1 %vm12555_vm3, %v10935_v17  ;;  %v3599_v27 = vsel %vm12553_vm13, %v3541_v49, %v3542_v3 }
 0x2e3   : > { %v3511_v2 = vmax.f32 %v3479_v30, 0.0  ;;  %v3480_v33 = vadd.f32 %v8094_v18, %v10897_v34  ;;  %v7187_v52 = vadd.f32 %v7186_v39, %v7185_v51  ;;  %v7188_v63 = vpop.f32.mrb[126].mxu0  ;;  %v10949_v57 = vpack.c.bf16 %v3599_v27, %v3600_v61  ;;  %v8664_v61 = vld [vmem:[#allocation11 + $0x88] sm:$0xff]  }
 0x2e4   : > { %v7189_v16 = vpop.f32.mrb[127].mxu0 }
 0x2e5   : > { %v3543_v23 = vrot.slane %v3511_v2, 7  ;;  %v3639_v55 = vrot.slane %v3511_v2, 1  ;;  %v3512_v42 = vmax.f32 %v3480_v33, 0.0  ;;  %v8084_v19 = vadd.f32 %v10776_v38, %v7187_v52 }
 0x2e6   : > { %v7190_v31 = vadd.f32 %v7189_v16, %v7188_v63  ;;  %v8666_v16 = vld [vmem:[#allocation11 + $0x90] sm:$0xff]  }
 0x2e7   : > { %v3694_v4 = vsel %vm12554_vm10, %v3638_v54, %v3639_v55  ;;  %v3544_v0 = vrot.slane %v3512_v42, 7  ;;  %v3640_v50 = vrot.slane %v3512_v42, 1  ;;  %v8085_v49 = vadd.f32 %v8084_v19, %v10795_v58  ;;  %vm12557_vm10 = vmmov %vm12553_vm13 }
 0x2e8   : > { %v10955_v30 = vpack.c.bf16 %v3694_v4, %v3695_v22  ;;  %v8090_v18 = vadd.f32 %v10779_v25, %v7190_v31  ;;  %v10958_v51 = vpack.c.bf16 %v3512_v42, %v3511_v2  ;;  %v3598_v39 = vsel %vm12553_vm13, %v3542_v3, %v3543_v23  ;;  %vm12558_vm13 = vmmov %vm12557_vm10 }
 0x2e9   : > { %v3481_v38 = vadd.f32 %v8085_v49, %v10897_v34  ;;  %v7191_v27 = vpop.f32.mrb[128].mxu0  ;;  %v3693_v54 = vsel %vm12556_vm14, %v3639_v55, %v3640_v50  ;;  %v3597_v33 = vsel %vm12557_vm10, %v3543_v23, %v3544_v0  ;;  %vm12559_vm10 = vnez %v12287_v56  ;;  %vm12565_vm4 = vmmov %vm12558_vm13 }
 0x2ea   : > { %v8091_v58 = vadd.f32 %v8090_v18, %v10802_v47  ;;  %v7192_v4 = vpop.f32.mrb[129].mxu0  ;;  %7880 = vmatmul.mubr.msk.bf16.vlgmr.msra.gmra.mrb[48].mxu1 %vm9622_vm11, %v10955_v30  ;;  %v10971_v25 = vpack.c.bf16 %v3597_v33, %v3598_v39  ;;  %v8668_v33 = vld [vmem:[#allocation11 + $0x98] sm:$0xff]  }
 0x2eb   : > { %v3513_v22 = vmax.f32 %v3481_v38, 0.0  ;;  %v7193_v3 = vadd.f32 %v7192_v4, %v7191_v27  ;;  %v7194_v2 = vpop.f32.mrb[130].mxu0  ;;  %7912 = vmatpush3.bf16.msra.mxu1 %v10835_v26 }
 0x2ec   : > { %v3482_v52 = vadd.f32 %v8091_v58, %v10897_v34  ;;  %v7195_v63 = vpop.f32.mrb[131].mxu0  ;;  %7913 = vmatprep.subr.bf16.mxu1 %v8664_v61 }
 0x2ed   : > { %v3545_v23 = vrot.slane %v3513_v22, 7  ;;  %v3641_v55 = vrot.slane %v3513_v22, 1  ;;  %v8099_v47 = vadd.f32 %v10784_v7, %v7193_v3  ;;  %v7196_v42 = vadd.f32 %v7195_v63, %v7194_v2 }
 0x2ee   : > { %v3514_v19 = vmax.f32 %v3482_v52, 0.0  ;;  %v8670_v52 = vld [vmem:[#allocation11 + $0xa0] sm:$0xff]  }
 0x2ef   : > { %v8100_v31 = vadd.f32 %v8099_v47, %v10814_v10  ;;  %v8105_v49 = vadd.f32 %v10791_v53, %v7196_v42  ;;  %v3692_v18 = vsel %vm12556_vm14, %v3640_v50, %v3641_v55  ;;  %7914 = vmatpush3.bf16.msra.mxu1 %v8664_v61  ;;  %v3596_v26 = vsel %vm12558_vm13, %v3544_v0, %v3545_v23 }
 0x2f0   : > { %v3546_v39 = vrot.slane %v3514_v19, 7  ;;  %v3642_v38 = vrot.slane %v3514_v19, 1  ;;  %v10982_v27 = vpack.c.bf16 %v3692_v18, %v3693_v54  ;;  %7915 = vmatprep.subr.bf16.mxu1 %v8666_v16  ;;  %v10984_v7 = vpack.c.bf16 %v3514_v19, %v3513_v22 }
 0x2f1   : > { %v3483_v58 = vadd.f32 %v8100_v31, %v10897_v34  ;;  %v8106_v10 = vadd.f32 %v8105_v49, %v10821_v20  ;;  %v7197_v53 = vpop.f32.mrb[132].mxu0 }
 0x2f2   : > { %v7198_v4 = vpop.f32.mrb[133].mxu0  ;;  %7883 = vmatprep.mubr.msk.bf16.mxu1 %vm12559_vm10, %v10982_v27  ;;  %v3691_v50 = vsel %vm12556_vm14, %v3641_v55, %v3642_v38  ;;  %v3595_v0 = vsel %vm12558_vm13, %v3545_v23, %v3546_v39 }
 0x2f3   : > { %v3515_v61 = vmax.f32 %v3483_v58, 0.0  ;;  %v3484_v54 = vadd.f32 %v8106_v10, %v10897_v34  ;;  %v7199_v22 = vadd.f32 %v7198_v4, %v7197_v53  ;;  %v7200_v3 = vpop.f32.mrb[134].mxu0  ;;  %7916 = vmatpush3.bf16.msra.mxu1 %v8666_v16  ;;  %v10996_v2 = vpack.c.bf16 %v3595_v0, %v3596_v26  ;;  %v8674_v58 = vld [vmem:[#allocation11 + $0xa8] sm:$0xff]  }
 0x2f4   : > { %v7201_v20 = vpop.f32.mrb[135].mxu0  ;;  %7917 = vmatprep.subr.bf16.mxu1 %v8668_v33 }
 0x2f5   : > { %v3547_v63 = vrot.slane %v3515_v61, 7  ;;  %v3643_v47 = vrot.slane %v3515_v61, 1  ;;  %v3516_v42 = vmax.f32 %v3484_v54, 0.0  ;;  %v8096_v19 = vadd.f32 %v10798_v21, %v7199_v22 }
 0x2f6   : > { %v7202_v55 = vadd.f32 %v7201_v20, %v7200_v3  ;;  %v8679_v3 = vld [vmem:[#allocation11 + $0xb0] sm:$0xff]  }
 0x2f7   : > { %v3548_v31 = vrot.slane %v3516_v42, 7  ;;  %v3644_v49 = vrot.slane %v3516_v42, 1  ;;  %v8097_v23 = vadd.f32 %v8096_v19, %v10809_v36  ;;  %v3690_v18 = vsel %vm12556_vm14, %v3642_v38, %v3643_v47  ;;  %7918 = vmatpush3.bf16.msra.mxu1 %v8668_v33  ;;  %vm12561_vm14 = vmmov %vm12558_vm13 }
 0x2f8   : > { %v8102_v16 = vadd.f32 %v10805_v32, %v7202_v55  ;;  %v11003_v26 = vpack.c.bf16 %v3690_v18, %v3691_v50  ;;  %7919 = vmatprep.subr.bf16.mxu1 %v8670_v52  ;;  %v11005_v10 = vpack.c.bf16 %v3516_v42, %v3515_v61  ;;  %v3594_v21 = vsel %vm12558_vm13, %v3546_v39, %v3547_v63 }
 0x2f9   : > { %v3485_v53 = vadd.f32 %v8097_v23, %v10897_v34  ;;  %v7203_v4 = vpop.f32.mrb[136].mxu0  ;;  %v3689_v36 = vsel %vm12560_vm6, %v3643_v47, %v3644_v49  ;;  %v3593_v38 = vsel %vm12561_vm14, %v3547_v63, %v3548_v31 }
 0x2fa   : > { %v8103_v32 = vadd.f32 %v8102_v16, %v10816_v8  ;;  %v7204_v33 = vpop.f32.mrb[137].mxu0  ;;  %7884 = vmatmul.mubr.msk.bf16.gmra.mrb[52].mxu1 %vm9757_vm5, %v11003_v26  ;;  %v11018_v50 = vpack.c.bf16 %v3593_v38, %v3594_v21 }
 0x2fb   : > { %v3517_v0 = vmax.f32 %v3485_v53, 0.0  ;;  %v7205_v39 = vadd.f32 %v7204_v33, %v7203_v4  ;;  %v7206_v61 = vpop.f32.mrb[138].mxu0  ;;  %7920 = vmatpush3.bf16.msra.mxu1 %v8670_v52  ;;  %v8683_v53 = vld [vmem:[#allocation11 + $0xb8] sm:$0xff]  }
 0x2fc   : > { %v3486_v54 = vadd.f32 %v8103_v32, %v10897_v34  ;;  %v7207_v22 = vpop.f32.mrb[139].mxu0  ;;  %7921 = vmatprep.subr.bf16.mxu1 %v8674_v58 }
 0x2fd   : > { %v3549_v20 = vrot.slane %v3517_v0, 7  ;;  %v3645_v63 = vrot.slane %v3517_v0, 1  ;;  %v8111_v8 = vadd.f32 %v10812_v62, %v7205_v39  ;;  %v7208_v47 = vadd.f32 %v7207_v22, %v7206_v61  ;;  %v8684_v61 = vld [vmem:[#allocation11 + $0x1c0] sm:$0xff]  }
 0x2fe   : > { %v3518_v42 = vmax.f32 %v3486_v54, 0.0 }
 0x2ff   : > { %v8112_v19 = vadd.f32 %v8111_v8, %v10828_v41  ;;  %v8117_v55 = vadd.f32 %v10819_v37, %v7208_v47  ;;  %v3688_v23 = vsel %vm12560_vm6, %v3644_v49, %v3645_v63  ;;  %7922 = vmatpush3.bf16.msra.mxu1 %v8674_v58  ;;  %v3592_v52 = vsel %vm12558_vm13, %v3548_v31, %v3549_v20  ;;  %v12562_v49 = vld [vmem:[#allocation31_spill] sm:$0xff] }
 0x300   : > { %v3550_v18 = vrot.slane %v3518_v42, 7  ;;  %v3646_v16 = vrot.slane %v3518_v42, 1  ;;  %v11028_v21 = vpack.c.bf16 %v3688_v23, %v3689_v36  ;;  %7923 = vmatprep.subr.bf16.mxu1 %v8679_v3  ;;  %v11030_v62 = vpack.c.bf16 %v3518_v42, %v3517_v0 }
 0x301   : > { %v3487_v4 = vadd.f32 %v8112_v19, %v10897_v34  ;;  %v8118_v41 = vadd.f32 %v8117_v55, %v10837_v24  ;;  %v7209_v37 = vpop.f32.mrb[140].mxu0  ;;  %vm12563_vm14 = vnez %v12562_v49 }
 0x302   : > { %v7210_v38 = vpop.f32.mrb[141].mxu0  ;;  %7887 = vmatprep.mubr.msk.bf16.mxu1 %vm12563_vm14, %v11028_v21  ;;  %v3687_v31 = vsel %vm12560_vm6, %v3645_v63, %v3646_v16  ;;  %v3591_v58 = vsel %vm12558_vm13, %v3549_v20, %v3550_v18 }
 0x303   : > { %v3519_v36 = vmax.f32 %v3487_v4, 0.0  ;;  %v3488_v32 = vadd.f32 %v8118_v41, %v10897_v34  ;;  %v7211_v33 = vadd.f32 %v7210_v38, %v7209_v37  ;;  %v7212_v0 = vpop.f32.mrb[142].mxu0  ;;  %7924 = vmatpush3.bf16.msra.mxu1 %v8679_v3  ;;  %v11042_v39 = vpack.c.bf16 %v3591_v58, %v3592_v52  ;;  %v12566_v37 = vld [vmem:[#allocation34_spill] sm:$0xff] }
 0x304   : > { %v7213_v24 = vpop.f32.mrb[143].mxu0  ;;  %7925 = vmatprep.subr.bf16.mxu1 %v8683_v53 }
 0x305   : > { %v3551_v54 = vrot.slane %v3519_v36, 7  ;;  %v3647_v22 = vrot.slane %v3519_v36, 1  ;;  %v3520_v8 = vmax.f32 %v3488_v32, 0.0  ;;  %v8108_v47 = vadd.f32 %v10826_v1, %v7211_v33 }
 0x306   : > { %v7214_v63 = vadd.f32 %v7213_v24, %v7212_v0 }
 0x307   : > { %v3552_v42 = vrot.slane %v3520_v8, 7  ;;  %v3648_v19 = vrot.slane %v3520_v8, 1  ;;  %v8109_v20 = vadd.f32 %v8108_v47, %v10823_v46  ;;  %v3686_v55 = vsel %vm12560_vm6, %v3646_v16, %v3647_v22  ;;  %7926 = vmatpush3.bf16.msra.mxu1 %v8683_v53 }
 0x308   : > { %v8114_v3 = vadd.f32 %v10833_v48, %v7214_v63  ;;  %v11049_v23 = vpack.c.bf16 %v3686_v55, %v3687_v31  ;;  %7559 = vmatprep.subr.bf16.mxu1 %v8684_v61  ;;  %v11051_v52 = vpack.c.bf16 %v3520_v8, %v3519_v36  ;;  %v3590_v4 = vsel %vm12558_vm13, %v3550_v18, %v3551_v54 }
 0x309   : > { %v3489_v1 = vadd.f32 %v8109_v20, %v10897_v34  ;;  %v7215_v41 = vpop.f32.mrb[144].mxu0  ;;  %v3685_v46 = vsel %vm12564_vm15, %v3647_v22, %v3648_v19  ;;  %v3589_v16 = vsel %vm12565_vm4, %v3551_v54, %v3552_v42  ;;  %vm12567_vm15 = vmmov %vm12560_vm6 }
 0x30a   : > { %v8115_v53 = vadd.f32 %v8114_v3, %v10830_v40  ;;  %v7216_v48 = vpop.f32.mrb[145].mxu0  ;;  %7888 = vmatmul.mubr.msk.bf16.gmra.mrb[56].mxu1 %vm9809_vm12, %v11049_v23  ;;  %v11064_v38 = vpack.c.bf16 %v3589_v16, %v3590_v4  ;;  %vm12571_vm13 = vmmov %vm12567_vm15 }
 0x30b   : > { %v3521_v31 = vmax.f32 %v3489_v1, 0.0  ;;  %v7217_v18 = vadd.f32 %v7216_v48, %v7215_v41  ;;  %v7218_v58 = vpop.f32.mrb[146].mxu0 }
 0x30c   : > { %v3490_v36 = vadd.f32 %v8115_v53, %v10897_v34  ;;  %v7219_v32 = vpop.f32.mrb[147].mxu0 }
 0x30d   : > { %v3553_v33 = vrot.slane %v3521_v31, 7  ;;  %v3649_v0 = vrot.slane %v3521_v31, 1  ;;  %v8123_v24 = vadd.f32 %v10843_v14, %v7217_v18  ;;  %v7220_v61 = vadd.f32 %v7219_v32, %v7218_v58  ;;  %v8698_v32 = vld [vmem:[#allocation11 + $0x40] sm:$0xff]  }
 0x30e   : > { %v3522_v54 = vmax.f32 %v3490_v36, 0.0  ;;  %7423 = vmatprep.subr.bf16.mxu0 %v8698_v32 }
 0x30f   : > { %v8124_v40 = vadd.f32 %v8123_v24, %v10845_v5  ;;  %v8129_v22 = vadd.f32 %v10850_v28, %v7220_v61  ;;  %v3684_v8 = vsel %vm12567_vm15, %v3648_v19, %v3649_v0  ;;  %v3588_v47 = vsel %vm12565_vm4, %v3552_v42, %v3553_v33  ;;  %v12569_v28 = vld [vmem:[#allocation35_spill] sm:$0xff]  ;;  %vm12572_vm15 = vmmov %vm12565_vm4 }
 0x310   : > { %v3554_v63 = vrot.slane %v3522_v54, 7  ;;  %v3650_v20 = vrot.slane %v3522_v54, 1  ;;  %v11074_v55 = vpack.c.bf16 %v3684_v8, %v3685_v46  ;;  %v11076_v3 = vpack.c.bf16 %v3522_v54, %v3521_v31  ;;  %v12574_v54 = vld [vmem:[#allocation38_spill] sm:$0xff]  ;;  %vm12575_vm4 = vmmov %vm12571_vm13 }
 0x311   : > { %v3491_v14 = vadd.f32 %v8124_v40, %v10897_v34  ;;  %v8130_v4 = vadd.f32 %v8129_v22, %v10852_v43  ;;  %v7221_v1 = vpop.f32.mrb[148].mxu0  ;;  %vm12570_vm6 = vnez %v12569_v28 }
 0x312   : > { %12568 = vst [vmem:[#allocation31_spill] sm:$0xff] %v11076_v3  ;;  %v7222_v5 = vpop.f32.mrb[149].mxu0  ;;  %7891 = vmatprep.mubr.msk.bf16.mxu1 %vm12570_vm6, %v11074_v55  ;;  %v3683_v19 = vsel %vm12571_vm13, %v3649_v0, %v3650_v20  ;;  %v3587_v42 = vsel %vm12572_vm15, %v3553_v33, %v3554_v63  ;;  %vm12577_vm13 = vmmov %vm12572_vm15 }
 0x313   : > { %v3523_v41 = vmax.f32 %v3491_v14, 0.0  ;;  %v3492_v46 = vadd.f32 %v8130_v4, %v10897_v34  ;;  %v7223_v16 = vadd.f32 %v7222_v5, %v7221_v1  ;;  %v7224_v53 = vpop.f32.mrb[150].mxu0  ;;  %v11088_v48 = vpack.c.bf16 %v3587_v42, %v3588_v47  ;;  %vm12578_vm15 = vmmov %vm12575_vm4 }
 0x314   : > { %v7225_v43 = vpop.f32.mrb[151].mxu0  ;;  %vm12579_vm6 = vmmov %vm12577_vm13 }
 0x315   : > { %12573 = vst [vmem:[#allocation34_spill] sm:$0xff] %v11088_v48  ;;  %v3555_v31 = vrot.slane %v3523_v41, 7  ;;  %v3651_v18 = vrot.slane %v3523_v41, 1  ;;  %v3524_v58 = vmax.f32 %v3492_v46, 0.0  ;;  %v8120_v36 = vadd.f32 %v10857_v12, %v7223_v16 }
 0x316   : > { %v7226_v24 = vadd.f32 %v7225_v43, %v7224_v53 }
 0x317   : > { %v3556_v61 = vrot.slane %v3524_v58, 7  ;;  %v3652_v0 = vrot.slane %v3524_v58, 1  ;;  %v8121_v40 = vadd.f32 %v8120_v36, %v12574_v54  ;;  %v3682_v33 = vsel %vm12575_vm4, %v3650_v20, %v3651_v18  ;;  %v12580_v20 = vld [vmem:[#allocation39_spill] sm:$0xff] }
 0x318   : > { %v8126_v22 = vadd.f32 %v10864_v29, %v7226_v24  ;;  %v11095_v8 = vpack.c.bf16 %v3682_v33, %v3683_v19  ;;  %v11097_v47 = vpack.c.bf16 %v3524_v58, %v3523_v41  ;;  %v3586_v14 = vsel %vm12577_vm13, %v3554_v63, %v3555_v31  ;;  %v12581_v29 = vld [vmem:[#allocation40_spill] sm:$0xff] }
 0x319   : > { %v3493_v12 = vadd.f32 %v8121_v40, %v10897_v34  ;;  %v7227_v4 = vpop.f32.mrb[152].mxu0  ;;  %v3681_v1 = vsel %vm12578_vm15, %v3651_v18, %v3652_v0  ;;  %v3585_v5 = vsel %vm12579_vm6, %v3555_v31, %v3556_v61  ;;  %vm12583_vm6 = vmmov %vm12575_vm4 }
 0x31a   : > { %12576 = vst [vmem:[#allocation35_spill] sm:$0xff] %v11097_v47  ;;  %v8127_v42 = vadd.f32 %v8126_v22, %v12580_v20  ;;  %v7228_v46 = vpop.f32.mrb[153].mxu0  ;;  %7892 = vmatmul.mubr.msk.bf16.gmra.mrb[60].mxu1 %vm12468_vm1, %v11095_v8  ;;  %v11110_v19 = vpack.c.bf16 %v3585_v5, %v3586_v14  ;;  %vm12584_vm4 = vmmov %vm12577_vm13  ;;  %v12587_v5 = vld [vmem:[#allocation48_spill] sm:$0xff] }
 0x31b   : > { %v3525_v41 = vmax.f32 %v3493_v12, 0.0  ;;  %v7229_v63 = vadd.f32 %v7228_v46, %v7227_v4  ;;  %v7230_v16 = vpop.f32.mrb[154].mxu0  ;;  %vm12590_vm15 = vmmov %vm12583_vm6 }
 0x31c   : > { %12582 = vst [vmem:[#allocation38_spill] sm:$0xff] %v11110_v19  ;;  %v3494_v53 = vadd.f32 %v8127_v42, %v10897_v34  ;;  %v7231_v43 = vpop.f32.mrb[155].mxu0 }
 0x31d   : > { %v3557_v58 = vrot.slane %v3525_v41, 7  ;;  %v3653_v18 = vrot.slane %v3525_v41, 1  ;;  %v8135_v36 = vadd.f32 %v10871_v44, %v7229_v63  ;;  %v7232_v31 = vadd.f32 %v7231_v43, %v7230_v16 }
 0x31e   : > { %v3526_v32 = vmax.f32 %v3494_v53, 0.0 }
 0x31f   : > { %v8136_v24 = vadd.f32 %v8135_v36, %v10859_v45  ;;  %v8141_v54 = vadd.f32 %v10878_v11, %v7232_v31  ;;  %v3680_v40 = vsel %vm12583_vm6, %v3652_v0, %v3653_v18  ;;  %v3584_v33 = vsel %vm12584_vm4, %v3556_v61, %v3557_v58  ;;  %v12588_v11 = vld [vmem:[#allocation41_spill] sm:$0xff]  ;;  %vm12591_vm6 = vmmov %vm12584_vm4 }
 0x320   : > { %v3558_v22 = vrot.slane %v3526_v32, 7  ;;  %v3654_v14 = vrot.slane %v3526_v32, 1  ;;  %v11120_v12 = vpack.c.bf16 %v3680_v40, %v3681_v1  ;;  %v11122_v4 = vpack.c.bf16 %v3526_v32, %v3525_v41  ;;  %vm12594_vm4 = vmmov %vm12590_vm15 }
 0x321   : > { %v3495_v44 = vadd.f32 %v8136_v24, %v10897_v34  ;;  %v8142_v20 = vadd.f32 %v8141_v54, %v12587_v5  ;;  %v7233_v42 = vpop.f32.mrb[156].mxu0  ;;  %vm12589_vm13 = vnez %v12588_v11 }
 0x322   : > { %12585 = vst [vmem:[#allocation39_spill] sm:$0xff] %v11120_v12  ;;  %12586 = vst [vmem:[#allocation40_spill] sm:$0xff] %v11122_v4  ;;  %v7234_v45 = vpop.f32.mrb[157].mxu0  ;;  %7895 = vmatprep.mubr.msk.bf16.mxu1 %vm12589_vm13, %v11120_v12  ;;  %v3679_v0 = vsel %vm12590_vm15, %v3653_v18, %v3654_v14  ;;  %v3583_v61 = vsel %vm12591_vm6, %v3557_v58, %v3558_v22  ;;  %v12593_v18 = vld [vmem:[#allocation43_spill] sm:$0xff] }
 0x323   : > { %v3527_v1 = vmax.f32 %v3495_v44, 0.0  ;;  %v3496_v46 = vadd.f32 %v8142_v20, %v10897_v34  ;;  %v7235_v41 = vadd.f32 %v7234_v45, %v7233_v42  ;;  %v7236_v63 = vpop.f32.mrb[158].mxu0  ;;  %v11134_v16 = vpack.c.bf16 %v3583_v61, %v3584_v33  ;;  %v12595_v44 = vld [vmem:[#allocation72_spill] sm:$0xff]  ;;  %vm12598_vm15 = vmmov %vm12591_vm6 }
 0x324   : > { %v7237_v53 = vpop.f32.mrb[159].mxu0  ;;  %vm12599_vm6 = vmmov %vm12594_vm4 }
 0x325   : > { %12592 = vst [vmem:[#allocation48_spill] sm:$0xff] %v11134_v16  ;;  %v3559_v43 = vrot.slane %v3527_v1, 7  ;;  %v3655_v36 = vrot.slane %v3527_v1, 1  ;;  %v3528_v31 = vmax.f32 %v3496_v46, 0.0  ;;  %v8132_v32 = vadd.f32 %v10885_v15, %v7235_v41  ;;  %vm12600_vm13 = vmmov %vm12598_vm15  ;;  %v12606_v16 = vld [vmem:[#allocation24_spill] sm:$0xff] }
 0x326   : > { %v7238_v24 = vadd.f32 %v7237_v53, %v7236_v63  ;;  %v12601_v63 = vld [vmem:[#allocation45_spill] sm:$0xff] }
 0x327   : > { %v3560_v54 = vrot.slane %v3528_v31, 7  ;;  %v3656_v40 = vrot.slane %v3528_v31, 1  ;;  %v8133_v5 = vadd.f32 %v8132_v32, %v12593_v18  ;;  %v3678_v58 = vsel %vm12594_vm4, %v3654_v14, %v3655_v36 }
 0x328   : > { %v8138_v20 = vadd.f32 %v12595_v44, %v7238_v24  ;;  %v11141_v42 = vpack.c.bf16 %v3678_v58, %v3679_v0  ;;  %v11143_v33 = vpack.c.bf16 %v3528_v31, %v3527_v1  ;;  %v3582_v45 = vsel %vm12598_vm15, %v3558_v22, %v3559_v43  ;;  %v12604_v58 = vld [vmem:[#allocation26_spill] sm:$0xff] }
 0x329   : > { %v3497_v61 = vadd.f32 %v8133_v5, %v10897_v34  ;;  %v7239_v15 = vpop.f32.mrb[160].mxu0  ;;  %v3677_v46 = vsel %vm12599_vm6, %v3655_v36, %v3656_v40  ;;  %v3581_v41 = vsel %vm12600_vm13, %v3559_v43, %v3560_v54  ;;  %vm12607_vm13 = vmmov %vm12594_vm4 }
 0x32a   : > { %12596 = vst [vmem:[#allocation43_spill] sm:$0xff] %v11141_v42  ;;  %12597 = vst [vmem:[#allocation72_spill] sm:$0xff] %v11143_v33  ;;  %v8139_v14 = vadd.f32 %v8138_v20, %v12601_v63  ;;  %v7240_v53 = vpop.f32.mrb[161].mxu0  ;;  %7896 = vmatmul.mubr.msk.bf16.gmra.mrb[64].mxu1 %vm12470_vm7, %v11141_v42  ;;  %v11156_v1 = vpack.c.bf16 %v3581_v41, %v3582_v45  ;;  %v12605_v20 = vld [vmem:[#allocation55_spill] sm:$0xff] }
 0x32b   : > { %v3529_v31 = vmax.f32 %v3497_v61, 0.0  ;;  %v7241_v22 = vadd.f32 %v7240_v53, %v7239_v15  ;;  %v7242_v32 = vpop.f32.mrb[162].mxu0  ;;  %vm12608_vm4 = vmmov %vm12598_vm15 }
 0x32c   : > { %12603 = vst [vmem:[#allocation45_spill] sm:$0xff] %v11156_v1  ;;  %v3498_v24 = vadd.f32 %v8139_v14, %v10897_v34  ;;  %v7243_v18 = vpop.f32.mrb[163].mxu0 }
 0x32d   : > { %v3561_v5 = vrot.slane %v3529_v31, 7  ;;  %v3657_v36 = vrot.slane %v3529_v31, 1  ;;  %v8147_v44 = vadd.f32 %v12604_v58, %v7241_v22  ;;  %v7244_v43 = vadd.f32 %v7243_v18, %v7242_v32  ;;  %v12611_v32 = vld [vmem:[#allocation62_spill] sm:$0xff] }
 0x32e   : > { %v3530_v33 = vmax.f32 %v3498_v24, 0.0 }
 0x32f   : > { %v8148_v63 = vadd.f32 %v8147_v44, %v12605_v20  ;;  %v8153_v4 = vadd.f32 %v12606_v16, %v7244_v43  ;;  %v3676_v45 = vsel %vm12607_vm13, %v3656_v40, %v3657_v36  ;;  %v3580_v61 = vsel %vm12608_vm4, %v3560_v54, %v3561_v5  ;;  %v12612_v16 = vld [vmem:[#allocation46_spill] sm:$0xff]  ;;  %vm12614_vm13 = vmmov %vm12608_vm4 }
 0x330   : > { %v3562_v15 = vrot.slane %v3530_v33, 7  ;;  %v3658_v41 = vrot.slane %v3530_v33, 1  ;;  %v11166_v14 = vpack.c.bf16 %v3676_v45, %v3677_v46  ;;  %v11168_v53 = vpack.c.bf16 %v3530_v33, %v3529_v31  ;;  %vm12618_vm4 = vmmov %vm12599_vm6 }
 0x331   : > { %v3499_v22 = vadd.f32 %v8148_v63, %v10897_v34  ;;  %v8154_v24 = vadd.f32 %v8153_v4, %v12611_v32  ;;  %v7245_v18 = vpop.f32.mrb[164].mxu0  ;;  %vm12613_vm15 = vnez %v12612_v16  ;;  %v12616_v32 = vld [vmem:[#allocation47_spill] sm:$0xff] }
 0x332   : > { %12609 = vst [vmem:[#allocation26_spill] sm:$0xff] %v11166_v14  ;;  %12610 = vst [vmem:[#allocation55_spill] sm:$0xff] %v11168_v53  ;;  %v7246_v58 = vpop.f32.mrb[165].mxu0  ;;  %7899 = vmatprep.mubr.msk.bf16.mxu1 %vm12613_vm15, %v11166_v14  ;;  %v3675_v40 = vsel %vm12599_vm6, %v3657_v36, %v3658_v41  ;;  %v3579_v54 = vsel %vm12614_vm13, %v3561_v5, %v3562_v15  ;;  %v12617_v36 = vld [vmem:[#allocation52_spill] sm:$0xff] }
 0x333   : > { %v3531_v46 = vmax.f32 %v3499_v22, 0.0  ;;  %v3500_v33 = vadd.f32 %v8154_v24, %v10897_v34  ;;  %v7247_v31 = vadd.f32 %v7246_v58, %v7245_v18  ;;  %v7248_v44 = vpop.f32.mrb[166].mxu0  ;;  %v11180_v43 = vpack.c.bf16 %v3579_v54, %v3580_v61  ;;  %v12619_v22 = vld [vmem:[#allocation28_spill] sm:$0xff]  ;;  %vm12622_vm6 = vmmov %vm12614_vm13 }
 0x334   : > { %v7249_v4 = vpop.f32.mrb[167].mxu0  ;;  %vm12623_vm13 = vmmov %vm12618_vm4 }
 0x335   : > { %12615 = vst [vmem:[#allocation24_spill] sm:$0xff] %v11180_v43  ;;  %v3563_v20 = vrot.slane %v3531_v46, 7  ;;  %v3659_v63 = vrot.slane %v3531_v46, 1  ;;  %v3532_v45 = vmax.f32 %v3500_v33, 0.0  ;;  %v8144_v53 = vadd.f32 %v12616_v32, %v7247_v31  ;;  %vm12624_vm15 = vmmov %vm12622_vm6  ;;  %v12630_v43 = vld [vmem:[#allocation33_spill] sm:$0xff] }
 0x336   : > { %v7250_v1 = vadd.f32 %v7249_v4, %v7248_v44  ;;  %v12625_v44 = vld [vmem:[#allocation57_spill] sm:$0xff] }
 0x337   : > { %v3564_v19 = vrot.slane %v3532_v45, 7  ;;  %v3660_v47 = vrot.slane %v3532_v45, 1  ;;  %v8145_v48 = vadd.f32 %v8144_v53, %v12617_v36  ;;  %v3674_v5 = vsel %vm12618_vm4, %v3658_v41, %v3659_v63 }
 0x338   : > { %v8150_v24 = vadd.f32 %v12619_v22, %v7250_v1  ;;  %v11187_v18 = vpack.c.bf16 %v3674_v5, %v3675_v40  ;;  %v11189_v61 = vpack.c.bf16 %v3532_v45, %v3531_v46  ;;  %v3578_v58 = vsel %vm12622_vm6, %v3562_v15, %v3563_v20  ;;  %v12628_v5 = vld [vmem:[#allocation27_spill] sm:$0xff] }
 0x339   : > { %v3501_v54 = vadd.f32 %v8145_v48, %v10897_v34  ;;  %v7251_v33 = vpop.f32.mrb[168].mxu0  ;;  %v3673_v31 = vsel %vm12623_vm13, %v3659_v63, %v3660_v47  ;;  %v3577_v53 = vsel %vm12624_vm15, %v3563_v20, %v3564_v19  ;;  %vm12631_vm15 = vmmov %vm12618_vm4 }
 0x33a   : > { %12620 = vst [vmem:[#allocation62_spill] sm:$0xff] %v11187_v18  ;;  %12621 = vst [vmem:[#allocation47_spill] sm:$0xff] %v11189_v61  ;;  %v8151_v41 = vadd.f32 %v8150_v24, %v12625_v44  ;;  %v7252_v4 = vpop.f32.mrb[169].mxu0  ;;  %7900 = vmatmul.mubr.msk.bf16.gmra.mrb[68].mxu1 %vm12478_vm2, %v11187_v18  ;;  %v11202_v40 = vpack.c.bf16 %v3577_v53, %v3578_v58  ;;  %v12629_v24 = vld [vmem:[#allocation59_spill] sm:$0xff] }
 0x33b   : > { %v3533_v46 = vmax.f32 %v3501_v54, 0.0  ;;  %v7253_v15 = vadd.f32 %v7252_v4, %v7251_v33  ;;  %v7254_v45 = vpop.f32.mrb[170].mxu0  ;;  %vm12632_vm4 = vmmov %vm12622_vm6 }
 0x33c   : > { %12627 = vst [vmem:[#allocation52_spill] sm:$0xff] %v11202_v40  ;;  %v3502_v48 = vadd.f32 %v8151_v41, %v10897_v34  ;;  %v7255_v32 = vpop.f32.mrb[171].mxu0 }
 0x33d   : > { %v3565_v36 = vrot.slane %v3533_v46, 7  ;;  %v3661_v63 = vrot.slane %v3533_v46, 1  ;;  %v8159_v22 = vadd.f32 %v12628_v5, %v7253_v15  ;;  %v7256_v20 = vadd.f32 %v7255_v32, %v7254_v45  ;;  %v12635_v45 = vld [vmem:[#allocation73_spill] sm:$0xff] }
 0x33e   : > { %v3534_v61 = vmax.f32 %v3502_v48, 0.0 }
 0x33f   : > { %v8160_v44 = vadd.f32 %v8159_v22, %v12629_v24  ;;  %v8165_v3 = vadd.f32 %v12630_v43, %v7256_v20  ;;  %v3672_v58 = vsel %vm12631_vm15, %v3660_v47, %v3661_v63  ;;  %v3576_v54 = vsel %vm12632_vm4, %v3564_v19, %v3565_v36  ;;  %v12636_v43 = vld [vmem:[#allocation51_spill] sm:$0xff]  ;;  %vm12638_vm15 = vmmov %vm12632_vm4 }
 0x340   : > { %v3566_v33 = vrot.slane %v3534_v61, 7  ;;  %v3662_v53 = vrot.slane %v3534_v61, 1  ;;  %v11212_v41 = vpack.c.bf16 %v3672_v58, %v3673_v31  ;;  %v11214_v4 = vpack.c.bf16 %v3534_v61, %v3533_v46  ;;  %vm12641_vm4 = vmmov %vm12623_vm13 }
 0x341   : > { %v3503_v15 = vadd.f32 %v8160_v44, %v10897_v34  ;;  %v8166_v48 = vadd.f32 %v8165_v3, %v12635_v45  ;;  %v7257_v32 = vpop.f32.mrb[172].mxu0  ;;  %vm12637_vm6 = vnez %v12636_v43  ;;  %v12639_v45 = vld [vmem:[#allocation30_spill] sm:$0xff] }
 0x342   : > { %12633 = vst [vmem:[#allocation28_spill] sm:$0xff] %v11212_v41  ;;  %12634 = vst [vmem:[#allocation57_spill] sm:$0xff] %v11214_v4  ;;  %v7258_v5 = vpop.f32.mrb[173].mxu0  ;;  %7903 = vmatprep.mubr.msk.bf16.mxu1 %vm12637_vm6, %v11212_v41  ;;  %v3671_v47 = vsel %vm12623_vm13, %v3661_v63, %v3662_v53  ;;  %v3575_v19 = vsel %vm12638_vm15, %v3565_v36, %v3566_v33  ;;  %v12640_v63 = vld [vmem:[#allocation65_spill] sm:$0xff] }
 0x343   : > { %v3535_v31 = vmax.f32 %v3503_v15, 0.0  ;;  %v3504_v61 = vadd.f32 %v8166_v48, %v10897_v34  ;;  %v7259_v46 = vadd.f32 %v7258_v5, %v7257_v32  ;;  %v7260_v22 = vpop.f32.mrb[174].mxu0  ;;  %v11226_v20 = vpack.c.bf16 %v3575_v19, %v3576_v54  ;;  %v12642_v15 = vld [vmem:[#allocation37_spill] sm:$0xff]  ;;  %vm12644_vm13 = vmmov %vm12638_vm15  ;;  %v12705_v0 = vld [vmem:[#allocation52_spill] sm:$0xff] }
 0x344   : > { %v7261_v3 = vpop.f32.mrb[175].mxu0  ;;  %vm12645_vm15 = vmmov %vm12641_vm4 }
 0x345   : > { %v3567_v24 = vrot.slane %v3535_v31, 7  ;;  %v3663_v44 = vrot.slane %v3535_v31, 1  ;;  %v3536_v58 = vmax.f32 %v3504_v61, 0.0  ;;  %v8156_v4 = vadd.f32 %v12639_v45, %v7259_v46  ;;  %vm12646_vm6 = vmmov %vm12644_vm13  ;;  %v12647_v46 = vld [vmem:[#allocation71_spill] sm:$0xff] }
 0x346   : > { %v7262_v40 = vadd.f32 %v7261_v3, %v7260_v22  ;;  %vm12658_vm2 = vmmov %vm12646_vm6 }
 0x347   : > { %v3568_v43 = vrot.slane %v3536_v58, 7  ;;  %v3664_v41 = vrot.slane %v3536_v58, 1  ;;  %v8157_v1 = vadd.f32 %v8156_v4, %v12640_v63  ;;  %v3670_v36 = vsel %vm12641_vm4, %v3662_v53, %v3663_v44  ;;  %v12648_v53 = vld [vmem:[#allocation54_spill] sm:$0xff] }
 0x348   : > { %v8162_v48 = vadd.f32 %v12642_v15, %v7262_v40  ;;  %v11233_v32 = vpack.c.bf16 %v3670_v36, %v3671_v47  ;;  %v11235_v54 = vpack.c.bf16 %v3536_v58, %v3535_v31  ;;  %v3574_v5 = vsel %vm12644_vm13, %v3566_v33, %v3567_v24  ;;  %vm12650_vm13 = vmmov %vm12645_vm15 }
 0x349   : > { %v3505_v19 = vadd.f32 %v8157_v1, %v10897_v34  ;;  %v3669_v61 = vsel %vm12645_vm15, %v3663_v44, %v3664_v41  ;;  %v3573_v4 = vsel %vm12646_vm6, %v3567_v24, %v3568_v43  ;;  %vm12649_vm4 = vnez %v12648_v53  ;;  %vm12651_vm15 = vmmov %vm12646_vm6 }
 0x34a   : > { %12643 = vst [vmem:[#allocation27_spill] sm:$0xff] %v11233_v32  ;;  %v8163_v22 = vadd.f32 %v8162_v48, %v12647_v46  ;;  %7904 = vmatmul.mubr.msk.bf16.gmra.mrb[72].mxu1 %vm12649_vm4, %v11233_v32  ;;  %v11248_v40 = vpack.c.bf16 %v3573_v4, %v3574_v5  ;;  %v12653_v15 = vrot.slane %v10903_v35, 7  ;;  %v12654_v48 = vld [vmem:[#allocation56_spill] sm:$0xff]  ;;  %v8700_v46 = vld [vmem:[#allocation11] sm:$0xff]  }
 0x34b   : > { %v3537_v47 = vmax.f32 %v3505_v19, 0.0  ;;  %vm12655_vm4 = vnez %v12654_v48  ;;  %v8708_v48 = vld [vmem:[#allocation11 + $0x210] sm:$0xff]  }
 0x34c   : > { %v3506_v31 = vadd.f32 %v8163_v22, %v10897_v34 }
 0x34d   : > { %v3569_v33 = vrot.slane %v3537_v47, 7  ;;  %v3665_v3 = vrot.slane %v3537_v47, 1 }
 0x34e   : > { %v3538_v1 = vmax.f32 %v3506_v31, 0.0  ;;  %v12660_v31 = vld [vmem:[#allocation25_spill] sm:$0xff] }
 0x34f   : > { %v3668_v44 = vsel %vm12650_vm13, %v3664_v41, %v3665_v3  ;;  %v3572_v24 = vsel %vm12651_vm15, %v3568_v43, %v3569_v33  ;;  %v12656_v43 = vrot.slane %v10903_v35, 1  ;;  %vm12657_vm15 = vmmov %vm12650_vm13  ;;  %v12662_v35 = vld [vmem:[#allocation60_spill] sm:$0xff] }
 0x350   : > { %v3570_v58 = vrot.slane %v3538_v1, 7  ;;  %v3666_v45 = vrot.slane %v3538_v1, 1  ;;  %v11255_v63 = vpack.c.bf16 %v3668_v44, %v3669_v61  ;;  %v11257_v36 = vpack.c.bf16 %v3538_v1, %v3537_v47  ;;  %v8703_v47 = vld [vmem:[#allocation11 + $0x48] sm:$0xff]   ;;  %v8707_v1 = vld [vmem:[#allocation11 + $0x10] sm:$0xff]  }
 0x351   : > { %v8686_v44 = vld [vmem:[#allocation11 + $0x1c8] sm:$0xff]  }
 0x352   : > { %12652 = vst [vmem:[#allocation59_spill] sm:$0xff] %v11255_v63  ;;  %v3602_v34 = vsel %vm12646_vm6, %v3570_v58, %v12653_v15  ;;  %7907 = vmatprep.mubr.msk.bf16.mxu1 %vm12655_vm4, %v11255_v63  ;;  %v3667_v41 = vsel %vm12650_vm13, %v3665_v3, %v3666_v45  ;;  %v3698_v5 = vsel %vm12657_vm15, %v3666_v45, %v12656_v43  ;;  %v8685_v3 = vld [vmem:[#allocation11 + $0x180] sm:$0xff]   ;;  %v8687_v15 = vld [vmem:[#allocation11 + $0x188] sm:$0xff]  }
 0x353   : > { %v3571_v19 = vsel %vm12658_vm2, %v3569_v33, %v3570_v58  ;;  %v11275_v61 = vpack.c.bf16 %v10917_v59, %v3602_v34  ;;  %v11277_v4 = vpack.c.bf16 %v3698_v5, %v3667_v41  ;;  %vm12661_vm6 = vnez %v12660_v31  ;;  %v8704_v59 = vld [vmem:[#allocation11 + $0x8] sm:$0xff]   ;;  %v8706_v33 = vld [vmem:[#allocation11 + $0x50] sm:$0xff]   ;;  %v8710_v34 = vld [vmem:[#allocation11 + $0x18] sm:$0xff]  }
 0x354   : > { %v11279_v22 = vpack.c.bf16 %v3571_v19, %v3572_v24  ;;  %vm12663_vm13 = vnez %v12662_v35  ;;  %v8709_v24 = vld [vmem:[#allocation11 + $0x58] sm:$0xff]   ;;  %v8688_v41 = vld [vmem:[#allocation11 + $0x1d0] sm:$0xff]   ;;  %v8711_v43 = vld [vmem:[#allocation11 + $0x60] sm:$0xff]  }
 0x355   : > { %12659 = vst [vmem:[#allocation33_spill] sm:$0xff] %v11277_v4  ;;  %6541 = vmatmul.mubr.msk.bf16.vlgmr.msra.gmra.mrb[176].mxu0 %vm12661_vm6, %v11275_v61  ;;  %7908 = vmatmul.mubr.msk.bf16.gmra.mrb[76].mxu1 %vm12663_vm13, %v11277_v4  ;;  %v8689_v5 = vld [vmem:[#allocation11 + $0x190] sm:$0xff]   ;;  %v8712_v19 = vld [vmem:[#allocation11 + $0x20] sm:$0xff]   ;;  %v8694_v45 = vld [vmem:[#allocation11 + $0x1e8] sm:$0xff]   ;;  %vm12674_vm13 = vnez %v12588_v11 }
 0x356   : > { %4300 = vmatprep.mubr.bf16.mxu0 %v10937_v9  ;;  %7927 = vmatprep.mubr.bf16.mxu1 %v12664_v6  ;;  %v8705_v35 = vld [vmem:[#allocation11 + $0x208] sm:$0xff]   ;;  %v12708_v11 = vld [vmem:[#allocation57_spill] sm:$0xff] }
 0x357   : > { %7424 = vmatpush3.bf16.msra.mxu0 %v8700_v46  ;;  %v8713_v46 = vld [vmem:[#allocation11 + $0x68] sm:$0xff]  }
 0x358   : > { %7425 = vmatprep.subr.bf16.mxu0 %v8703_v47  ;;  %v12693_v4 = vld [vmem:[#allocation48_spill] sm:$0xff] }
 0x35b   : > { %7426 = vmatpush3.bf16.msra.mxu0 %v8704_v59  ;;  %v8691_v59 = vld [vmem:[#allocation11 + $0x198] sm:$0xff]  }
 0x35c   : > { %7427 = vmatprep.subr.bf16.mxu0 %v8706_v33  ;;  %v8714_v33 = vld [vmem:[#allocation11 + $0x28] sm:$0xff]  }
 0x35d   : > { %6544 = vmatmul.mubr.msk.bf16.gmra.mrb[180].mxu0 %vm12520_vm0, %v10949_v57  ;;  %7928 = vmatmul.mubr.msk.bf16.vlgmr.msra.gmra.mrb[48].mxu1 %vm12555_vm3, %v10935_v17  ;;  %v8690_v17 = vld [vmem:[#allocation11 + $0x1d8] sm:$0xff]   ;;  %vm12671_vm3 = vnez %v12569_v28 }
 0x35e   : > { %4308 = vmatprep.mubr.bf16.mxu0 %v10958_v51  ;;  %7931 = vmatprep.mubr.msk.bf16.mxu1 %vm9622_vm11, %v10955_v30 }
 0x35f   : > { %7560 = vmatpush3.bf16.msra.mxu1 %v8685_v3  ;;  %7428 = vmatpush3.bf16.msra.mxu0 %v8707_v1  ;;  %v8692_v3 = vld [vmem:[#allocation11 + $0x1e0] sm:$0xff]   ;;  %v8715_v1 = vld [vmem:[#allocation11 + $0x70] sm:$0xff]  }
 0x360   : > { %7561 = vmatprep.subr.bf16.mxu1 %v8686_v44  ;;  %7429 = vmatprep.subr.bf16.mxu0 %v8709_v24  ;;  %v8693_v44 = vld [vmem:[#allocation11 + $0x1a0] sm:$0xff]   ;;  %v8717_v24 = vld [vmem:[#allocation11 + $0x30] sm:$0xff]  }
 0x363   : > { %7562 = vmatpush3.bf16.msra.mxu1 %v8687_v15  ;;  %7430 = vmatpush3.bf16.msra.mxu0 %v8710_v34  ;;  %v8718_v15 = vld [vmem:[#allocation11 + $0x78] sm:$0xff]  }
 0x364   : > { %7563 = vmatprep.subr.bf16.mxu1 %v8688_v41  ;;  %7431 = vmatprep.subr.bf16.mxu0 %v8711_v43  ;;  %v8695_v41 = vld [vmem:[#allocation11 + $0x1a8] sm:$0xff]   ;;  %v8719_v43 = vld [vmem:[#allocation11 + $0x38] sm:$0xff]  }
 0x365   : > { %6547 = vmatmul.mubr.msk.bf16.gmra.mrb[184].mxu0 %vm12521_vm8, %v10971_v25  ;;  %7932 = vmatmul.mubr.msk.bf16.gmra.mrb[52].mxu1 %vm12559_vm10, %v10982_v27 }
 0x366   : > { %4316 = vmatprep.mubr.bf16.mxu0 %v10984_v7  ;;  %7935 = vmatprep.mubr.msk.bf16.mxu1 %vm9757_vm5, %v11003_v26 }
 0x367   : > { %7564 = vmatpush3.bf16.msra.mxu1 %v8689_v5  ;;  %7432 = vmatpush3.bf16.msra.mxu0 %v8712_v19  ;;  %v8696_v5 = vld [vmem:[#allocation11 + $0x1f0] sm:$0xff]  }
 0x368   : > { %7565 = vmatprep.subr.bf16.mxu1 %v8690_v17  ;;  %7433 = vmatprep.subr.bf16.mxu0 %v8713_v46  ;;  %v8697_v19 = vld [vmem:[#allocation11 + $0x1b0] sm:$0xff]   ;;  %v8699_v17 = vld [vmem:[#allocation11 + $0x1f8] sm:$0xff]  }
 0x369   : > { %v12669_v46 = vld [vmem:[#allocation42_spill] sm:$0xff] }
 0x36a   : > { %vm12670_vm2 = vnez %v12669_v46  ;;  %v12739_v46 = vld [vmem:[#allocation54_spill] sm:$0xff] }
 0x36b   : > { %7566 = vmatpush3.bf16.msra.mxu1 %v8691_v59  ;;  %7434 = vmatpush3.bf16.msra.mxu0 %v8714_v33  ;;  %v8701_v59 = vld [vmem:[#allocation11 + $0x1b8] sm:$0xff]   ;;  %v8702_v33 = vld [vmem:[#allocation11 + $0x200] sm:$0xff]  }
 0x36c   : > { %7567 = vmatprep.subr.bf16.mxu1 %v8692_v3  ;;  %7435 = vmatprep.subr.bf16.mxu0 %v8715_v1  ;;  %v12672_v3 = vld [vmem:[#allocation49_spill] sm:$0xff] }
 0x36d   : > { %6550 = vmatmul.mubr.msk.bf16.gmra.mrb[188].mxu0 %vm12492_vm9, %v10996_v2  ;;  %7936 = vmatmul.mubr.msk.bf16.gmra.mrb[56].mxu1 %vm12563_vm14, %v11028_v21  ;;  %vm12673_vm15 = vnez %v12672_v3  ;;  %v12675_v1 = vld [vmem:[#allocation53_spill] sm:$0xff]  ;;  %vm12688_vm14 = vnez %v12648_v53  ;;  %v12696_v53 = vld [vmem:[#allocation72_spill] sm:$0xff] }
 0x36e   : > { %4324 = vmatprep.mubr.bf16.mxu0 %v11005_v10  ;;  %7939 = vmatprep.mubr.msk.bf16.mxu1 %vm9809_vm12, %v11049_v23 }
 0x36f   : > { %7568 = vmatpush3.bf16.msra.mxu1 %v8693_v44  ;;  %7436 = vmatpush3.bf16.msra.mxu0 %v8717_v24  ;;  %v12678_v44 = vld [vmem:[#allocation31_spill] sm:$0xff]  ;;  %v12679_v24 = vld [vmem:[#allocation50_spill] sm:$0xff] }
 0x370   : > { %7569 = vmatprep.subr.bf16.mxu1 %v8694_v45  ;;  %7437 = vmatprep.subr.bf16.mxu0 %v8718_v15  ;;  %vm12680_vm12 = vnez %v12679_v24  ;;  %v12681_v45 = vld [vmem:[#allocation34_spill] sm:$0xff]  ;;  %v12700_v24 = vld [vmem:[#allocation55_spill] sm:$0xff] }
 0x371   : > { %v12682_v15 = vld [vmem:[#allocation58_spill] sm:$0xff] }
 0x373   : > { %7570 = vmatpush3.bf16.msra.mxu1 %v8695_v41  ;;  %7438 = vmatpush3.bf16.msra.mxu0 %v8719_v43  ;;  %v12684_v41 = vld [vmem:[#allocation28_spill] sm:$0xff]  ;;  %v12685_v43 = vld [vmem:[#allocation51_spill] sm:$0xff] }
 0x374   : > { %7571 = vmatprep.subr.bf16.mxu1 %v8696_v5  ;;  %v12687_v5 = vld [vmem:[#allocation35_spill] sm:$0xff] }
 0x375   : > { %6553 = vmatmul.mubr.msk.bf16.gmra.mrb[192].mxu0 %vm12670_vm2, %v11018_v50  ;;  %7940 = vmatmul.mubr.msk.bf16.gmra.mrb[60].mxu1 %vm12671_vm3, %v11074_v55  ;;  %vm12677_vm3 = vnez %v12612_v16  ;;  %v12702_v16 = vld [vmem:[#allocation63_spill] sm:$0xff] }
 0x376   : > { %4332 = vmatprep.mubr.bf16.mxu0 %v11030_v62  ;;  %7943 = vmatprep.mubr.msk.bf16.mxu1 %vm12468_vm1, %v11095_v8  ;;  %vm12676_vm1 = vnez %v12675_v1 }
 0x377   : > { %7572 = vmatpush3.bf16.msra.mxu1 %v8697_v19  ;;  %v12689_v19 = vld [vmem:[#allocation38_spill] sm:$0xff] }
 0x378   : > { %7573 = vmatprep.subr.bf16.mxu1 %v8699_v17  ;;  %v12690_v17 = vld [vmem:[#allocation61_spill] sm:$0xff] }
 0x37b   : > { %7574 = vmatpush3.bf16.msra.mxu1 %v8701_v59  ;;  %v12692_v59 = vld [vmem:[#allocation40_spill] sm:$0xff] }
 0x37c   : > { %7959 = vmatprep.subr.bf16.mxu1 %v8702_v33 }
 0x37d   : > { %6556 = vmatmul.mubr.msk.bf16.gmra.mrb[196].mxu0 %vm12673_vm15, %v11042_v39  ;;  %7944 = vmatmul.mubr.msk.bf16.gmra.mrb[64].mxu1 %vm12674_vm13, %v11120_v12  ;;  %vm12683_vm13 = vnez %v12682_v15  ;;  %v12711_v12 = vld [vmem:[#allocation69_spill] sm:$0xff] }
 0x37e   : > { %4340 = vmatprep.mubr.bf16.mxu0 %v11051_v52  ;;  %7947 = vmatprep.mubr.msk.bf16.mxu1 %vm12470_vm7, %v11141_v42  ;;  %vm12686_vm7 = vnez %v12685_v43  ;;  %v12694_v43 = vld [vmem:[#allocation64_spill] sm:$0xff]  ;;  %v12706_v42 = vld [vmem:[#allocation66_spill] sm:$0xff]  ;;  %vm12712_vm10 = vnez %v12711_v12  ;;  %v8733_v12 = vld [vmem:[%s9419_s20 + $0x8] sm:$0xff] }
 0x385   : > { %6559 = vmatmul.mubr.msk.bf16.gmra.mrb[200].mxu0 %vm12676_vm1, %v11064_v38  ;;  %7948 = vmatmul.mubr.msk.bf16.gmra.mrb[68].mxu1 %vm12677_vm3, %v11166_v14  ;;  %vm12691_vm3 = vnez %v12690_v17  ;;  %v12704_v14 = vld [vmem:[#allocation47_spill] sm:$0xff] }
 0x386   : > { %4348 = vmatprep.mubr.bf16.mxu0 %v12678_v44  ;;  %7951 = vmatprep.mubr.msk.bf16.mxu1 %vm12680_vm12, %v11187_v18  ;;  %v12701_v18 = vld [vmem:[#allocation24_spill] sm:$0xff]  ;;  %vm12707_vm12 = vnez %v12706_v42 }
 0x387   : > { %v12735_v42 = vld [vmem:[#allocation28_spill] sm:$0xff] }
 0x38d   : > { %6562 = vmatmul.mubr.msk.bf16.gmra.mrb[204].mxu0 %vm12683_vm13, %v12681_v45  ;;  %7952 = vmatmul.mubr.msk.bf16.gmra.mrb[72].mxu1 %vm12686_vm7, %v12684_v41  ;;  %vm12695_vm7 = vnez %v12694_v43  ;;  %v12698_v41 = vld [vmem:[#allocation67_spill] sm:$0xff]  ;;  %v12745_v43 = vld [vmem:[#allocation60_spill] sm:$0xff] }
 0x38e   : > { %4356 = vmatprep.mubr.bf16.mxu0 %v12687_v5  ;;  %7955 = vmatprep.mubr.msk.bf16.mxu1 %vm12688_vm14, %v11233_v32  ;;  %v12697_v32 = vld [vmem:[#allocation45_spill] sm:$0xff]  ;;  %vm12703_vm14 = vnez %v12702_v16 }
 0x395   : > { %6565 = vmatmul.mubr.msk.bf16.gmra.mrb[208].mxu0 %vm12691_vm3, %v12689_v19  ;;  %7956 = vmatmul.mubr.msk.bf16.gmra.mrb[76].mxu1 %vm12655_vm4, %v11255_v63  ;;  %v8716_v63 = vld [vmem:[#allocation11 + $0x218] sm:$0xff]   ;;  %vm12699_vm4 = vnez %v12698_v41  ;;  %v12742_v41 = vld [vmem:[#allocation56_spill] sm:$0xff] }
 0x396   : > { %4364 = vmatprep.mubr.bf16.mxu0 %v12692_v59  ;;  %5321 = vmatprep.mubr.bf16.mxu1 %v10937_v9 }
 0x39d   : > { %6568 = vmatmul.mubr.msk.bf16.gmra.mrb[212].mxu0 %vm12695_vm7, %v12693_v4  ;;  %6775 = vmatmul.mubr.msk.bf16.vlgmr.msra.gmra.mrb[80].mxu1 %vm12520_vm0, %v10949_v57 }
 0x39e   : > { %4372 = vmatprep.mubr.bf16.mxu0 %v12696_v53  ;;  %5329 = vmatprep.mubr.bf16.mxu1 %v10958_v51 }
 0x39f   : > { %7960 = vmatpush3.bf16.msra.mxu1 %v8702_v33  ;;  %v8720_v33 = vld [vmem:[#allocation11 + $0x220] sm:$0xff]  }
 0x3a0   : > { %7961 = vmatprep.subr.bf16.mxu1 %v8705_v35 }
 0x3a3   : > { %7962 = vmatpush3.bf16.msra.mxu1 %v8705_v35  ;;  %v8721_v35 = vld [vmem:[#allocation11 + $0x228] sm:$0xff]  }
 0x3a4   : > { %7963 = vmatprep.subr.bf16.mxu1 %v8708_v48 }
 0x3a5   : > { %6571 = vmatmul.mubr.msk.bf16.gmra.mrb[216].mxu0 %vm12699_vm4, %v12697_v32  ;;  %6778 = vmatmul.mubr.msk.bf16.gmra.mrb[84].mxu1 %vm12521_vm8, %v10971_v25 }
 0x3a6   : > { %4380 = vmatprep.mubr.bf16.mxu0 %v12700_v24  ;;  %5337 = vmatprep.mubr.bf16.mxu1 %v10984_v7 }
 0x3a7   : > { %7964 = vmatpush3.bf16.msra.mxu1 %v8708_v48  ;;  %v8722_v48 = vld [vmem:[#allocation11 + $0x230] sm:$0xff]  }
 0x3a8   : > { %7965 = vmatprep.subr.bf16.mxu1 %v8716_v63 }
 0x3ab   : > { %7966 = vmatpush3.bf16.msra.mxu1 %v8716_v63  ;;  %v8723_v63 = vld [vmem:[#allocation11 + $0x238] sm:$0xff]  }
 0x3ac   : > { %7967 = vmatprep.subr.bf16.mxu1 %v8720_v33 }
 0x3ad   : > { %6574 = vmatmul.mubr.msk.bf16.gmra.mrb[220].mxu0 %vm12703_vm14, %v12701_v18  ;;  %6781 = vmatmul.mubr.msk.bf16.gmra.mrb[88].mxu1 %vm12492_vm9, %v10996_v2 }
 0x3ae   : > { %4388 = vmatprep.mubr.bf16.mxu0 %v12704_v14  ;;  %5345 = vmatprep.mubr.bf16.mxu1 %v11005_v10 }
 0x3af   : > { %7968 = vmatpush3.bf16.msra.mxu1 %v8720_v33  ;;  %v8724_v33 = vld [vmem:[#allocation14] sm:$0xff]  }
 0x3b0   : > { %7969 = vmatprep.subr.bf16.mxu1 %v8721_v35 }
 0x3b3   : > { %7970 = vmatpush3.bf16.msra.mxu1 %v8721_v35  ;;  %v12709_v35 = vld [vmem:[#allocation68_spill] sm:$0xff] }
 0x3b4   : > { %7971 = vmatprep.subr.bf16.mxu1 %v8722_v48  ;;  %vm12710_vm5 = vnez %v12709_v35 }
 0x3b5   : > { %6577 = vmatmul.mubr.msk.bf16.gmra.mrb[224].mxu0 %vm12707_vm12, %v12705_v0  ;;  %6784 = vmatmul.mubr.msk.bf16.gmra.mrb[92].mxu1 %vm12670_vm2, %v11018_v50 }
 0x3b6   : > { %4396 = vmatprep.mubr.bf16.mxu0 %v12708_v11  ;;  %5353 = vmatprep.mubr.bf16.mxu1 %v11030_v62 }
 0x3b7   : > { %7972 = vmatpush3.bf16.msra.mxu1 %v8722_v48  ;;  %v12713_v48 = vld [vmem:[#allocation70_spill] sm:$0xff] }
 0x3b8   : > { %7973 = vmatprep.subr.bf16.mxu1 %v8723_v63  ;;  %vm12714_vm11 = vnez %v12713_v48 }
 0x3bb   : > { %7974 = vmatpush3.bf16.msra.mxu1 %v8723_v63  ;;  %v12715_v63 = vld [vmem:[#allocation74_spill] sm:$0xff] }
 0x3bc   : > { %8007 = vmatprep.subr.bf16.mxu1 %v8724_v33 }
 0x3bd   : > { %6580 = vmatmul.mubr.msk.bf16.gmra.mrb[228].mxu0 %vm12710_vm5, %v11226_v20  ;;  %6787 = vmatmul.mubr.msk.bf16.gmra.mrb[96].mxu1 %vm12673_vm15, %v11042_v39 }
 0x3be   : > { %4404 = vmatprep.mubr.bf16.mxu0 %v11235_v54  ;;  %5361 = vmatprep.mubr.bf16.mxu1 %v11051_v52 }
 0x3c5   : > { %6583 = vmatmul.mubr.msk.bf16.gmra.mrb[232].mxu0 %vm12712_vm10, %v11248_v40  ;;  %6790 = vmatmul.mubr.msk.bf16.gmra.mrb[100].mxu1 %vm12676_vm1, %v11064_v38 }
 0x3c6   : > { %4412 = vmatprep.mubr.bf16.mxu0 %v11257_v36  ;;  %5369 = vmatprep.mubr.bf16.mxu1 %v12678_v44 }
 0x3cd   : > { %6586 = vmatmul.mubr.msk.bf16.gmra.mrb[236].mxu0 %vm12714_vm11, %v11279_v22  ;;  %6793 = vmatmul.mubr.msk.bf16.gmra.mrb[104].mxu1 %vm12683_vm13, %v12681_v45 }
 0x3ce   : > { %5377 = vmatprep.mubr.bf16.mxu1 %v12687_v5  ;;  %4758 = vmatprep.mubr.bf16.mxu0 %v12664_v6 }
 0x3d5   : > { %4759 = vmatmul.mubr.bf16.vlgmr.msra.gmra.mrb[240].mxu0 %v12664_v6  ;;  %6796 = vmatmul.mubr.msk.bf16.gmra.mrb[108].mxu1 %vm12691_vm3, %v12689_v19 }
 0x3d6   : > { %4766 = vmatprep.mubr.bf16.mxu0 %v12715_v63  ;;  %5385 = vmatprep.mubr.bf16.mxu1 %v12692_v59 }
 0x3dd   : > { %6661 = vmatmul.mubr.msk.bf16.gmra.mrb[244].mxu0 %vm12661_vm6, %v11275_v61  ;;  %6799 = vmatmul.mubr.msk.bf16.gmra.mrb[112].mxu1 %vm12695_vm7, %v12693_v4  ;;  %vm12722_vm6 = vnez %v12581_v29  ;;  %v12733_v61 = vld [vmem:[#allocation50_spill] sm:$0xff] }
 0x3de   : > { %4774 = vmatprep.mubr.bf16.mxu0 %v10937_v9  ;;  %5393 = vmatprep.mubr.bf16.mxu1 %v12696_v53  ;;  %v8725_v9 = vld [vmem:[#allocation14 + $0x8] sm:$0xff]  }
 0x3e5   : > { %6664 = vmatmul.mubr.msk.bf16.gmra.mrb[248].mxu0 %vm12520_vm0, %v10949_v57  ;;  %6802 = vmatmul.mubr.msk.bf16.gmra.mrb[116].mxu1 %vm12699_vm4, %v12697_v32  ;;  %vm12718_vm0 = vnez %v12298_v60  ;;  %v8726_v57 = vld [vmem:[#allocation14 + $0x10] sm:$0xff]   ;;  %v8728_v60 = vld [vmem:[#allocation14 + $0x20] sm:$0xff]  }
 0x3e6   : > { %4782 = vmatprep.mubr.bf16.mxu0 %v10958_v51  ;;  %5401 = vmatprep.mubr.bf16.mxu1 %v12700_v24 }
 0x3ed   : > { %6667 = vmatmul.mubr.msk.bf16.gmra.mrb[252].mxu0 %vm12521_vm8, %v10971_v25  ;;  %6805 = vmatmul.mubr.msk.bf16.gmra.mrb[120].mxu1 %vm12703_vm14, %v12701_v18  ;;  %vm12716_vm8 = vnez %v12278_v13  ;;  %v8727_v13 = vld [vmem:[#allocation14 + $0x18] sm:$0xff]  }
 0x3ee   : > { %4790 = vmatprep.mubr.bf16.mxu0 %v10984_v7  ;;  %5409 = vmatprep.mubr.bf16.mxu1 %v12704_v14 }
 0x3f5   : > { %6670 = vmatmul.mubr.msk.bf16.gmra.mrb[0].mxu0 %vm12492_vm9, %v10996_v2  ;;  %6808 = vmatmul.mubr.msk.bf16.gmra.mrb[124].mxu1 %vm12707_vm12, %v12705_v0  ;;  %vm12719_vm9 = vnez %v12562_v49  ;;  %v8729_v2 = vld [vmem:[#allocation14 + $0x28] sm:$0xff]  }
 0x3f6   : > { %4798 = vmatprep.mubr.bf16.mxu0 %v11005_v10  ;;  %5417 = vmatprep.mubr.bf16.mxu1 %v12708_v11  ;;  %v8730_v10 = vld [vmem:[#allocation14 + $0x30] sm:$0xff]  }
 0x3fd   : > { %6673 = vmatmul.mubr.msk.bf16.gmra.mrb[4].mxu0 %vm12670_vm2, %v11018_v50  ;;  %6811 = vmatmul.mubr.msk.bf16.gmra.mrb[128].mxu1 %vm12710_vm5, %v11226_v20  ;;  %vm12734_vm2 = vnez %v12733_v61 }
 0x3fe   : > { %4806 = vmatprep.mubr.bf16.mxu0 %v11030_v62  ;;  %5425 = vmatprep.mubr.bf16.mxu1 %v11235_v54 }
 0x405   : > { %6676 = vmatmul.mubr.msk.bf16.gmra.mrb[8].mxu0 %vm12673_vm15, %v11042_v39  ;;  %6814 = vmatmul.mubr.msk.bf16.gmra.mrb[132].mxu1 %vm12712_vm10, %v11248_v40  ;;  %vm12746_vm15 = vnez %v12745_v43 }
 0x406   : > { %4814 = vmatprep.mubr.bf16.mxu0 %v11051_v52  ;;  %5433 = vmatprep.mubr.bf16.mxu1 %v11257_v36  ;;  %v12723_v52 = vld [vmem:[#allocation39_spill] sm:$0xff]  ;;  %v12732_v36 = vld [vmem:[#allocation62_spill] sm:$0xff] }
 0x40d   : > { %6679 = vmatmul.mubr.msk.bf16.gmra.mrb[12].mxu0 %vm12676_vm1, %v11064_v38  ;;  %6817 = vmatmul.mubr.msk.bf16.gmra.mrb[136].mxu1 %vm12714_vm11, %v11279_v22  ;;  %vm12717_vm11 = vnez %v12287_v56  ;;  %vm12720_vm1 = vnez %v12566_v37  ;;  %v12724_v37 = vld [vmem:[#allocation41_spill] sm:$0xff]  ;;  %v12726_v38 = vld [vmem:[#allocation43_spill] sm:$0xff] }
 0x40e   : > { %4822 = vmatprep.mubr.bf16.mxu0 %v12678_v44  ;;  %5441 = vmatprep.mubr.bf16.mxu1 %v12664_v6 }
 0x415   : > { %6682 = vmatmul.mubr.msk.bf16.gmra.mrb[16].mxu0 %vm12683_vm13, %v12681_v45  ;;  %5442 = vmatmul.mubr.bf16.gmra.mrb[140].mxu1 %v12664_v6 }
 0x416   : > { %4830 = vmatprep.mubr.bf16.mxu0 %v12687_v5  ;;  %7975 = vmatprep.mubr.msk.bf16.mxu1 %vm12716_vm8, %v10955_v30 }
 0x41d   : > { %6685 = vmatmul.mubr.msk.bf16.gmra.mrb[20].mxu0 %vm12691_vm3, %v12689_v19  ;;  %7976 = vmatmul.mubr.msk.bf16.vlgmr.msra.gmra.mrb[48].mxu1 %vm12717_vm11, %v10982_v27  ;;  %vm12740_vm3 = vnez %v12739_v46 }
 0x41e   : > { %4838 = vmatprep.mubr.bf16.mxu0 %v12692_v59  ;;  %7979 = vmatprep.mubr.msk.bf16.mxu1 %vm12718_vm0, %v11003_v26 }
 0x41f   : > { %8008 = vmatpush3.bf16.msra.mxu1 %v8724_v33  ;;  %v8732_v33 = vld [vmem:[%s9419_s20] sm:$0xff] }
 0x420   : > { %8009 = vmatprep.subr.bf16.mxu1 %v8725_v9 }
 0x423   : > { %8010 = vmatpush3.bf16.msra.mxu1 %v8725_v9 }
 0x424   : > { %8011 = vmatprep.subr.bf16.mxu1 %v8726_v57 }
 0x425   : > { %6688 = vmatmul.mubr.msk.bf16.gmra.mrb[24].mxu0 %vm12695_vm7, %v12693_v4  ;;  %7980 = vmatmul.mubr.msk.bf16.gmra.mrb[52].mxu1 %vm12719_vm9, %v11028_v21  ;;  %vm12721_vm7 = vnez %v12569_v28 }
 0x426   : > { %4846 = vmatprep.mubr.bf16.mxu0 %v12696_v53  ;;  %7983 = vmatprep.mubr.msk.bf16.mxu1 %vm12720_vm1, %v11049_v23  ;;  %v8731_v23 = vld [vmem:[#allocation14 + $0x38] sm:$0xff]  }
 0x427   : > { %8012 = vmatpush3.bf16.msra.mxu1 %v8726_v57  ;;  %v8734_v57 = vld [vmem:[%s9419_s20 + $0x10] sm:$0xff] }
 0x428   : > { %v7303_v56 = vpop.f32.mrb[176].mxu0  ;;  %8013 = vmatprep.subr.bf16.mxu1 %v8727_v13 }
 0x429   : > { %v7304_v30 = vpop.f32.mrb[177].mxu0 }
 0x42a   : > { %v11513_v51 = vadd.f32 %v7304_v30, %v7303_v56  ;;  %v7306_v25 = vpop.f32.mrb[178].mxu0 }
 0x42b   : > { %v7307_v27 = vpop.f32.mrb[179].mxu0  ;;  %8014 = vmatpush3.bf16.msra.mxu1 %v8727_v13  ;;  %v8735_v13 = vld [vmem:[%s9419_s20 + $0x18] sm:$0xff] }
 0x42c   : > { %v11515_v7 = vadd.f32 %v7307_v27, %v7306_v25  ;;  %8015 = vmatprep.subr.bf16.mxu1 %v8728_v60  ;;  %v5683_v56 = vpack.c.bf16 %v8735_v13, %v8734_v57  ;;  %v8736_v25 = vld [vmem:[%s9419_s20 + $0x20] sm:$0xff]  ;;  %v8737_v27 = vld [vmem:[%s9419_s20 + $0x28] sm:$0xff] }
 0x42d   : > { %6691 = vmatmul.mubr.msk.bf16.gmra.mrb[28].mxu0 %vm12699_vm4, %v12697_v32  ;;  %7984 = vmatmul.mubr.msk.bf16.gmra.mrb[56].mxu1 %vm12721_vm7, %v11074_v55  ;;  %vm12725_vm4 = vnez %v12724_v37  ;;  %v12727_v55 = vld [vmem:[#allocation44_spill] sm:$0xff] }
 0x42e   : > { %4854 = vmatprep.mubr.bf16.mxu0 %v12700_v24  ;;  %7987 = vmatprep.mubr.msk.bf16.mxu1 %vm12722_vm6, %v11095_v8  ;;  %vm12728_vm13 = vnez %v12727_v55  ;;  %v8741_v55 = vld [vmem:[%s9419_s20 + $0x48] sm:$0xff] }
 0x42f   : > { %8016 = vmatpush3.bf16.msra.mxu1 %v8728_v60 }
 0x430   : > { %v7309_v26 = vpop.f32.mrb[180].mxu0  ;;  %8017 = vmatprep.subr.bf16.mxu1 %v8729_v2 }
 0x431   : > { %v7310_v50 = vpop.f32.mrb[181].mxu0 }
 0x432   : > { %v11527_v21 = vadd.f32 %v7310_v50, %v7309_v26  ;;  %v7312_v62 = vpop.f32.mrb[182].mxu0 }
 0x433   : > { %v7313_v49 = vpop.f32.mrb[183].mxu0  ;;  %8018 = vmatpush3.bf16.msra.mxu1 %v8729_v2  ;;  %v5684_v2 = vpack.c.bf16 %v8737_v27, %v8736_v25  ;;  %v8750_v25 = vld [vmem:[%s9419_s20 + $0x90] sm:$0xff]  ;;  %v8751_v27 = vld [vmem:[%s9419_s20 + $0x98] sm:$0xff] }
 0x434   : > { %v11529_v39 = vadd.f32 %v7313_v49, %v7312_v62  ;;  %8019 = vmatprep.subr.bf16.mxu1 %v8730_v10  ;;  %v8738_v62 = vld [vmem:[%s9419_s20 + $0x30] sm:$0xff]  ;;  %v8739_v49 = vld [vmem:[%s9419_s20 + $0x38] sm:$0xff] }
 0x435   : > { %6694 = vmatmul.mubr.msk.bf16.gmra.mrb[32].mxu0 %vm12703_vm14, %v12701_v18  ;;  %7988 = vmatmul.mubr.msk.bf16.gmra.mrb[60].mxu1 %vm12725_vm4, %v12723_v52  ;;  %v12730_v18 = vld [vmem:[#allocation46_spill] sm:$0xff] }
 0x436   : > { %4862 = vmatprep.mubr.bf16.mxu0 %v12704_v14  ;;  %7991 = vmatprep.mubr.msk.bf16.mxu1 %vm12728_vm13, %v12726_v38  ;;  %v12729_v14 = vld [vmem:[#allocation26_spill] sm:$0xff]  ;;  %vm12731_vm14 = vnez %v12730_v18  ;;  %v8742_v18 = vld [vmem:[%s9419_s20 + $0x50] sm:$0xff] }
 0x437   : > { %8020 = vmatpush3.bf16.msra.mxu1 %v8730_v10  ;;  %v8740_v38 = vld [vmem:[%s9419_s20 + $0x40] sm:$0xff] }
 0x438   : > { %v7315_v28 = vpop.f32.mrb[184].mxu0  ;;  %8021 = vmatprep.subr.bf16.mxu1 %v8731_v23 }
 0x439   : > { %v7316_v8 = vpop.f32.mrb[185].mxu0 }
 0x43a   : > { %v11541_v29 = vadd.f32 %v7316_v8, %v7315_v28  ;;  %v7318_v32 = vpop.f32.mrb[186].mxu0  ;;  %v5686_v28 = vpack.c.bf16 %v8741_v55, %v8740_v38 }
 0x43b   : > { %v7319_v53 = vpop.f32.mrb[187].mxu0  ;;  %8022 = vmatpush3.bf16.msra.mxu1 %v8731_v23  ;;  %v5685_v23 = vpack.c.bf16 %v8739_v49, %v8738_v62  ;;  %v8752_v49 = vld [vmem:[%s9419_s20 + $0xa0] sm:$0xff] }
 0x43c   : > { %v11543_v16 = vadd.f32 %v7319_v53, %v7318_v32 }
 0x43d   : > { %6697 = vmatmul.mubr.msk.bf16.gmra.mrb[36].mxu0 %vm12707_vm12, %v12705_v0  ;;  %7992 = vmatmul.mubr.msk.bf16.gmra.mrb[64].mxu1 %vm12731_vm14, %v12729_v14  ;;  %v12736_v0 = vld [vmem:[#allocation51_spill] sm:$0xff] }
 0x43e   : > { %4870 = vmatprep.mubr.bf16.mxu0 %v12708_v11  ;;  %7995 = vmatprep.mubr.msk.bf16.mxu1 %vm12734_vm2, %v12732_v36  ;;  %vm12737_vm12 = vnez %v12736_v0  ;;  %v12738_v11 = vld [vmem:[#allocation27_spill] sm:$0xff]  ;;  %v8743_v36 = vld [vmem:[%s9419_s20 + $0x58] sm:$0xff] }
 0x43f   : > { %v5687_v61 = vpack.c.bf16 %v8743_v36, %v8742_v18 }
 0x440   : > { %v7321_v4 = vpop.f32.mrb[188].mxu0 }
 0x441   : > { %v7322_v22 = vpop.f32.mrb[189].mxu0 }
 0x442   : > { %v11555_v31 = vadd.f32 %v7322_v22, %v7321_v4  ;;  %v7324_v58 = vpop.f32.mrb[190].mxu0 }
 0x443   : > { %v7325_v47 = vpop.f32.mrb[191].mxu0 }
 0x444   : > { %v11557_v34 = vadd.f32 %v7325_v47, %v7324_v58  ;;  %v8744_v58 = vld [vmem:[%s9419_s20 + $0x60] sm:$0xff]  ;;  %v8745_v47 = vld [vmem:[%s9419_s20 + $0x68] sm:$0xff] }
 0x445   : > { %6700 = vmatmul.mubr.msk.bf16.gmra.mrb[40].mxu0 %vm12710_vm5, %v11226_v20  ;;  %7996 = vmatmul.mubr.msk.bf16.gmra.mrb[68].mxu1 %vm12737_vm12, %v12735_v42  ;;  %v12741_v20 = vld [vmem:[#allocation59_spill] sm:$0xff]  ;;  %vm12743_vm5 = vnez %v12742_v41  ;;  %v5688_v42 = vpack.c.bf16 %v8745_v47, %v8744_v58 }
 0x446   : > { %4878 = vmatprep.mubr.bf16.mxu0 %v11235_v54  ;;  %7999 = vmatprep.mubr.msk.bf16.mxu1 %vm12740_vm3, %v12738_v11  ;;  %v12744_v54 = vld [vmem:[#allocation33_spill] sm:$0xff] }
 0x448   : > { %v7327_v3 = vpop.f32.mrb[192].mxu0 }
 0x449   : > { %v7328_v1 = vpop.f32.mrb[193].mxu0 }
 0x44a   : > { %v11569_v44 = vadd.f32 %v7328_v1, %v7327_v3  ;;  %v7330_v24 = vpop.f32.mrb[194].mxu0 }
 0x44b   : > { %v7331_v45 = vpop.f32.mrb[195].mxu0 }
 0x44c   : > { %v11571_v15 = vadd.f32 %v7331_v45, %v7330_v24  ;;  %v8746_v45 = vld [vmem:[%s9419_s20 + $0x70] sm:$0xff] }
 0x44d   : > { %6703 = vmatmul.mubr.msk.bf16.gmra.mrb[44].mxu0 %vm12712_vm10, %v11248_v40  ;;  %8000 = vmatmul.mubr.msk.bf16.gmra.mrb[72].mxu1 %vm12743_vm5, %v12741_v20  ;;  %v5682_v40 = vpack.c.bf16 %v8733_v12, %v8732_v33  ;;  %v8747_v20 = vld [vmem:[%s9419_s20 + $0x78] sm:$0xff]  ;;  %v8749_v33 = vld [vmem:[%s9419_s20 + $0x88] sm:$0xff] }
 0x44e   : > { %8003 = vmatprep.mubr.msk.bf16.mxu1 %vm12746_vm15, %v12744_v54  ;;  %v5689_v41 = vpack.c.bf16 %v8747_v20, %v8746_v45 }
 0x450   : > { %v7333_v5 = vpop.f32.mrb[196].mxu0 }
 0x451   : > { %v7334_v19 = vpop.f32.mrb[197].mxu0 }
 0x452   : > { %v11582_v17 = vadd.f32 %v7334_v19, %v7333_v5  ;;  %v7336_v59 = vpop.f32.mrb[198].mxu0 }
 0x453   : > { %v7337_v35 = vpop.f32.mrb[199].mxu0 }
 0x454   : > { %v11586_v48 = vadd.f32 %v7337_v35, %v7336_v59  ;;  %v8748_v59 = vld [vmem:[%s9419_s20 + $0x80] sm:$0xff] }
 0x455   : > { %8004 = vmatmul.mubr.bf16.gmra.mrb[76].mxu1 %v12664_v6  ;;  %v5690_v12 = vpack.c.bf16 %v8749_v33, %v8748_v59 }
 0x456   : > { %8023 = vmatprep.mubr.bf16.mxu1 %v5682_v40 }
 0x458   : > { %v7339_v63 = vpop.f32.mrb[200].mxu0 }
 0x459   : > { %v7340_v9 = vpop.f32.mrb[201].mxu0 }
 0x45a   : > { %v11591_v60 = vadd.f32 %v7340_v9, %v7339_v63  ;;  %v7342_v30 = vpop.f32.mrb[202].mxu0 }
 0x45b   : > { %v7343_v26 = vpop.f32.mrb[203].mxu0 }
 0x45c   : > { %v11595_v10 = vadd.f32 %v7343_v26, %v7342_v30 }
 0x45d   : > { %8024 = vmatmul.mubr.bf16.vlgmr.msra.gmra.mrb[48].mxu1 %v5683_v56 }
 0x45e   : > { %8027 = vmatprep.mubr.bf16.mxu1 %v5684_v2  ;;  %v5691_v2 = vpack.c.bf16 %v8751_v27, %v8750_v25  ;;  %v8760_v27 = vld [vmem:[%s9419_s20 + $0xe0] sm:$0xff] }
 0x460   : > { %v7345_v6 = vpop.f32.mrb[204].mxu0 }
 0x461   : > { %v7346_v50 = vpop.f32.mrb[205].mxu0 }
 0x462   : > { %v11599_v52 = vadd.f32 %v7346_v50, %v7345_v6  ;;  %v7348_v37 = vpop.f32.mrb[206].mxu0 }
 0x463   : > { %v7349_v8 = vpop.f32.mrb[207].mxu0 }
 0x464   : > { %v11603_v32 = vadd.f32 %v7349_v8, %v7348_v37 }
 0x465   : > { %8028 = vmatmul.mubr.bf16.gmra.mrb[52].mxu1 %v5685_v23  ;;  %v8753_v23 = vld [vmem:[%s9419_s20 + $0xa8] sm:$0xff] }
 0x466   : > { %8031 = vmatprep.mubr.bf16.mxu1 %v5686_v28  ;;  %v5692_v37 = vpack.c.bf16 %v8753_v23, %v8752_v49 }
 0x468   : > { %v7351_v53 = vpop.f32.mrb[208].mxu0 }
 0x469   : > { %v7352_v14 = vpop.f32.mrb[209].mxu0 }
 0x46a   : > { %v11607_v4 = vadd.f32 %v7352_v14, %v7351_v53  ;;  %v7354_v22 = vpop.f32.mrb[210].mxu0 }
 0x46b   : > { %v7355_v0 = vpop.f32.mrb[211].mxu0 }
 0x46c   : > { %v11611_v11 = vadd.f32 %v7355_v0, %v7354_v22  ;;  %v8755_v22 = vld [vmem:[%s9419_s20 + $0xb8] sm:$0xff] }
 0x46d   : > { %8032 = vmatmul.mubr.bf16.gmra.mrb[56].mxu1 %v5687_v61  ;;  %v8754_v61 = vld [vmem:[%s9419_s20 + $0xb0] sm:$0xff] }
 0x46e   : > { %8035 = vmatprep.mubr.bf16.mxu1 %v5688_v42  ;;  %v5693_v58 = vpack.c.bf16 %v8755_v22, %v8754_v61 }
 0x470   : > { %v7357_v46 = vpop.f32.mrb[212].mxu0  ;;  %v7575_v3 = vpop.f32.mrb[80].mxu1 }
 0x471   : > { %v7358_v1 = vpop.f32.mrb[213].mxu0  ;;  %v7576_v24 = vpop.f32.mrb[81].mxu1 }
 0x472   : > { %v11615_v54 = vadd.f32 %v7358_v1, %v7357_v46  ;;  %v11617_v43 = vadd.f32 %v7576_v24, %v7575_v3  ;;  %v7360_v5 = vpop.f32.mrb[214].mxu0  ;;  %v7578_v19 = vpop.f32.mrb[82].mxu1  ;;  %v8756_v3 = vld [vmem:[%s9419_s20 + $0xc0] sm:$0xff]  ;;  %v8757_v1 = vld [vmem:[%s9419_s20 + $0xc8] sm:$0xff] }
 0x473   : > { %v7361_v40 = vpop.f32.mrb[215].mxu0  ;;  %v7579_v35 = vpop.f32.mrb[83].mxu1  ;;  %v5694_v24 = vpack.c.bf16 %v8757_v1, %v8756_v3 }
 0x474   : > { %v11621_v63 = vadd.f32 %v7361_v40, %v7360_v5  ;;  %v11623_v9 = vadd.f32 %v7579_v35, %v7578_v19  ;;  %v8758_v40 = vld [vmem:[%s9419_s20 + $0xd0] sm:$0xff]  ;;  %v8759_v35 = vld [vmem:[%s9419_s20 + $0xd8] sm:$0xff] }
 0x475   : > { %8036 = vmatmul.mubr.bf16.gmra.mrb[60].mxu1 %v5689_v41 }
 0x476   : > { %8039 = vmatprep.mubr.bf16.mxu1 %v5690_v12 }
 0x478   : > { %v7363_v57 = vpop.f32.mrb[216].mxu0  ;;  %v7581_v13 = vpop.f32.mrb[84].mxu1 }
 0x479   : > { %v7364_v56 = vpop.f32.mrb[217].mxu0  ;;  %v7582_v30 = vpop.f32.mrb[85].mxu1 }
 0x47a   : > { %v11627_v26 = vadd.f32 %v7364_v56, %v7363_v57  ;;  %v11629_v6 = vadd.f32 %v7582_v30, %v7581_v13  ;;  %v7366_v50 = vpop.f32.mrb[218].mxu0  ;;  %v7584_v62 = vpop.f32.mrb[86].mxu1  ;;  %v5695_v57 = vpack.c.bf16 %v8759_v35, %v8758_v40 }
 0x47b   : > { %v7367_v38 = vpop.f32.mrb[219].mxu0  ;;  %v7585_v55 = vpop.f32.mrb[87].mxu1 }
 0x47c   : > { %v11633_v28 = vadd.f32 %v7367_v38, %v7366_v50  ;;  %v11635_v8 = vadd.f32 %v7585_v55, %v7584_v62 }
 0x47d   : > { %8040 = vmatmul.mubr.bf16.gmra.mrb[64].mxu1 %v5691_v2  ;;  %v8761_v2 = vld [vmem:[%s9419_s20 + $0xe8] sm:$0xff] }
 0x47e   : > { %8043 = vmatprep.mubr.bf16.mxu1 %v5692_v37  ;;  %v5696_v50 = vpack.c.bf16 %v8761_v2, %v8760_v27 }
 0x480   : > { %v7369_v53 = vpop.f32.mrb[220].mxu0  ;;  %v7587_v14 = vpop.f32.mrb[88].mxu1 }
 0x481   : > { %v7370_v18 = vpop.f32.mrb[221].mxu0  ;;  %v7588_v36 = vpop.f32.mrb[89].mxu1 }
 0x482   : > { %v11639_v47 = vadd.f32 %v7370_v18, %v7369_v53  ;;  %v11641_v42 = vadd.f32 %v7588_v36, %v7587_v14  ;;  %v7372_v0 = vpop.f32.mrb[222].mxu0  ;;  %v7590_v46 = vpop.f32.mrb[90].mxu1  ;;  %v8762_v18 = vld [vmem:[%s9419_s20 + $0xf8] sm:$0xff]  ;;  %v8763_v36 = vld [vmem:[%s9419_s20 + $0xf0] sm:$0xff] }
 0x483   : > { %v7373_v45 = vpop.f32.mrb[223].mxu0  ;;  %v7591_v20 = vpop.f32.mrb[91].mxu1  ;;  %v5697_v61 = vpack.c.bf16 %v8762_v18, %v8763_v36 }
 0x484   : > { %v11645_v41 = vadd.f32 %v7373_v45, %v7372_v0  ;;  %v11647_v5 = vadd.f32 %v7591_v20, %v7590_v46 }
 0x485   : > { %8044 = vmatmul.mubr.bf16.gmra.mrb[68].mxu1 %v5693_v58 }
 0x486   : > { %8047 = vmatprep.mubr.bf16.mxu1 %v5694_v24 }
 0x488   : > { %v7375_v19 = vpop.f32.mrb[224].mxu0  ;;  %v7593_v59 = vpop.f32.mrb[92].mxu1 }
 0x489   : > { %v7376_v33 = vpop.f32.mrb[225].mxu0  ;;  %v7594_v12 = vpop.f32.mrb[93].mxu1 }
 0x48a   : > { %v11651_v13 = vadd.f32 %v7376_v33, %v7375_v19  ;;  %v11653_v56 = vadd.f32 %v7594_v12, %v7593_v59  ;;  %v7378_v30 = vpop.f32.mrb[226].mxu0  ;;  %v7596_v25 = vpop.f32.mrb[94].mxu1 }
 0x48b   : > { %v7379_v62 = vpop.f32.mrb[227].mxu0  ;;  %v7597_v49 = vpop.f32.mrb[95].mxu1 }
 0x48c   : > { %v11657_v23 = vadd.f32 %v7379_v62, %v7378_v30  ;;  %v11659_v37 = vadd.f32 %v7597_v49, %v7596_v25 }
 0x48d   : > { %8048 = vmatmul.mubr.bf16.gmra.mrb[72].mxu1 %v5695_v57 }
 0x48e   : > { %8051 = vmatprep.mubr.bf16.mxu1 %v5696_v50 }
 0x490   : > { %v7381_v38 = vpop.f32.mrb[228].mxu0  ;;  %v7599_v55 = vpop.f32.mrb[96].mxu1 }
 0x491   : > { %v7382_v53 = vpop.f32.mrb[229].mxu0  ;;  %v7600_v14 = vpop.f32.mrb[97].mxu1 }
 0x492   : > { %v11663_v22 = vadd.f32 %v7382_v53, %v7381_v38  ;;  %v11665_v58 = vadd.f32 %v7600_v14, %v7599_v55  ;;  %v7384_v0 = vpop.f32.mrb[230].mxu0  ;;  %v7602_v46 = vpop.f32.mrb[98].mxu1 }
 0x493   : > { %v7385_v3 = vpop.f32.mrb[231].mxu0  ;;  %v7603_v1 = vpop.f32.mrb[99].mxu1 }
 0x494   : > { %v11667_v24 = vadd.f32 %v7385_v3, %v7384_v0  ;;  %v11669_v45 = vadd.f32 %v7603_v1, %v7602_v46 }
 0x495   : > { %8052 = vmatmul.mubr.bf16.gmra.mrb[76].mxu1 %v5697_v61 }
 0x498   : > { %v7387_v20 = vpop.f32.mrb[232].mxu0  ;;  %v7605_v19 = vpop.f32.mrb[100].mxu1 }
 0x499   : > { %v7388_v59 = vpop.f32.mrb[233].mxu0  ;;  %v7606_v33 = vpop.f32.mrb[101].mxu1 }
 0x49a   : > { %v11671_v12 = vadd.f32 %v7388_v59, %v7387_v20  ;;  %v11673_v40 = vadd.f32 %v7606_v33, %v7605_v19  ;;  %v7390_v35 = vpop.f32.mrb[234].mxu0  ;;  %v7608_v57 = vpop.f32.mrb[102].mxu1 }
 0x49b   : > { %v7391_v30 = vpop.f32.mrb[235].mxu0  ;;  %v7609_v25 = vpop.f32.mrb[103].mxu1 }
 0x49c   : > { %v11675_v27 = vadd.f32 %v7391_v30, %v7390_v35  ;;  %v11677_v2 = vadd.f32 %v7609_v25, %v7608_v57 }
 0x4a0   : > { %v7393_v50 = vpop.f32.mrb[236].mxu0  ;;  %v7611_v62 = vpop.f32.mrb[104].mxu1 }
 0x4a1   : > { %v7394_v49 = vpop.f32.mrb[237].mxu0  ;;  %v7612_v38 = vpop.f32.mrb[105].mxu1 }
 0x4a2   : > { %v11679_v55 = vadd.f32 %v7394_v49, %v7393_v50  ;;  %v11681_v53 = vadd.f32 %v7612_v38, %v7611_v62  ;;  %v7396_v14 = vpop.f32.mrb[238].mxu0  ;;  %v7614_v18 = vpop.f32.mrb[106].mxu1 }
 0x4a3   : > { %v7397_v36 = vpop.f32.mrb[239].mxu0  ;;  %v7615_v61 = vpop.f32.mrb[107].mxu1 }
 0x4a4   : > { %v11683_v0 = vadd.f32 %v7397_v36, %v7396_v14  ;;  %v11685_v46 = vadd.f32 %v7615_v61, %v7614_v18 }
 0x4a6   : > { %12747 = vst [vmem:[#allocation73_spill] sm:$0xff] %v11683_v0 }
 0x4a8   : > { %v7439_v3 = vpop.f32.mrb[240].mxu0  ;;  %v7617_v1 = vpop.f32.mrb[108].mxu1 }
 0x4a9   : > { %v7440_v20 = vpop.f32.mrb[241].mxu0  ;;  %v7618_v19 = vpop.f32.mrb[109].mxu1 }
 0x4aa   : > { %v7441_v59 = vadd.f32 %v7440_v20, %v7439_v3  ;;  %v11687_v33 = vadd.f32 %v7618_v19, %v7617_v1  ;;  %v7442_v35 = vpop.f32.mrb[242].mxu0  ;;  %v7620_v57 = vpop.f32.mrb[110].mxu1 }
 0x4ab   : > { %v7443_v30 = vpop.f32.mrb[243].mxu0  ;;  %v7621_v25 = vpop.f32.mrb[111].mxu1 }
 0x4ac   : > { %v8171_v50 = vadd.f32 %v7441_v59, %v11513_v51  ;;  %v7444_v62 = vadd.f32 %v7443_v30, %v7442_v35  ;;  %v11690_v49 = vadd.f32 %v7621_v25, %v7620_v57 }
 0x4ae   : > { %v8179_v38 = vadd.f32 %v7444_v62, %v11515_v7  ;;  %v11694_v14 = vadd.f32 %v8171_v50, %v11617_v43 }
 0x4b0   : > { %v7445_v18 = vpop.f32.mrb[244].mxu0  ;;  %v7623_v36 = vpop.f32.mrb[112].mxu1  ;;  %v11697_v61 = vadd.f32 %v8179_v38, %v11623_v9 }
 0x4b1   : > { %v7446_v3 = vpop.f32.mrb[245].mxu0  ;;  %v7624_v1 = vpop.f32.mrb[113].mxu1 }
 0x4b2   : > { %v7447_v20 = vadd.f32 %v7446_v3, %v7445_v18  ;;  %v11699_v19 = vadd.f32 %v7624_v1, %v7623_v36  ;;  %v7448_v0 = vpop.f32.mrb[246].mxu0  ;;  %v7626_v51 = vpop.f32.mrb[114].mxu1 }
 0x4b3   : > { %v7449_v59 = vpop.f32.mrb[247].mxu0  ;;  %v7627_v35 = vpop.f32.mrb[115].mxu1 }
 0x4b4   : > { %v8167_v57 = vadd.f32 %v7447_v20, %v11527_v21  ;;  %v7450_v7 = vadd.f32 %v7449_v59, %v7448_v0  ;;  %v11702_v30 = vadd.f32 %v7627_v35, %v7626_v51 }
 0x4b6   : > { %v8175_v43 = vadd.f32 %v7450_v7, %v11529_v39  ;;  %v11706_v25 = vadd.f32 %v8167_v57, %v11629_v6 }
 0x4b8   : > { %v7451_v9 = vpop.f32.mrb[248].mxu0  ;;  %v7629_v50 = vpop.f32.mrb[116].mxu1  ;;  %v11709_v62 = vadd.f32 %v8175_v43, %v11635_v8 }
 0x4b9   : > { %v7452_v38 = vpop.f32.mrb[249].mxu0  ;;  %v7630_v18 = vpop.f32.mrb[117].mxu1 }
 0x4ba   : > { %v7453_v36 = vadd.f32 %v7452_v38, %v7451_v9  ;;  %v11711_v3 = vadd.f32 %v7630_v18, %v7629_v50  ;;  %v7454_v1 = vpop.f32.mrb[250].mxu0  ;;  %v7632_v21 = vpop.f32.mrb[118].mxu1 }
 0x4bb   : > { %v7455_v0 = vpop.f32.mrb[251].mxu0  ;;  %v7633_v20 = vpop.f32.mrb[119].mxu1 }
 0x4bc   : > { %v8187_v51 = vadd.f32 %v7453_v36, %v11541_v29  ;;  %v7456_v39 = vadd.f32 %v7455_v0, %v7454_v1  ;;  %v11714_v59 = vadd.f32 %v7633_v20, %v7632_v21 }
 0x4be   : > { %v8195_v6 = vadd.f32 %v7456_v39, %v11543_v16  ;;  %v11718_v35 = vadd.f32 %v8187_v51, %v11641_v42 }
 0x4c0   : > { %v7457_v8 = vpop.f32.mrb[252].mxu0  ;;  %v7635_v57 = vpop.f32.mrb[120].mxu1  ;;  %v11721_v7 = vadd.f32 %v8195_v6, %v11647_v5 }
 0x4c1   : > { %v7458_v43 = vpop.f32.mrb[253].mxu0  ;;  %v7636_v9 = vpop.f32.mrb[121].mxu1 }
 0x4c2   : > { %v7459_v50 = vadd.f32 %v7458_v43, %v7457_v8  ;;  %v11723_v38 = vadd.f32 %v7636_v9, %v7635_v57  ;;  %v7460_v18 = vpop.f32.mrb[254].mxu0  ;;  %v7638_v29 = vpop.f32.mrb[122].mxu1 }
 0x4c3   : > { %v7461_v36 = vpop.f32.mrb[255].mxu0  ;;  %v7639_v1 = vpop.f32.mrb[123].mxu1 }
 0x4c4   : > { %v8183_v21 = vadd.f32 %v7459_v50, %v11555_v31  ;;  %v7462_v16 = vadd.f32 %v7461_v36, %v7460_v18  ;;  %v11726_v0 = vadd.f32 %v7639_v1, %v7638_v29 }
 0x4c6   : > { %v8191_v42 = vadd.f32 %v7462_v16, %v11557_v34  ;;  %v11730_v20 = vadd.f32 %v8183_v21, %v11653_v56 }
 0x4c8   : > { %v7463_v5 = vpop.f32.mrb[0].mxu0  ;;  %v7641_v51 = vpop.f32.mrb[124].mxu1  ;;  %v11733_v39 = vadd.f32 %v8191_v42, %v11659_v37 }
 0x4c9   : > { %v7464_v6 = vpop.f32.mrb[1].mxu0  ;;  %v7642_v8 = vpop.f32.mrb[125].mxu1 }
 0x4ca   : > { %v7465_v57 = vadd.f32 %v7464_v6, %v7463_v5  ;;  %v11735_v43 = vadd.f32 %v7642_v8, %v7641_v51  ;;  %v7466_v9 = vpop.f32.mrb[2].mxu0  ;;  %v7644_v31 = vpop.f32.mrb[126].mxu1 }
 0x4cb   : > { %v7467_v50 = vpop.f32.mrb[3].mxu0  ;;  %v7645_v18 = vpop.f32.mrb[127].mxu1 }
 0x4cc   : > { %v8203_v29 = vadd.f32 %v7465_v57, %v11569_v44  ;;  %v7468_v34 = vadd.f32 %v7467_v50, %v7466_v9  ;;  %v11738_v36 = vadd.f32 %v7645_v18, %v7644_v31 }
 0x4ce   : > { %v8211_v56 = vadd.f32 %v7468_v34, %v11571_v15  ;;  %v11742_v1 = vadd.f32 %v8203_v29, %v11665_v58 }
 0x4d0   : > { %v7469_v37 = vpop.f32.mrb[4].mxu0  ;;  %v7647_v21 = vpop.f32.mrb[128].mxu1  ;;  %v11745_v16 = vadd.f32 %v8211_v56, %v11669_v45 }
 0x4d1   : > { %v7470_v42 = vpop.f32.mrb[5].mxu0  ;;  %v7648_v5 = vpop.f32.mrb[129].mxu1 }
 0x4d2   : > { %v7471_v51 = vadd.f32 %v7470_v42, %v7469_v37  ;;  %v11747_v6 = vadd.f32 %v7648_v5, %v7647_v21  ;;  %v7472_v8 = vpop.f32.mrb[6].mxu0  ;;  %v7650_v44 = vpop.f32.mrb[130].mxu1 }
 0x4d3   : > { %v7473_v57 = vpop.f32.mrb[7].mxu0  ;;  %v7651_v9 = vpop.f32.mrb[131].mxu1 }
 0x4d4   : > { %v8199_v31 = vadd.f32 %v7471_v51, %v11582_v17  ;;  %v7474_v15 = vadd.f32 %v7473_v57, %v7472_v8  ;;  %v11750_v50 = vadd.f32 %v7651_v9, %v7650_v44 }
 0x4d6   : > { %v8207_v58 = vadd.f32 %v7474_v15, %v11586_v48  ;;  %v11754_v18 = vadd.f32 %v8199_v31, %v11673_v40 }
 0x4d8   : > { %v7475_v45 = vpop.f32.mrb[8].mxu0  ;;  %v7653_v29 = vpop.f32.mrb[132].mxu1  ;;  %v11757_v34 = vadd.f32 %v8207_v58, %v11677_v2 }
 0x4d9   : > { %v7476_v56 = vpop.f32.mrb[9].mxu0  ;;  %v7654_v37 = vpop.f32.mrb[133].mxu1 }
 0x4da   : > { %v7477_v21 = vadd.f32 %v7476_v56, %v7475_v45  ;;  %v11759_v42 = vadd.f32 %v7654_v37, %v7653_v29  ;;  %v7478_v5 = vpop.f32.mrb[10].mxu0  ;;  %v7656_v17 = vpop.f32.mrb[134].mxu1 }
 0x4db   : > { %v7479_v51 = vpop.f32.mrb[11].mxu0  ;;  %v7657_v8 = vpop.f32.mrb[135].mxu1 }
 0x4dc   : > { %v8219_v44 = vadd.f32 %v7477_v21, %v11591_v60  ;;  %v7480_v48 = vadd.f32 %v7479_v51, %v7478_v5  ;;  %v11762_v57 = vadd.f32 %v7657_v8, %v7656_v17 }
 0x4de   : > { %v8227_v40 = vadd.f32 %v7480_v48, %v11595_v10  ;;  %v11766_v9 = vadd.f32 %v8219_v44, %v11681_v53 }
 0x4e0   : > { %v7481_v2 = vpop.f32.mrb[12].mxu0  ;;  %v7659_v31 = vpop.f32.mrb[136].mxu1  ;;  %v11769_v15 = vadd.f32 %v8227_v40, %v11685_v46 }
 0x4e1   : > { %v7482_v58 = vpop.f32.mrb[13].mxu0  ;;  %v7660_v45 = vpop.f32.mrb[137].mxu1 }
 0x4e2   : > { %v7483_v29 = vadd.f32 %v7482_v58, %v7481_v2  ;;  %v11771_v56 = vadd.f32 %v7660_v45, %v7659_v31  ;;  %v7484_v37 = vpop.f32.mrb[14].mxu0  ;;  %v7662_v60 = vpop.f32.mrb[138].mxu1 }
 0x4e3   : > { %v7485_v21 = vpop.f32.mrb[15].mxu0  ;;  %v7663_v5 = vpop.f32.mrb[139].mxu1 }
 0x4e4   : > { %v8215_v17 = vadd.f32 %v7483_v29, %v11599_v52  ;;  %v7486_v10 = vadd.f32 %v7485_v21, %v7484_v37  ;;  %v11774_v51 = vadd.f32 %v7663_v5, %v7662_v60 }
 0x4e6   : > { %v8223_v53 = vadd.f32 %v7486_v10, %v11603_v32  ;;  %v11778_v8 = vadd.f32 %v8215_v17, %v11687_v33 }
 0x4e8   : > { %v7487_v46 = vpop.f32.mrb[16].mxu0  ;;  %v7665_v44 = vpop.f32.mrb[140].mxu1  ;;  %v11781_v48 = vadd.f32 %v8223_v53, %v11690_v49 }
 0x4e9   : > { %v7488_v40 = vpop.f32.mrb[17].mxu0  ;;  %v7666_v2 = vpop.f32.mrb[141].mxu1 }
 0x4ea   : > { %v7489_v31 = vadd.f32 %v7488_v40, %v7487_v46  ;;  %v11783_v58 = vadd.f32 %v7666_v2, %v7665_v44  ;;  %v7490_v45 = vpop.f32.mrb[18].mxu0  ;;  %v7668_v52 = vpop.f32.mrb[142].mxu1 }
 0x4eb   : > { %v7491_v29 = vpop.f32.mrb[19].mxu0  ;;  %v7669_v37 = vpop.f32.mrb[143].mxu1 }
 0x4ec   : > { %v8235_v60 = vadd.f32 %v7489_v31, %v11607_v4  ;;  %v7492_v32 = vadd.f32 %v7491_v29, %v7490_v45  ;;  %v11786_v21 = vadd.f32 %v7669_v37, %v7668_v52 }
 0x4ee   : > { %v8243_v33 = vadd.f32 %v7492_v32, %v11611_v11  ;;  %v11790_v5 = vadd.f32 %v8235_v60, %v11699_v19 }
 0x4f0   : > { %v7493_v49 = vpop.f32.mrb[20].mxu0  ;;  %v11793_v17 = vadd.f32 %v8243_v33, %v11702_v30 }
 0x4f1   : > { %v7494_v10 = vpop.f32.mrb[21].mxu0 }
 0x4f2   : > { %v7495_v53 = vadd.f32 %v7494_v10, %v7493_v49  ;;  %v7496_v46 = vpop.f32.mrb[22].mxu0 }
 0x4f3   : > { %v7497_v44 = vpop.f32.mrb[23].mxu0 }
 0x4f4   : > { %v8231_v40 = vadd.f32 %v7495_v53, %v11615_v54  ;;  %v7498_v2 = vadd.f32 %v7497_v44, %v7496_v46 }
 0x4f6   : > { %v8239_v4 = vadd.f32 %v7498_v2, %v11621_v63  ;;  %v11798_v31 = vadd.f32 %v8231_v40, %v11711_v3 }
 0x4f8   : > { %v7499_v11 = vpop.f32.mrb[24].mxu0  ;;  %v11801_v19 = vadd.f32 %v8239_v4, %v11714_v59 }
 0x4f9   : > { %v7500_v45 = vpop.f32.mrb[25].mxu0 }
 0x4fa   : > { %v7501_v52 = vadd.f32 %v7500_v45, %v7499_v11  ;;  %v7502_v30 = vpop.f32.mrb[26].mxu0 }
 0x4fb   : > { %v7503_v29 = vpop.f32.mrb[27].mxu0 }
 0x4fc   : > { %v8251_v37 = vadd.f32 %v7501_v52, %v11627_v26  ;;  %v7504_v60 = vadd.f32 %v7503_v29, %v7502_v30 }
 0x4fe   : > { %v8259_v32 = vadd.f32 %v7504_v60, %v11633_v28  ;;  %v11806_v54 = vadd.f32 %v8251_v37, %v11723_v38 }
 0x500   : > { %v7505_v63 = vpop.f32.mrb[28].mxu0  ;;  %v11809_v3 = vadd.f32 %v8259_v32, %v11726_v0 }
 0x501   : > { %v7506_v33 = vpop.f32.mrb[29].mxu0 }
 0x502   : > { %v7507_v49 = vadd.f32 %v7506_v33, %v7505_v63  ;;  %v7508_v59 = vpop.f32.mrb[30].mxu0 }
 0x503   : > { %v7509_v10 = vpop.f32.mrb[31].mxu0 }
 0x504   : > { %v8247_v53 = vadd.f32 %v7507_v49, %v11639_v47  ;;  %v7510_v46 = vadd.f32 %v7509_v10, %v7508_v59 }
 0x506   : > { %v8255_v44 = vadd.f32 %v7510_v46, %v11645_v41  ;;  %v11814_v26 = vadd.f32 %v8247_v53, %v11735_v43 }
 0x508   : > { %v7511_v28 = vpop.f32.mrb[32].mxu0  ;;  %v11817_v38 = vadd.f32 %v8255_v44, %v11738_v36 }
 0x509   : > { %v7512_v40 = vpop.f32.mrb[33].mxu0 }
 0x50a   : > { %v7513_v2 = vadd.f32 %v7512_v40, %v7511_v28  ;;  %v7514_v0 = vpop.f32.mrb[34].mxu0 }
 0x50b   : > { %v7515_v4 = vpop.f32.mrb[35].mxu0 }
 0x50c   : > { %v8267_v11 = vadd.f32 %v7513_v2, %v11651_v13  ;;  %v7516_v45 = vadd.f32 %v7515_v4, %v7514_v0  ;;  %v12748_v4 = vld [vmem:[#allocation73_spill] sm:$0xff] }
 0x50e   : > { %v8275_v52 = vadd.f32 %v7516_v45, %v11657_v23  ;;  %v11822_v47 = vadd.f32 %v8267_v11, %v11747_v6 }
 0x510   : > { %v7517_v41 = vpop.f32.mrb[36].mxu0  ;;  %v11825_v43 = vadd.f32 %v8275_v52, %v11750_v50 }
 0x511   : > { %v7518_v30 = vpop.f32.mrb[37].mxu0 }
 0x512   : > { %v7519_v29 = vadd.f32 %v7518_v30, %v7517_v41  ;;  %v7520_v36 = vpop.f32.mrb[38].mxu0 }
 0x513   : > { %v7521_v37 = vpop.f32.mrb[39].mxu0 }
 0x514   : > { %v8263_v60 = vadd.f32 %v7519_v29, %v11663_v22  ;;  %v7522_v32 = vadd.f32 %v7521_v37, %v7520_v36 }
 0x516   : > { %v8271_v63 = vadd.f32 %v7522_v32, %v11667_v24  ;;  %v11830_v13 = vadd.f32 %v8263_v60, %v11759_v42 }
 0x518   : > { %v7523_v23 = vpop.f32.mrb[40].mxu0  ;;  %v11833_v6 = vadd.f32 %v8271_v63, %v11762_v57 }
 0x519   : > { %v7524_v33 = vpop.f32.mrb[41].mxu0 }
 0x51a   : > { %v7525_v49 = vadd.f32 %v7524_v33, %v7523_v23  ;;  %v7526_v50 = vpop.f32.mrb[42].mxu0 }
 0x51b   : > { %v7527_v59 = vpop.f32.mrb[43].mxu0 }
 0x51c   : > { %v8283_v10 = vadd.f32 %v7525_v49, %v11671_v12  ;;  %v7528_v53 = vadd.f32 %v7527_v59, %v7526_v50 }
 0x51e   : > { %v8291_v46 = vadd.f32 %v7528_v53, %v11675_v27  ;;  %v11838_v22 = vadd.f32 %v8283_v10, %v11771_v56  ;;  %v11851_v56 = vld [vmem:[#allocation13] ss:$0 sm:$0xff] }
 0x51f   : > { %v8173_v52 = vadd.f32 %v11694_v14, %v11851_v56  ;;  %v8177_v30 = vadd.f32 %v11709_v62, %v11851_v56  ;;  %v8189_v37 = vadd.f32 %v11718_v35, %v11851_v56  ;;  %v8193_v63 = vadd.f32 %v11733_v39, %v11851_v56 }
 0x520   : > { %v7529_v24 = vpop.f32.mrb[44].mxu0  ;;  %v11841_v42 = vadd.f32 %v8291_v46, %v11774_v51  ;;  %v8169_v51 = vadd.f32 %v11706_v25, %v11851_v56  ;;  %v8197_v49 = vadd.f32 %v11721_v7, %v11851_v56  ;;  %v8201_v35 = vadd.f32 %v11754_v18, %v11851_v56 }
 0x521   : > { %v7530_v44 = vpop.f32.mrb[45].mxu0  ;;  %v8205_v10 = vadd.f32 %v11742_v1, %v11851_v56  ;;  %v8209_v46 = vadd.f32 %v11757_v34, %v11851_v56  ;;  %v8217_v1 = vadd.f32 %v11778_v8, %v11851_v56 }
 0x522   : > { %v7531_v28 = vadd.f32 %v7530_v44, %v7529_v24  ;;  %v7532_v57 = vpop.f32.mrb[46].mxu0 }
 0x523   : > { %v7533_v40 = vpop.f32.mrb[47].mxu0 }
 0x524   : > { %v8279_v2 = vadd.f32 %v7531_v28, %v11679_v55  ;;  %v7534_v0 = vadd.f32 %v7533_v40, %v7532_v57  ;;  %v8213_v28 = vadd.f32 %v11745_v16, %v11851_v56 }
 0x526   : > { %v8287_v12 = vadd.f32 %v7534_v0, %v12748_v4  ;;  %v11846_v11 = vadd.f32 %v8279_v2, %v11783_v58  ;;  %v8221_v2 = vadd.f32 %v11766_v9, %v11851_v56  ;;  %v8225_v4 = vadd.f32 %v11781_v48, %v11851_v56 }
 0x527   : > { %v8233_v9 = vadd.f32 %v11798_v31, %v11851_v56 }
 0x528   : > { %v11849_v27 = vadd.f32 %v8287_v12, %v11786_v21  ;;  %v8181_v21 = vadd.f32 %v11697_v61, %v11851_v56  ;;  %v8185_v61 = vadd.f32 %v11730_v20, %v11851_v56 }
 0x530   : > { %v8025_v45 = vpop.f32.mrb[48].mxu1 }
 0x531   : > { %v8170_v41 = vadd.f32 %v8169_v51, %v8025_v45  ;;  %v5796_v55 = vpop.f32.mrb[49].mxu1  ;;  %v8229_v45 = vadd.f32 %v11769_v15, %v11851_v56 }
 0x532   : > { %v8174_v29 = vadd.f32 %v8173_v52, %v5796_v55  ;;  %v8026_v58 = vpop.f32.mrb[50].mxu1  ;;  %v8237_v55 = vadd.f32 %v11790_v5, %v11851_v56  ;;  %v8249_v5 = vadd.f32 %v11814_v26, %v11851_v56 }
 0x533   : > { %5957 = vst [vmem:[%s11863_s12 + $0x10] sm:$0xff] %v8170_v41  ;;  %v8178_v14 = vadd.f32 %v8177_v30, %v8026_v58  ;;  %v5799_v25 = vpop.f32.mrb[51].mxu1 }
 0x534   : > { %5955 = vst [vmem:[%s11863_s12] sm:$0xff] %v8174_v29  ;;  %v8182_v36 = vadd.f32 %v8181_v21, %v5799_v25  ;;  %v8241_v29 = vadd.f32 %v11801_v19, %v11851_v56 }
 0x535   : > { %5958 = vst [vmem:[%s11863_s12 + $0x18] sm:$0xff] %v8178_v14  ;;  %v8245_v14 = vadd.f32 %v11793_v17, %v11851_v56 }
 0x536   : > { %5956 = vst [vmem:[%s11863_s12 + $0x8] sm:$0xff] %v8182_v36 }
 0x538   : > { %v8029_v62 = vpop.f32.mrb[52].mxu1 }
 0x539   : > { %v8186_v60 = vadd.f32 %v8185_v61, %v8029_v62  ;;  %v5812_v32 = vpop.f32.mrb[53].mxu1  ;;  %v8253_v61 = vadd.f32 %v11806_v54, %v11851_v56  ;;  %v8265_v54 = vadd.f32 %v11830_v13, %v11851_v56 }
 0x53a   : > { %v8190_v23 = vadd.f32 %v8189_v37, %v5812_v32  ;;  %v8030_v33 = vpop.f32.mrb[54].mxu1  ;;  %v8257_v37 = vadd.f32 %v11817_v38, %v11851_v56 }
 0x53b   : > { %5961 = vst [vmem:[%s11863_s12 + $0x30] sm:$0xff] %v8186_v60  ;;  %v8194_v50 = vadd.f32 %v8193_v63, %v8030_v33  ;;  %v5815_v59 = vpop.f32.mrb[55].mxu1  ;;  %v8261_v63 = vadd.f32 %v11809_v3, %v11851_v56 }
 0x53c   : > { %5959 = vst [vmem:[%s11863_s12 + $0x20] sm:$0xff] %v8190_v23  ;;  %v8198_v20 = vadd.f32 %v8197_v49, %v5815_v59  ;;  %v8269_v49 = vadd.f32 %v11822_v47, %v11851_v56  ;;  %v8273_v59 = vadd.f32 %v11833_v6, %v11851_v56  ;;  %v8281_v47 = vadd.f32 %v11846_v11, %v11851_v56 }
 0x53d   : > { %5962 = vst [vmem:[%s11863_s12 + $0x38] sm:$0xff] %v8194_v50  ;;  %v8285_v6 = vadd.f32 %v11838_v22, %v11851_v56  ;;  %v8293_v11 = vadd.f32 %v11841_v42, %v11851_v56 }
 0x53e   : > { %5960 = vst [vmem:[%s11863_s12 + $0x28] sm:$0xff] %v8198_v20 }
 0x540   : > { %v8033_v39 = vpop.f32.mrb[56].mxu1 }
 0x541   : > { %v8202_v53 = vadd.f32 %v8201_v35, %v8033_v39  ;;  %v5828_v7 = vpop.f32.mrb[57].mxu1  ;;  %v8277_v39 = vadd.f32 %v11825_v43, %v11851_v56 }
 0x542   : > { %v8206_v24 = vadd.f32 %v8205_v10, %v5828_v7  ;;  %v8034_v44 = vpop.f32.mrb[58].mxu1 }
 0x543   : > { %5965 = vst [vmem:[%s11863_s12 + $0x50] sm:$0xff] %v8202_v53  ;;  %v8210_v57 = vadd.f32 %v8209_v46, %v8034_v44  ;;  %v5831_v40 = vpop.f32.mrb[59].mxu1 }
 0x544   : > { %5963 = vst [vmem:[%s11863_s12 + $0x40] sm:$0xff] %v8206_v24  ;;  %v8214_v18 = vadd.f32 %v8213_v28, %v5831_v40  ;;  %v8289_v24 = vadd.f32 %v11849_v27, %v11851_v56 }
 0x545   : > { %5966 = vst [vmem:[%s11863_s12 + $0x58] sm:$0xff] %v8210_v57 }
 0x546   : > { %5964 = vst [vmem:[%s11863_s12 + $0x48] sm:$0xff] %v8214_v18 }
 0x548   : > { %v8037_v34 = vpop.f32.mrb[60].mxu1 }
 0x549   : > { %v8218_v0 = vadd.f32 %v8217_v1, %v8037_v34  ;;  %v5844_v16 = vpop.f32.mrb[61].mxu1 }
 0x54a   : > { %v8222_v12 = vadd.f32 %v8221_v2, %v5844_v16  ;;  %v8038_v51 = vpop.f32.mrb[62].mxu1 }
 0x54b   : > { %5969 = vst [vmem:[%s11863_s12 + $0x70] sm:$0xff] %v8218_v0  ;;  %v8226_v52 = vadd.f32 %v8225_v4, %v8038_v51  ;;  %v5847_v41 = vpop.f32.mrb[63].mxu1 }
 0x54c   : > { %5967 = vst [vmem:[%s11863_s12 + $0x60] sm:$0xff] %v8222_v12  ;;  %v8230_v8 = vadd.f32 %v8229_v45, %v5847_v41 }
 0x54d   : > { %5970 = vst [vmem:[%s11863_s12 + $0x78] sm:$0xff] %v8226_v52 }
 0x54e   : > { %5968 = vst [vmem:[%s11863_s12 + $0x68] sm:$0xff] %v8230_v8 }
 0x550   : > { %v8041_v48 = vpop.f32.mrb[64].mxu1 }
 0x551   : > { %v8234_v30 = vadd.f32 %v8233_v9, %v8041_v48  ;;  %v5860_v15 = vpop.f32.mrb[65].mxu1 }
 0x552   : > { %v8238_v58 = vadd.f32 %v8237_v55, %v5860_v15  ;;  %v8042_v21 = vpop.f32.mrb[66].mxu1 }
 0x553   : > { %5973 = vst [vmem:[%s11863_s12 + $0x90] sm:$0xff] %v8234_v30  ;;  %v8242_v25 = vadd.f32 %v8241_v29, %v8042_v21  ;;  %v5863_v36 = vpop.f32.mrb[67].mxu1 }
 0x554   : > { %5971 = vst [vmem:[%s11863_s12 + $0x80] sm:$0xff] %v8238_v58  ;;  %v8246_v31 = vadd.f32 %v8245_v14, %v5863_v36 }
 0x555   : > { %5974 = vst [vmem:[%s11863_s12 + $0x98] sm:$0xff] %v8242_v25 }
 0x556   : > { %5972 = vst [vmem:[%s11863_s12 + $0x88] sm:$0xff] %v8246_v31 }
 0x558   : > { %v8045_v19 = vpop.f32.mrb[68].mxu1 }
 0x559   : > { %v8250_v62 = vadd.f32 %v8249_v5, %v8045_v19  ;;  %v5876_v17 = vpop.f32.mrb[69].mxu1 }
 0x55a   : > { %v8254_v60 = vadd.f32 %v8253_v61, %v5876_v17  ;;  %v8046_v32 = vpop.f32.mrb[70].mxu1 }
 0x55b   : > { %5977 = vst [vmem:[%s11863_s12 + $0xb0] sm:$0xff] %v8250_v62  ;;  %v8258_v23 = vadd.f32 %v8257_v37, %v8046_v32  ;;  %v5879_v33 = vpop.f32.mrb[71].mxu1 }
 0x55c   : > { %5975 = vst [vmem:[%s11863_s12 + $0xa0] sm:$0xff] %v8254_v60  ;;  %v8262_v26 = vadd.f32 %v8261_v63, %v5879_v33 }
 0x55d   : > { %5978 = vst [vmem:[%s11863_s12 + $0xb8] sm:$0xff] %v8258_v23 }
 0x55e   : > { %5976 = vst [vmem:[%s11863_s12 + $0xa8] sm:$0xff] %v8262_v26 }
 0x560   : > { %v8049_v38 = vpop.f32.mrb[72].mxu1 }
 0x561   : > { %v8266_v50 = vadd.f32 %v8265_v54, %v8049_v38  ;;  %v5892_v3 = vpop.f32.mrb[73].mxu1 }
 0x562   : > { %v8270_v20 = vadd.f32 %v8269_v49, %v5892_v3  ;;  %v8050_v35 = vpop.f32.mrb[74].mxu1 }
 0x563   : > { %5981 = vst [vmem:[%s11863_s12 + $0xd0] sm:$0xff] %v8266_v50  ;;  %v8274_v10 = vadd.f32 %v8273_v59, %v8050_v35  ;;  %v5895_v53 = vpop.f32.mrb[75].mxu1 }
 0x564   : > { %5979 = vst [vmem:[%s11863_s12 + $0xc0] sm:$0xff] %v8270_v20  ;;  %v8278_v13 = vadd.f32 %v8277_v39, %v5895_v53 }
 0x565   : > { %5982 = vst [vmem:[%s11863_s12 + $0xd8] sm:$0xff] %v8274_v10 }
 0x566   : > { %5980 = vst [vmem:[%s11863_s12 + $0xc8] sm:$0xff] %v8278_v13 }
 0x568   : > { %v8053_v7 = vpop.f32.mrb[76].mxu1 }
 0x569   : > { %v8282_v43 = vadd.f32 %v8281_v47, %v8053_v7  ;;  %v5908_v46 = vpop.f32.mrb[77].mxu1 }
 0x56a   : > { %v8286_v44 = vadd.f32 %v8285_v6, %v5908_v46  ;;  %v8054_v28 = vpop.f32.mrb[78].mxu1 }
 0x56b   : > { %5985 = vst [vmem:[%s11863_s12 + $0xf0] sm:$0xff] %v8282_v43  ;;  %v8290_v57 = vadd.f32 %v8289_v24, %v8054_v28  ;;  %v5911_v40 = vpop.f32.mrb[79].mxu1 }
 0x56c   : > { %5983 = vst [vmem:[%s11863_s12 + $0xe0] sm:$0xff] %v8286_v44  ;;  %v8294_v22 = vadd.f32 %v8293_v11, %v5911_v40 }
 0x56d   : > { %5986 = vst [vmem:[%s11863_s12 + $0xf8] sm:$0xff] %v8290_v57 }
 0x56e   : > { %5984 = vst [vmem:[%s11863_s12 + $0xe8] sm:$0xff] %v8294_v22 }
 0x56f   : > { %9003 = shalt.err (!%p9000_p11)
}
 0x570   : > { %s9004_s18 = scalar_lea.hbm %s11955_s11, 4096  ;;  %s9008_s12 = scalar_lea.hbm %s12012_s8, 8192 }
 0x571   : > { %p9005_p12 = scmp.ne.s32.totalorder %s11955_s11, %s9004_s18  ;;  %p9009_p9 = scmp.lt.u32.totalorder %s11955_s11, %s12012_s8 }
 0x572   : > { %p9010_p7 = scmp.lt.u32.totalorder %s9008_s12, %s9004_s18  ;;  %p9012_p4 = scmp.lt.u32.totalorder %s9004_s18, %s11955_s11 }
 0x573   : > { %p9006_p0 = pnand %p9005_p12, %p12749_p13 }
 0x574   : > { %p9011_p10 = por %p9010_p7, %p9009_p9 }
 0x575   : > { %p9007_p5 = pneg %p9006_p0 }
 0x576   : > { %p9013_p1 = por %p9012_p4, %p9011_p10 }
 0x578   : > { %p9014_p3 = pnand %p9013_p1, %p9007_p5 }
 0x57a   : > { %9017 = shalt.err (!%p9014_p3)
}
 0x57b   : > { %s9089_s16 = smov 128   ;;  %s9090_s21 = smov 8  }
 0x57c   : > { %8485 = dma.vmem_to_hbm [thread:$0]  (%p12749_p13), %s11957_s13, 4096, %s11955_s11, %s5988_s15, %s9089_s16, %s9089_s16, %s9090_s21  }
 0x57d PF: > { %s6016_s14 = sand.u32 1, %s9060_s27   ;;  %p12750_p2 = scmp.ne.s32.totalorder %s12246_s22, 0 }
 0x57e   : > { %p12751_p8 = scmp.ge.s32.totalorder %s9072_s30, 2  ;;  %s6017_s19 = scalar_lea.sflag [#allocation4], %s6016_s14 }
 0x580   : > { %p8514_p6 = pnand %p12751_p8, %p12750_p2 }
 0x582   : > { %9055 = dma.done.wait (!%p8514_p6), %s6017_s19, 4096  }
 0x583   : > { %9057 = vsyncadd (!%p8514_p6), %s6017_s19, 4294963200  ;;  %p25_p11 = scmp.ge.s32.totalorder %s9340_s23, 4   ;;  %s12752_s27 = smov %s9064_s28 }
 0x584   : > { %s12753_s28 = smov %s9068_s29  ;;  %s12754_s29 = smov %s9352_s24 }
 0x585   : > { %s12755_s30 = smov %s9340_s23  ;;  %27 = sbr.rel (!%p25_p11) target bundleno = 11 (0xb), region = 129 }
 0x58c   :  { %6022 = vsyncpa [#allocation3], 1 }
 0x58d   :  { %6024 = vsyncpa [#allocation3 + $0x1], 1 }
 0x58e   :  { %6025 = vsyncpa [#allocation6], 1 }
 0x58f   :  { %6026 = vsyncpa [#allocation9], 1 }
 0x590   :  { %6027 = vsyncpa [#allocation12], 1 }
 0x591   :  { %6028 = vsyncpa [#allocation15], 1 }
 0x592   :  { %6029 = vsyncpa [#allocation4], 1 }
 0x593   :  { %6031 = vsyncpa [#allocation4 + $0x1], 1 }

</bundles_post_ra>
